<compile_context>
chip_gen: v7x
topology: tpu7x:2x2x1
jax: 0.10.0
libtpu: 0.0.40
codegen_flags: <defaults>
</compile_context>

<pallas_src>
import jax
import jax.numpy as jnp
from jax import lax
from jax.experimental import pallas as pl
from jax.experimental.pallas import tpu as pltpu

F32 = jnp.float32
BF16 = jnp.bfloat16

B = 10        # hard-coded by the module's reshape((10, 3, -1))
HID = 768     # BERT hidden size
LSTM_H = 256
VOCAB = 1000
SEQ = 8
TPAD = 16     # per-timestep row padding for aligned slicing in the LSTM kernel


# ----------------------------- LSTM path kernel -----------------------------
def lstm_kernel(x_ref, wih_ref, whh_ref, b_ref, wfc_ref, bfc_ref, out_ref):
    # Input projection for ALL 3 timesteps fused into one matmul (M=48).
    gates_x = jnp.dot(x_ref[...], wih_ref[...], preferred_element_type=F32) + b_ref[...]
    h = jnp.zeros((B, LSTM_H), F32)
    c = jnp.zeros((B, LSTM_H), F32)
    for t in range(3):
        g = gates_x[t * TPAD:t * TPAD + B, :] + jnp.dot(
            h, whh_ref[...], preferred_element_type=F32)
        i = jax.nn.sigmoid(g[:, 0:256])
        f = jax.nn.sigmoid(g[:, 256:512])
        gg = jnp.tanh(g[:, 512:768])
        o = jax.nn.sigmoid(g[:, 768:1024])
        c = f * c + i * gg
        h = o * jnp.tanh(c)
    # dropout = identity at inference
    out_ref[...] = jnp.dot(h, wfc_ref[...], preferred_element_type=F32) + bfc_ref[...]


def lstm_forward(pooled_cat, p):
    # Time-major slab; each timestep padded to 16 rows so per-step slices are
    # tile-aligned (rows t*16 .. t*16+9 hold timestep t).
    x = pooled_cat.reshape(B, 3, HID).transpose(1, 0, 2)           # (3, 10, 768)
    x_tm = jnp.zeros((3, TPAD, HID), F32).at[:, :B, :].set(x).reshape(3 * TPAD, HID)
    wih_t = p['lstm_Wih'].T                                        # (768, 1024)
    whh_t = p['lstm_Whh'].T                                        # (256, 1024)
    bias = (p['lstm_bih'] + p['lstm_bhh']).reshape(1, 4 * LSTM_H)
    wfc_t = p['fc1_lstm_W'].T                                      # (256, 2)
    bfc = p['fc1_lstm_b'].reshape(1, 2)
    vmem = pl.BlockSpec(memory_space=pltpu.MemorySpace.VMEM)
    return pl.pallas_call(
        lstm_kernel,
        out_shape=jax.ShapeDtypeStruct((B, 2), F32),
        in_specs=[vmem] * 6,
        out_specs=vmem,
        compiler_params=pltpu.CompilerParams(vmem_limit_bytes=16 * 1024 * 1024),
    )(x_tm, wih_t, whh_t, bias, wfc_t, bfc)


# ------------------------------ CNN path kernel -----------------------------
# Layout: conv1 activations for all (output-row h, sample n, channel c) live in
# one (320, 769) tile with rows ordered r = h*80 + n*8 + c (W on lanes).
# Max-pool along W is a single 0/1-selection matmul with [even|odd] columns
# concatenated, followed by a lane-half max; pooling along H is a contiguous
# 80-row block max.  conv2 is a single batched (over samples) matmul with the
# (ci, kh, kw) taps folded into K=32 and the zero-pad column shift realized on
# values (no unaligned scratch stores).
def cnn_kernel(xr_ref, w1_ref, b1_ref, s1_ref, wbig_ref, b2_ref, s2_ref,
               wfc1_ref, bfc1_ref, wfc2_ref, bfc2_ref, out_ref, p2_ref):
    # ---- conv1 (1->8, k=2, pad=1) + ReLU, batched as one (320, 769) tile ----
    acc1 = jnp.broadcast_to(b1_ref[...], (320, 769))
    for kh in range(2):
        slab = xr_ref[kh]                                          # (320, 770)
        for kw in range(2):
            acc1 = acc1 + w1_ref[2 * kh + kw] * slab[:, kw:kw + 769]
    acc1 = jnp.maximum(acc1, 0.0)

    # ---- maxpool(2,2): W via one selection matmul + lane-half max; H via
    #      contiguous 80-row block max (rows are h-major). ----
    sel1 = jnp.dot(acc1.astype(BF16), s1_ref[...], preferred_element_type=F32)   # (320,768)
    wmax = jnp.maximum(sel1[:, :384], sel1[:, 384:])                             # (320,384)
    p0 = jnp.maximum(wmax[0:80], wmax[80:160]).reshape(B, 8, 384)                # pooled row 0
    p1 = jnp.maximum(wmax[160:240], wmax[240:320]).reshape(B, 8, 384)            # pooled row 1

    # ---- conv2 (8->16, k=2, pad=1) + ReLU as ONE batched matmul over samples ----
    z = jnp.zeros((B, 8, 1), F32)
    a_all = jnp.concatenate(
        [jnp.concatenate([z, p0], axis=2), jnp.concatenate([p0, z], axis=2),
         jnp.concatenate([z, p1], axis=2), jnp.concatenate([p1, z], axis=2)],
        axis=1)                                                                  # (10,32,385)
    wbig = jnp.broadcast_to(wbig_ref[...], (B, 32, 32))
    conv2 = lax.dot_general(wbig, a_all, (((2,), (1,)), ((0,), (0,))),
                            preferred_element_type=F32)                          # (10,32,385)
    conv2 = jnp.maximum(conv2 + b2_ref[...][None], 0.0)
    hmax = jnp.maximum(conv2[:, :16, :], conv2[:, 16:, :])                       # (10,16,385)

    # ---- maxpool(2,2) of conv2: W selection matmul (H window {0,1} already
    #      taken above; conv2 output row 2 is dropped by the floor pool) ----
    sel2 = jnp.dot(hmax.reshape(B * 16, 385).astype(BF16), s2_ref[...],
                   preferred_element_type=F32)                                   # (160,384)
    p2_ref[...] = jnp.maximum(sel2[:, :192], sel2[:, 192:]).reshape(B, 16, 192)

    # ---- fc1 (3072 -> 768) accumulated per conv2 channel, dropout = id, fc2 ----
    y1 = jnp.broadcast_to(bfc1_ref[...], (B, 768))
    for c in range(16):
        y1 = y1 + jnp.dot(p2_ref[:, c, :].astype(BF16), wfc1_ref[c],
                          preferred_element_type=F32)
    out_ref[...] = jnp.dot(y1, wfc2_ref[...], preferred_element_type=F32) + bfc2_ref[...]


def _sel_cat(in_w, half):
    # S[w, j] = 1 iff (j <  half and w == 2*j)            (even columns)
    #              or (j >= half and w == 2*(j-half) + 1)  (odd columns)
    w = jnp.arange(in_w)[:, None]
    j = jnp.arange(2 * half)[None, :]
    src = jnp.where(j < half, 2 * j, 2 * (j - half) + 1)
    return (w == src).astype(F32)


def cnn_forward(pooled_cat, p):
    # pooled_cat: (10, 2304) == NCHW (10, 1, 3, 768); the size-1 channel is squeezed.
    x = pooled_cat.reshape(B, 3, HID)
    x0p = jnp.pad(x, ((0, 0), (1, 1), (1, 1)))                     # (10, 5, 770)

    # conv1 operands, rows ordered r = h*80 + n*8 + c  (h: conv1 output row).
    slabs = []
    for kh in range(2):
        s = jnp.transpose(x0p[:, kh:kh + 4, :], (1, 0, 2))         # (4, 10, 770)
        s = jnp.broadcast_to(s[:, :, None, :], (4, B, 8, 770)).reshape(320, 770)
        slabs.append(s)
    xrows8 = jnp.stack(slabs, axis=0)                              # (2, 320, 770)

    W1, b1 = p['conv1_W'], p['conv1_b']                            # (8,1,2,2), (8,)
    w1r = jnp.transpose(W1[:, 0], (1, 2, 0)).reshape(4, 8)         # [kh*2+kw, c]
    w1rep = jnp.tile(w1r[:, None, :], (1, 40, 1)).reshape(4, 320, 1)
    b1rep = jnp.tile(b1[None, :], (40, 1)).reshape(320, 1)

    W2, b2 = p['conv2_W'], p['conv2_b']                            # (16,8,2,2), (16,)
    wk0 = jnp.transpose(W2[:, :, 0, :], (0, 2, 1)).reshape(16, 16)   # [co, kw*8+ci]
    wk1 = jnp.transpose(W2[:, :, 1, :], (0, 2, 1)).reshape(16, 16)
    zz = jnp.zeros((16, 16), F32)
    wbig = jnp.concatenate(
        [jnp.concatenate([wk1, zz], axis=1),       # conv2 output row 0 (top row is pad)
         jnp.concatenate([wk0, wk1], axis=1)],     # conv2 output row 1
        axis=0)                                                     # (32, 32)
    b2big = jnp.concatenate([b2, b2]).reshape(32, 1)

    s1 = _sel_cat(769, 384).astype(BF16)                            # (769, 768)
    s2 = _sel_cat(385, 192).astype(BF16)                            # (385, 384)

    wfc1r = jnp.transpose(p['fc1_W'].reshape(768, 16, 192), (1, 2, 0)).astype(BF16)
    bfc1 = p['fc1_b'].reshape(1, 768)
    wfc2t = p['fc2_W'].T                                            # (768, 2)
    bfc2 = p['fc2_b'].reshape(1, 2)

    vmem = pl.BlockSpec(memory_space=pltpu.MemorySpace.VMEM)
    return pl.pallas_call(
        cnn_kernel,
        out_shape=jax.ShapeDtypeStruct((B, 2), F32),
        in_specs=[vmem] * 11,
        out_specs=vmem,
        scratch_shapes=[pltpu.VMEM((B, 16, 192), F32)],             # pool2 output
        compiler_params=pltpu.CompilerParams(vmem_limit_bytes=32 * 1024 * 1024),
    )(xrows8, w1rep, b1rep, s1, wbig, b2big, s2, wfc1r, bfc1, wfc2t, bfc2)


# ------------------------------ plain-JAX references -------------------------
def lstm_ref(x_seq, p):
    Wih, Whh = p['lstm_Wih'], p['lstm_Whh']
    b = p['lstm_bih'] + p['lstm_bhh']
    h = jnp.zeros((B, LSTM_H), F32)
    c = jnp.zeros((B, LSTM_H), F32)
    for t in range(x_seq.shape[1]):
        g = x_seq[:, t, :] @ Wih.T + h @ Whh.T + b
        i = jax.nn.sigmoid(g[:, :256])
        f = jax.nn.sigmoid(g[:, 256:512])
        gg = jnp.tanh(g[:, 512:768])
        o = jax.nn.sigmoid(g[:, 768:])
        c = f * c + i * gg
        h = o * jnp.tanh(c)
    return h @ p['fc1_lstm_W'].T + p['fc1_lstm_b']


def cnn_ref(pooled_cat, p):
    x = pooled_cat.reshape(B, 1, 3, HID)

    def conv(x, W, b):
        y = jax.lax.conv_general_dilated(
            x, W, (1, 1), ((1, 1), (1, 1)),
            dimension_numbers=('NCHW', 'OIHW', 'NCHW'))
        return y + b[None, :, None, None]

    def pool(x):
        return jax.lax.reduce_window(x, -jnp.inf, jax.lax.max,
                                     (1, 1, 2, 2), (1, 1, 2, 2), 'VALID')

    x = pool(jax.nn.relu(conv(x, p['conv1_W'], p['conv1_b'])))
    x = pool(jax.nn.relu(conv(x, p['conv2_W'], p['conv2_b'])))
    x = x.reshape(B, 16 * 192)
    x = x @ p['fc1_W'].T + p['fc1_b']      # dropout = identity
    return x @ p['fc2_W'].T + p['fc2_b']


# ------------------------------ params / stub --------------------------------
def init_params(key):
    ks = jax.random.split(key, 14)

    def nrm(k, shape, scale):
        return scale * jax.random.normal(k, shape, F32)

    return {
        'lstm_Wih': nrm(ks[0], (4 * LSTM_H, HID), 0.03),
        'lstm_Whh': nrm(ks[1], (4 * LSTM_H, LSTM_H), 0.05),
        'lstm_bih': nrm(ks[2], (4 * LSTM_H,), 0.02),
        'lstm_bhh': nrm(ks[3], (4 * LSTM_H,), 0.02),
        'fc1_lstm_W': nrm(ks[4], (2, LSTM_H), 0.1),
        'fc1_lstm_b': nrm(ks[5], (2,), 0.1),
        'conv1_W': nrm(ks[6], (8, 1, 2, 2), 0.3),
        'conv1_b': nrm(ks[7], (8,), 0.1),
        'conv2_W': nrm(ks[8], (16, 8, 2, 2), 0.15),
        'conv2_b': nrm(ks[9], (16,), 0.1),
        'fc1_W': nrm(ks[10], (768, 16 * 192), 0.02),
        'fc1_b': nrm(ks[11], (768,), 0.05),
        'fc2_W': nrm(ks[12], (2, 768), 0.05),
        'fc2_b': nrm(ks[13], (2,), 0.05),
    }


def bert_pool_stub(input_ids, mask, emb_table):
    # TODO(synk): stand-in for BertModel's pooled output (masked-mean embedding + tanh).
    e = emb_table[input_ids]                        # (B, S, 768)
    m = mask.astype(F32)[..., None]
    pooled = (e * m).sum(axis=1) / jnp.maximum(m.sum(axis=1), 1.0)
    return jnp.tanh(pooled)


if __name__ == "__main__":
    key = jax.random.PRNGKey(0)
    kp, kemb, k0, k1, k2 = jax.random.split(key, 5)
    params = init_params(kp)
    emb_table = 0.5 * jax.random.normal(kemb, (VOCAB, HID), F32)

    input_id_0 = jax.random.randint(k0, (B, SEQ), 0, VOCAB)
    input_id_1 = jax.random.randint(k1, (B, SEQ), 0, VOCAB)
    input_id_2 = jax.random.randint(k2, (B, SEQ), 0, VOCAB)
    mask = jnp.ones((B, SEQ), jnp.int32)

    p0 = bert_pool_stub(input_id_0, mask, emb_table)
    p1 = bert_pool_stub(input_id_1, mask, emb_table)
    p2 = bert_pool_stub(input_id_2, mask, emb_table)
    pooled_cat = jnp.concatenate([p0, p1, p2], axis=1)     # (10, 2304)

    # model_type='lstm' (module default)
    y_lstm = jax.block_until_ready(lstm_forward(pooled_cat, params))
    # model_type='cnn'
    y_cnn = jax.block_until_ready(cnn_forward(pooled_cat, params))

    with jax.default_matmul_precision("float32"):
        y_lstm_ref = lstm_ref(pooled_cat.reshape(B, 3, HID), params)
        y_cnn_ref = cnn_ref(pooled_cat, params)

    assert y_lstm.shape == (10, 2) and y_cnn.shape == (10, 2)
    assert jnp.allclose(y_lstm, y_lstm_ref, rtol=2e-2, atol=2e-2), "lstm head mismatch"
    assert jnp.allclose(y_cnn, y_cnn_ref, rtol=2e-2, atol=2e-2), "cnn head mismatch"

    print("KERNEL_OK")
</pallas_src>

<mosaic_0001>
module attributes {stable_mosaic.version = 11 : i64} {
  func.func @lstm_kernel(%arg0: memref<48x768xf32, #tpu.memory_space<vmem>>, %arg1: memref<768x1024xf32, #tpu.memory_space<vmem>>, %arg2: memref<256x1024xf32, #tpu.memory_space<vmem>>, %arg3: memref<1x1024xf32, #tpu.memory_space<vmem>>, %arg4: memref<256x2xf32, #tpu.memory_space<vmem>>, %arg5: memref<1x2xf32, #tpu.memory_space<vmem>>, %arg6: memref<10x2xf32, #tpu.memory_space<vmem>>) attributes {dimension_semantics = [], scalar_prefetch = 0 : i64, scratch_operands = 0 : i64, tpu.core_type = #tpu.core_type<tc>} {
    %c0 = arith.constant 0 : index
    %c0_0 = arith.constant 0 : index
    %0 = vector.load %arg0[%c0, %c0_0] : memref<48x768xf32, #tpu.memory_space<vmem>>, vector<48x768xf32>
    %c0_1 = arith.constant 0 : index
    %c0_2 = arith.constant 0 : index
    %1 = vector.load %arg1[%c0_1, %c0_2] : memref<768x1024xf32, #tpu.memory_space<vmem>>, vector<768x1024xf32>
    %cst = arith.constant dense<0.000000e+00> : vector<48x1024xf32>
    %2 = tpu.matmul %0, %1, %cst {dimension_numbers = #tpu.dot_dimension_numbers<[1], [0], [0], [1], [0, 0, 1, 1], [], []>} : vector<48x768xf32>, vector<768x1024xf32>, vector<48x1024xf32> -> vector<48x1024xf32>
    %c0_3 = arith.constant 0 : index
    %c0_4 = arith.constant 0 : index
    %3 = vector.load %arg3[%c0_3, %c0_4] : memref<1x1024xf32, #tpu.memory_space<vmem>>, vector<1x1024xf32>
    %4 = vector.broadcast %3 : vector<1x1024xf32> to vector<48x1024xf32>
    %5 = arith.addf %2, %4 : vector<48x1024xf32>
    %cst_5 = arith.constant 0.000000e+00 : f32
    %6 = vector.broadcast %cst_5 : f32 to vector<10x256xf32>
    %cst_6 = arith.constant 0.000000e+00 : f32
    %7 = vector.broadcast %cst_6 : f32 to vector<10x256xf32>
    %8 = vector.extract_strided_slice %5 {offsets = [0, 0], sizes = [10, 1024], strides = [1, 1]} : vector<48x1024xf32> to vector<10x1024xf32>
    %c0_7 = arith.constant 0 : index
    %c0_8 = arith.constant 0 : index
    %9 = vector.load %arg2[%c0_7, %c0_8] : memref<256x1024xf32, #tpu.memory_space<vmem>>, vector<256x1024xf32>
    %cst_9 = arith.constant dense<0.000000e+00> : vector<10x1024xf32>
    %10 = tpu.matmul %6, %9, %cst_9 {dimension_numbers = #tpu.dot_dimension_numbers<[1], [0], [0], [1], [0, 0, 1, 1], [], []>} : vector<10x256xf32>, vector<256x1024xf32>, vector<10x1024xf32> -> vector<10x1024xf32>
    %11 = arith.addf %8, %10 : vector<10x1024xf32>
    %12 = vector.extract_strided_slice %11 {offsets = [0, 0], sizes = [10, 256], strides = [1, 1]} : vector<10x1024xf32> to vector<10x256xf32>
    %13 = arith.negf %12 : vector<10x256xf32>
    %14 = math.exp %13 : vector<10x256xf32>
    %cst_10 = arith.constant 1.000000e+00 : f32
    %15 = vector.broadcast %cst_10 : f32 to vector<10x256xf32>
    %16 = arith.addf %15, %14 : vector<10x256xf32>
    %17 = arith.divf %15, %16 : vector<10x256xf32>
    %18 = vector.extract_strided_slice %11 {offsets = [0, 256], sizes = [10, 256], strides = [1, 1]} : vector<10x1024xf32> to vector<10x256xf32>
    %19 = arith.negf %18 : vector<10x256xf32>
    %20 = math.exp %19 : vector<10x256xf32>
    %cst_11 = arith.constant 1.000000e+00 : f32
    %21 = vector.broadcast %cst_11 : f32 to vector<10x256xf32>
    %22 = arith.addf %21, %20 : vector<10x256xf32>
    %23 = arith.divf %21, %22 : vector<10x256xf32>
    %24 = vector.extract_strided_slice %11 {offsets = [0, 512], sizes = [10, 256], strides = [1, 1]} : vector<10x1024xf32> to vector<10x256xf32>
    %25 = math.tanh %24 : vector<10x256xf32>
    %26 = vector.extract_strided_slice %11 {offsets = [0, 768], sizes = [10, 256], strides = [1, 1]} : vector<10x1024xf32> to vector<10x256xf32>
    %27 = arith.negf %26 : vector<10x256xf32>
    %28 = math.exp %27 : vector<10x256xf32>
    %cst_12 = arith.constant 1.000000e+00 : f32
    %29 = vector.broadcast %cst_12 : f32 to vector<10x256xf32>
    %30 = arith.addf %29, %28 : vector<10x256xf32>
    %31 = arith.divf %29, %30 : vector<10x256xf32>
    %32 = arith.mulf %23, %7 : vector<10x256xf32>
    %33 = arith.mulf %17, %25 : vector<10x256xf32>
    %34 = arith.addf %32, %33 : vector<10x256xf32>
    %35 = math.tanh %34 : vector<10x256xf32>
    %36 = arith.mulf %31, %35 : vector<10x256xf32>
    %37 = vector.extract_strided_slice %5 {offsets = [16, 0], sizes = [10, 1024], strides = [1, 1]} : vector<48x1024xf32> to vector<10x1024xf32>
    %c0_13 = arith.constant 0 : index
    %c0_14 = arith.constant 0 : index
    %38 = vector.load %arg2[%c0_13, %c0_14] : memref<256x1024xf32, #tpu.memory_space<vmem>>, vector<256x1024xf32>
    %cst_15 = arith.constant dense<0.000000e+00> : vector<10x1024xf32>
    %39 = tpu.matmul %36, %38, %cst_15 {dimension_numbers = #tpu.dot_dimension_numbers<[1], [0], [0], [1], [0, 0, 1, 1], [], []>} : vector<10x256xf32>, vector<256x1024xf32>, vector<10x1024xf32> -> vector<10x1024xf32>
    %40 = arith.addf %37, %39 : vector<10x1024xf32>
    %41 = vector.extract_strided_slice %40 {offsets = [0, 0], sizes = [10, 256], strides = [1, 1]} : vector<10x1024xf32> to vector<10x256xf32>
    %42 = arith.negf %41 : vector<10x256xf32>
    %43 = math.exp %42 : vector<10x256xf32>
    %cst_16 = arith.constant 1.000000e+00 : f32
    %44 = vector.broadcast %cst_16 : f32 to vector<10x256xf32>
    %45 = arith.addf %44, %43 : vector<10x256xf32>
    %46 = arith.divf %44, %45 : vector<10x256xf32>
    %47 = vector.extract_strided_slice %40 {offsets = [0, 256], sizes = [10, 256], strides = [1, 1]} : vector<10x1024xf32> to vector<10x256xf32>
    %48 = arith.negf %47 : vector<10x256xf32>
    %49 = math.exp %48 : vector<10x256xf32>
    %cst_17 = arith.constant 1.000000e+00 : f32
    %50 = vector.broadcast %cst_17 : f32 to vector<10x256xf32>
    %51 = arith.addf %50, %49 : vector<10x256xf32>
    %52 = arith.divf %50, %51 : vector<10x256xf32>
    %53 = vector.extract_strided_slice %40 {offsets = [0, 512], sizes = [10, 256], strides = [1, 1]} : vector<10x1024xf32> to vector<10x256xf32>
    %54 = math.tanh %53 : vector<10x256xf32>
    %55 = vector.extract_strided_slice %40 {offsets = [0, 768], sizes = [10, 256], strides = [1, 1]} : vector<10x1024xf32> to vector<10x256xf32>
    %56 = arith.negf %55 : vector<10x256xf32>
    %57 = math.exp %56 : vector<10x256xf32>
    %cst_18 = arith.constant 1.000000e+00 : f32
    %58 = vector.broadcast %cst_18 : f32 to vector<10x256xf32>
    %59 = arith.addf %58, %57 : vector<10x256xf32>
    %60 = arith.divf %58, %59 : vector<10x256xf32>
    %61 = arith.mulf %52, %34 : vector<10x256xf32>
    %62 = arith.mulf %46, %54 : vector<10x256xf32>
    %63 = arith.addf %61, %62 : vector<10x256xf32>
    %64 = math.tanh %63 : vector<10x256xf32>
    %65 = arith.mulf %60, %64 : vector<10x256xf32>
    %66 = vector.extract_strided_slice %5 {offsets = [32, 0], sizes = [10, 1024], strides = [1, 1]} : vector<48x1024xf32> to vector<10x1024xf32>
    %c0_19 = arith.constant 0 : index
    %c0_20 = arith.constant 0 : index
    %67 = vector.load %arg2[%c0_19, %c0_20] : memref<256x1024xf32, #tpu.memory_space<vmem>>, vector<256x1024xf32>
    %cst_21 = arith.constant dense<0.000000e+00> : vector<10x1024xf32>
    %68 = tpu.matmul %65, %67, %cst_21 {dimension_numbers = #tpu.dot_dimension_numbers<[1], [0], [0], [1], [0, 0, 1, 1], [], []>} : vector<10x256xf32>, vector<256x1024xf32>, vector<10x1024xf32> -> vector<10x1024xf32>
    %69 = arith.addf %66, %68 : vector<10x1024xf32>
    %70 = vector.extract_strided_slice %69 {offsets = [0, 0], sizes = [10, 256], strides = [1, 1]} : vector<10x1024xf32> to vector<10x256xf32>
    %71 = arith.negf %70 : vector<10x256xf32>
    %72 = math.exp %71 : vector<10x256xf32>
    %cst_22 = arith.constant 1.000000e+00 : f32
    %73 = vector.broadcast %cst_22 : f32 to vector<10x256xf32>
    %74 = arith.addf %73, %72 : vector<10x256xf32>
    %75 = arith.divf %73, %74 : vector<10x256xf32>
    %76 = vector.extract_strided_slice %69 {offsets = [0, 256], sizes = [10, 256], strides = [1, 1]} : vector<10x1024xf32> to vector<10x256xf32>
    %77 = arith.negf %76 : vector<10x256xf32>
    %78 = math.exp %77 : vector<10x256xf32>
    %cst_23 = arith.constant 1.000000e+00 : f32
    %79 = vector.broadcast %cst_23 : f32 to vector<10x256xf32>
    %80 = arith.addf %79, %78 : vector<10x256xf32>
    %81 = arith.divf %79, %80 : vector<10x256xf32>
    %82 = vector.extract_strided_slice %69 {offsets = [0, 512], sizes = [10, 256], strides = [1, 1]} : vector<10x1024xf32> to vector<10x256xf32>
    %83 = math.tanh %82 : vector<10x256xf32>
    %84 = vector.extract_strided_slice %69 {offsets = [0, 768], sizes = [10, 256], strides = [1, 1]} : vector<10x1024xf32> to vector<10x256xf32>
    %85 = arith.negf %84 : vector<10x256xf32>
    %86 = math.exp %85 : vector<10x256xf32>
    %cst_24 = arith.constant 1.000000e+00 : f32
    %87 = vector.broadcast %cst_24 : f32 to vector<10x256xf32>
    %88 = arith.addf %87, %86 : vector<10x256xf32>
    %89 = arith.divf %87, %88 : vector<10x256xf32>
    %90 = arith.mulf %81, %63 : vector<10x256xf32>
    %91 = arith.mulf %75, %83 : vector<10x256xf32>
    %92 = arith.addf %90, %91 : vector<10x256xf32>
    %93 = math.tanh %92 : vector<10x256xf32>
    %94 = arith.mulf %89, %93 : vector<10x256xf32>
    %c0_25 = arith.constant 0 : index
    %c0_26 = arith.constant 0 : index
    %95 = vector.load %arg4[%c0_25, %c0_26] : memref<256x2xf32, #tpu.memory_space<vmem>>, vector<256x2xf32>
    %cst_27 = arith.constant dense<0.000000e+00> : vector<10x2xf32>
    %96 = tpu.matmul %94, %95, %cst_27 {dimension_numbers = #tpu.dot_dimension_numbers<[1], [0], [0], [1], [0, 0, 1, 1], [], []>} : vector<10x256xf32>, vector<256x2xf32>, vector<10x2xf32> -> vector<10x2xf32>
    %c0_28 = arith.constant 0 : index
    %c0_29 = arith.constant 0 : index
    %97 = vector.load %arg5[%c0_28, %c0_29] : memref<1x2xf32, #tpu.memory_space<vmem>>, vector<1x2xf32>
    %98 = vector.broadcast %97 : vector<1x2xf32> to vector<10x2xf32>
    %99 = arith.addf %96, %98 : vector<10x2xf32>
    %c0_30 = arith.constant 0 : index
    %c0_31 = arith.constant 0 : index
    %100 = vector.load %arg6[%c0_30, %c0_31] : memref<10x2xf32, #tpu.memory_space<vmem>>, vector<10x2xf32>
    tpu.vector_store %arg6[%c0_30, %c0_31], %99 {strides = array<i32>} : memref<10x2xf32, #tpu.memory_space<vmem>>, vector<10x2xf32>,
    return
  }
}

</mosaic_0001>

<bundles_post_ra>
// kernel: tpu_custom_call.1
= control target key start
LH: loop header
LB: loop body
LE: loop exit
PB: predicated region body
PF: predicated region fallthrough
CT: control target
= control target key end

     0   :  { %11 = vsyncpa [#allocation3], 0  ;;  %s6992_s0 = inlined_call_operand.hbm [shape: f32[48,768], index: 0, kind: input, shape index: {}]   ;;  %s6993_s1 = inlined_call_operand.hbm [shape: f32[768,1024], index: 1, kind: input, shape index: {}]   ;;  %s6994_s2 = inlined_call_operand.hbm [shape: f32[256,1024], index: 2, kind: input, shape index: {}]   ;;  %s6995_s3 = inlined_call_operand.hbm [shape: f32[1,1024], index: 3, kind: input, shape index: {}]   ;;  %s6996_s4 = inlined_call_operand.vmem [shape: f32[256,2], index: 4, kind: input, shape index: {}]   ;;  %s6997_s5 = inlined_call_operand.hbm [shape: f32[1,2], index: 5, kind: input, shape index: {}]   ;;  %s6998_s6 = inlined_call_operand.vmem [shape: f32[10,2], index: 6, kind: output, shape index: {}]  }
   0x1   :  { %12 = vsyncpa [#allocation5], 0 }
   0x2   :  { %13 = vsyncpa [#allocation8], 0  ;;  %s5991_s21 = smov [#allocation4]   ;;  %s5875_s25 = scalar_lea.hbm %s6993_s1, 98304 }
   0x3   :  { %s31_s22 = sshll.u32 %s5991_s21, 4  ;;  %p5876_p0 = scmp.ne.s32.totalorder %s6993_s1, %s5875_s25  ;;  %s32_s22 = int_to_ptr.vmem [resolvable:$true] %s31_s22 }
   0x4   :  { %p5879_p1 = scmp.lt.u32.totalorder %s5875_s25, %s6993_s1 }
   0x6   :  { %p5881_p2 = pnand %p5879_p1, %p5876_p0 }
   0x8   :  { %5884 = shalt.err (!%p5881_p2)
}
   0x9   :  { %s5885_s30 = scalar_lea.vmem %s32_s22, 98304  ;;  %p5890_p4 = scmp.lt.s32.totalorder %s32_s22, %s32_s22 }
   0xa   :  { %p5886_p3 = scmp.ne.s32.totalorder %s32_s22, %s5885_s30  ;;  %p5891_p5 = scmp.lt.s32.totalorder %s5885_s30, %s5885_s30 }
   0xc   :  { %p5892_p6 = por %p5891_p5, %p5890_p4 }
   0xe   :  { %p5893_p7 = pnand %p5892_p6, %p5886_p3 }
  0x10   :  { %5896 = shalt.err (!%p5893_p7)
}
  0x11   :  { %s5992_s7 = smov 1024   ;;  %s5993_s8 = smov 64  }
  0x12   :  { %37 = dma.hbm_to_vmem [thread:$0]  %s6993_s1, 98304, %s32_s22, [#allocation5], %s5992_s7, %s5992_s7, %s5993_s8  }
  0x13   :  { %s5994_s11 = smov [#allocation7]   ;;  %s5995_s13 = smov [#allocation2]  }
  0x14   :  { %s56_s12 = sshll.u32 %s5994_s11, 4  ;;  %s19_s14 = sshll.u32 %s5995_s13, 4  ;;  %s57_s12 = int_to_ptr.vmem [resolvable:$true] %s56_s12  ;;  %s20_s14 = int_to_ptr.vmem [resolvable:$true] %s19_s14 }
  0x15   :  { %s5897_s17 = scalar_lea.hbm %s6995_s3, 128 }
  0x16   :  { %p5898_p8 = scmp.ne.s32.totalorder %s6995_s3, %s5897_s17  ;;  %p5901_p9 = scmp.lt.u32.totalorder %s5897_s17, %s6995_s3 }
  0x18   :  { %p5903_p10 = pnand %p5901_p9, %p5898_p8 }
  0x1a   :  { %5906 = shalt.err (!%p5903_p10)
}
  0x1b   :  { %s5907_s1 = scalar_lea.vmem %s57_s12, 128  ;;  %p5912_p12 = scmp.lt.s32.totalorder %s57_s12, %s57_s12 }
  0x1c   :  { %p5908_p11 = scmp.ne.s32.totalorder %s57_s12, %s5907_s1  ;;  %p5913_p13 = scmp.lt.s32.totalorder %s5907_s1, %s5907_s1 }
  0x1e   :  { %p5914_p0 = por %p5913_p13, %p5912_p12 }
  0x20   :  { %p5915_p1 = pnand %p5914_p0, %p5908_p11 }
  0x22   :  { %5918 = shalt.err (!%p5915_p1)
}
  0x23   :  { %59 = dma.hbm_to_vmem [thread:$0]  %s6995_s3, 128, %s57_s12, [#allocation8]  }
  0x24   :  { %s5919_s26 = scalar_lea.hbm %s6992_s0, 4608 }
  0x25   :  { %p5920_p2 = scmp.ne.s32.totalorder %s6992_s0, %s5919_s26  ;;  %p5923_p3 = scmp.lt.u32.totalorder %s5919_s26, %s6992_s0 }
  0x27   :  { %p5925_p4 = pnand %p5923_p3, %p5920_p2 }
  0x29   :  { %5928 = shalt.err (!%p5925_p4)
}
  0x2a   :  { %s5929_s9 = scalar_lea.vmem %s20_s14, 4608  ;;  %p5934_p6 = scmp.lt.s32.totalorder %s20_s14, %s20_s14 }
  0x2b   :  { %p5930_p5 = scmp.ne.s32.totalorder %s20_s14, %s5929_s9  ;;  %p5935_p7 = scmp.lt.s32.totalorder %s5929_s9, %s5929_s9 }
  0x2d   :  { %p5936_p8 = por %p5935_p7, %p5934_p6 }
  0x2f   :  { %p5937_p9 = pnand %p5936_p8, %p5930_p5 }
  0x31   :  { %5940 = shalt.err (!%p5937_p9)
}
  0x32   :  { %s5996_s3 = smov 768   ;;  %s5997_s10 = smov 48  }
  0x33   :  { %25 = dma.hbm_to_vmem [thread:$0]  %s6992_s0, 4608, %s20_s14, [#allocation3], %s5996_s3, %s5996_s3, %s5997_s10  }
  0x34   :  { %s5998_s13 = smov [#allocation6]   ;;  %s5999_s16 = smov [#allocation9]  }
  0x35   :  { %s43_s15 = sshll.u32 %s5998_s13, 4  ;;  %s68_s17 = sshll.u32 %s5999_s16, 4  ;;  %s44_s15 = int_to_ptr.vmem [resolvable:$true] %s43_s15  ;;  %s69_s17 = int_to_ptr.vmem [resolvable:$true] %s68_s17 }
  0x36   :  { %s5941_s20 = scalar_lea.hbm %s6994_s2, 32768 }
  0x37   :  { %p5942_p10 = scmp.ne.s32.totalorder %s6994_s2, %s5941_s20  ;;  %p5945_p11 = scmp.lt.u32.totalorder %s5941_s20, %s6994_s2 }
  0x39   :  { %p5947_p12 = pnand %p5945_p11, %p5942_p10 }
  0x3b   :  { %5950 = shalt.err (!%p5947_p12)
}
  0x3c   :  { %s5951_s0 = scalar_lea.vmem %s44_s15, 32768  ;;  %p5956_p0 = scmp.lt.s32.totalorder %s44_s15, %s44_s15 }
  0x3d   :  { %p5952_p13 = scmp.ne.s32.totalorder %s44_s15, %s5951_s0  ;;  %p5957_p1 = scmp.lt.s32.totalorder %s5951_s0, %s5951_s0 }
  0x3f   :  { %p5958_p2 = por %p5957_p1, %p5956_p0 }
  0x41   :  { %p5959_p3 = pnand %p5958_p2, %p5952_p13 }
  0x43   :  { %5962 = shalt.err (!%p5959_p3)
}
  0x44   :  { %49 = dma.hbm_to_vmem [thread:$0]  %s6994_s2, 32768, %s44_s15, [#allocation5], %s5992_s7, %s5992_s7, %s5993_s8  }
  0x45   :  { %s5963_s27 = scalar_lea.hbm %s6997_s5, 16 }
  0x46   :  { %p5964_p4 = scmp.ne.s32.totalorder %s6997_s5, %s5963_s27  ;;  %p5967_p5 = scmp.lt.u32.totalorder %s5963_s27, %s6997_s5 }
  0x48   :  { %p5969_p6 = pnand %p5967_p5, %p5964_p4 }
  0x4a   :  { %5972 = shalt.err (!%p5969_p6)
}
  0x4b   :  { %s5973_s3 = scalar_lea.vmem %s69_s17, 16  ;;  %s5977_s10 = scalar_lea.vmem %s69_s17, 32 }
  0x4c   :  { %p5974_p7 = scmp.ne.s32.totalorder %s69_s17, %s5973_s3  ;;  %p5978_p8 = scmp.lt.s32.totalorder %s69_s17, %s69_s17 }
  0x4d   :  { %p5979_p9 = scmp.lt.s32.totalorder %s5977_s10, %s5973_s3 }
  0x4f   :  { %p5980_p10 = por %p5979_p9, %p5978_p8 }
  0x51   :  { %p5981_p11 = pnand %p5980_p10, %p5974_p7 }
  0x53   :  { %5984 = shalt.err (!%p5981_p11)
}
  0x54   :  { %71 = dma.hbm_to_vmem [thread:$0]  %s6997_s5, 16, %s69_s17, [#allocation8]  }
  0x55   :  { %5985 = dma.done.wait [#allocation3], 4608  }
  0x56   :  { %5986 = vsyncadd [#allocation3], 4294962688 }
  0x57   :  { %5987 = dma.done.wait [#allocation5], 131072  }
  0x58   :  { %5988 = vsyncadd [#allocation5], 4294836224 }
  0x59   :  { %5989 = dma.done.wait [#allocation8], 144  }
  0x5a   :  { %5990 = vsyncadd [#allocation8], 4294967152  ;;  %v124_v0 = vld [vmem:[#allocation4 + $0x8] sm:$0xff]  ;;  %v126_v2 = vld [vmem:[#allocation4 + $0x18] sm:$0xff]  ;;  %vm3775_vm0 = vcmask 15360   ;;  %vm3777_vm1 = vcmask 9216  }
  0x5b   :  { %v132_v1 = vld [vmem:[#allocation4 + $0x48] sm:$0xff]  ;;  %v134_v4 = vld [vmem:[#allocation4 + $0x58] sm:$0xff]  ;;  %v123_v5 = vld [vmem:[#allocation4] sm:$0xff] }
  0x5c   :  { %v3861_v3 = vpack.c.bf16 %v132_v1, %v124_v0  ;;  %v131_v6 = vld [vmem:[#allocation4 + $0x40] sm:$0xff]  ;;  %v4053_v7 = vpack.c.bf16 %v134_v4, %v126_v2  ;;  %v125_v9 = vld [vmem:[#allocation4 + $0x10] sm:$0xff]  ;;  %v140_v11 = vld [vmem:[#allocation4 + $0x88] sm:$0xff] }
  0x5d   :  { %v3863_v8 = vpack.c.bf16 %v131_v6, %v123_v5  ;;  %v133_v10 = vld [vmem:[#allocation4 + $0x50] sm:$0xff]  ;;  %v148_v13 = vld [vmem:[#allocation4 + $0xc8] sm:$0xff]  ;;  %v142_v14 = vld [vmem:[#allocation4 + $0x98] sm:$0xff] }
  0x5e   :  { %3862 = vmatprep.subr.bf16.mxu0 %v3861_v3  ;;  %v4055_v12 = vpack.c.bf16 %v133_v10, %v125_v9  ;;  %v150_v15 = vld [vmem:[#allocation4 + $0xd8] sm:$0xff]  ;;  %4054 = vmatprep.subr.bf16.mxu1 %v4053_v7  ;;  %v3865_v16 = vpack.c.bf16 %v148_v13, %v140_v11  ;;  %v139_v18 = vld [vmem:[#allocation4 + $0x80] sm:$0xff]  ;;  %v141_v20 = vld [vmem:[#allocation4 + $0x90] sm:$0xff] }
  0x5f   :  { %3864 = vmatpush1.bf16.msra.mxu0 %v3863_v8  ;;  %v4057_v17 = vpack.c.bf16 %v150_v15, %v142_v14  ;;  %v147_v19 = vld [vmem:[#allocation4 + $0xc0] sm:$0xff]  ;;  %v149_v22 = vld [vmem:[#allocation4 + $0xd0] sm:$0xff]  ;;  %v156_v23 = vld [vmem:[#allocation4 + $0x108] sm:$0xff] }
  0x60   :  { %4056 = vmatpush1.bf16.msra.mxu1 %v4055_v12  ;;  %v3867_v21 = vpack.c.bf16 %v147_v19, %v139_v18  ;;  %v164_v24 = vld [vmem:[#allocation4 + $0x148] sm:$0xff]  ;;  %3866 = vmatprep.subr.bf16.mxu0 %v3865_v16  ;;  %v4059_v25 = vpack.c.bf16 %v149_v22, %v141_v20  ;;  %v158_v27 = vld [vmem:[#allocation4 + $0x118] sm:$0xff]  ;;  %v155_v29 = vld [vmem:[#allocation4 + $0x100] sm:$0xff] }
  0x61   :  { %4058 = vmatprep.subr.bf16.mxu1 %v4057_v17  ;;  %v3869_v26 = vpack.c.bf16 %v164_v24, %v156_v23  ;;  %v166_v28 = vld [vmem:[#allocation4 + $0x158] sm:$0xff]  ;;  %v163_v31 = vld [vmem:[#allocation4 + $0x140] sm:$0xff]  ;;  %v157_v32 = vld [vmem:[#allocation4 + $0x110] sm:$0xff] }
  0x62   :  { %v4061_v30 = vpack.c.bf16 %v166_v28, %v158_v27  ;;  %v165_v33 = vld [vmem:[#allocation4 + $0x150] sm:$0xff]  ;;  %v3871_v34 = vpack.c.bf16 %v163_v31, %v155_v29  ;;  %v172_v35 = vld [vmem:[#allocation4 + $0x188] sm:$0xff]  ;;  %v174_v37 = vld [vmem:[#allocation4 + $0x198] sm:$0xff] }
  0x63   :  { %3868 = vmatpush1.bf16.msra.mxu0 %v3867_v21  ;;  %v180_v36 = vld [vmem:[#allocation4 + $0x1c8] sm:$0xff]  ;;  %v4063_v38 = vpack.c.bf16 %v165_v33, %v157_v32  ;;  %v182_v40 = vld [vmem:[#allocation4 + $0x1d8] sm:$0xff]  ;;  %v171_v41 = vld [vmem:[#allocation4 + $0x180] sm:$0xff] }
  0x64   :  { %4060 = vmatpush1.bf16.msra.mxu1 %v4059_v25  ;;  %3870 = vmatprep.subr.bf16.mxu0 %v3869_v26  ;;  %v3873_v39 = vpack.c.bf16 %v180_v36, %v172_v35  ;;  %v179_v42 = vld [vmem:[#allocation4 + $0x1c0] sm:$0xff]  ;;  %v4065_v43 = vpack.c.bf16 %v182_v40, %v174_v37  ;;  %v173_v44 = vld [vmem:[#allocation4 + $0x190] sm:$0xff]  ;;  %v188_v46 = vld [vmem:[#allocation4 + $0x208] sm:$0xff] }
  0x65   :  { %4062 = vmatprep.subr.bf16.mxu1 %v4061_v30  ;;  %v181_v45 = vld [vmem:[#allocation4 + $0x1d0] sm:$0xff]  ;;  %v196_v47 = vld [vmem:[#allocation4 + $0x248] sm:$0xff]  ;;  %v190_v48 = vld [vmem:[#allocation4 + $0x218] sm:$0xff]  ;;  %v3875_v50 = vpack.c.bf16 %v179_v42, %v171_v41 }
  0x66   :  { %v198_v49 = vld [vmem:[#allocation4 + $0x258] sm:$0xff]  ;;  %v4067_v51 = vpack.c.bf16 %v181_v45, %v173_v44  ;;  %v3877_v52 = vpack.c.bf16 %v196_v47, %v188_v46  ;;  %v187_v53 = vld [vmem:[#allocation4 + $0x200] sm:$0xff]  ;;  %v189_v55 = vld [vmem:[#allocation4 + $0x210] sm:$0xff] }
  0x67   :  { %3872 = vmatpush1.bf16.msra.mxu0 %v3871_v34  ;;  %v195_v54 = vld [vmem:[#allocation4 + $0x240] sm:$0xff]  ;;  %v4069_v56 = vpack.c.bf16 %v198_v49, %v190_v48  ;;  %v197_v57 = vld [vmem:[#allocation4 + $0x250] sm:$0xff]  ;;  %v204_v58 = vld [vmem:[#allocation4 + $0x288] sm:$0xff] }
  0x68   :  { %4064 = vmatpush1.bf16.msra.mxu1 %v4063_v38  ;;  %3874 = vmatprep.subr.bf16.mxu0 %v3873_v39  ;;  %v212_v59 = vld [vmem:[#allocation4 + $0x2c8] sm:$0xff]  ;;  %v206_v60 = vld [vmem:[#allocation4 + $0x298] sm:$0xff]  ;;  %v3879_v62 = vpack.c.bf16 %v195_v54, %v187_v53  ;;  %v4071_v63 = vpack.c.bf16 %v197_v57, %v189_v55  ;;  %v203_v1 = vld [vmem:[#allocation4 + $0x280] sm:$0xff] }
  0x69   :  { %4066 = vmatprep.subr.bf16.mxu1 %v4065_v43  ;;  %v214_v61 = vld [vmem:[#allocation4 + $0x2d8] sm:$0xff]  ;;  %v3881_v0 = vpack.c.bf16 %v212_v59, %v204_v58  ;;  %v211_v2 = vld [vmem:[#allocation4 + $0x2c0] sm:$0xff]  ;;  %v205_v3 = vld [vmem:[#allocation4 + $0x290] sm:$0xff] }
  0x6a   :  { %v4073_v4 = vpack.c.bf16 %v214_v61, %v206_v60  ;;  %v213_v5 = vld [vmem:[#allocation4 + $0x2d0] sm:$0xff]  ;;  %v220_v6 = vld [vmem:[#allocation4 + $0x308] sm:$0xff]  ;;  %v222_v8 = vld [vmem:[#allocation4 + $0x318] sm:$0xff]  ;;  %v3883_v10 = vpack.c.bf16 %v211_v2, %v203_v1 }
  0x6b   :  { %3876 = vmatpush1.bf16.msra.mxu0 %v3875_v50  ;;  %v228_v7 = vld [vmem:[#allocation4 + $0x348] sm:$0xff]  ;;  %v230_v9 = vld [vmem:[#allocation4 + $0x358] sm:$0xff]  ;;  %v4075_v11 = vpack.c.bf16 %v213_v5, %v205_v3  ;;  %v219_v13 = vld [vmem:[#allocation4 + $0x300] sm:$0xff] }
  0x6c   :  { %4068 = vmatpush1.bf16.msra.mxu1 %v4067_v51  ;;  %3878 = vmatprep.subr.bf16.mxu0 %v3877_v52  ;;  %v3885_v12 = vpack.c.bf16 %v228_v7, %v220_v6  ;;  %v227_v14 = vld [vmem:[#allocation4 + $0x340] sm:$0xff]  ;;  %v221_v15 = vld [vmem:[#allocation4 + $0x310] sm:$0xff]  ;;  %v4077_v16 = vpack.c.bf16 %v230_v9, %v222_v8  ;;  %v236_v18 = vld [vmem:[#allocation4 + $0x388] sm:$0xff] }
  0x6d   :  { %4070 = vmatprep.subr.bf16.mxu1 %v4069_v56  ;;  %v229_v17 = vld [vmem:[#allocation4 + $0x350] sm:$0xff]  ;;  %v244_v19 = vld [vmem:[#allocation4 + $0x3c8] sm:$0xff]  ;;  %v238_v20 = vld [vmem:[#allocation4 + $0x398] sm:$0xff]  ;;  %v3887_v22 = vpack.c.bf16 %v227_v14, %v219_v13 }
  0x6e   :  { %v246_v21 = vld [vmem:[#allocation4 + $0x3d8] sm:$0xff]  ;;  %v4079_v23 = vpack.c.bf16 %v229_v17, %v221_v15  ;;  %v3889_v24 = vpack.c.bf16 %v244_v19, %v236_v18  ;;  %v235_v25 = vld [vmem:[#allocation4 + $0x380] sm:$0xff]  ;;  %v237_v27 = vld [vmem:[#allocation4 + $0x390] sm:$0xff] }
  0x6f   :  { %3880 = vmatpush1.bf16.msra.mxu0 %v3879_v62  ;;  %v243_v26 = vld [vmem:[#allocation4 + $0x3c0] sm:$0xff]  ;;  %v4081_v28 = vpack.c.bf16 %v246_v21, %v238_v20  ;;  %v245_v29 = vld [vmem:[#allocation4 + $0x3d0] sm:$0xff]  ;;  %v252_v30 = vld [vmem:[#allocation4 + $0x408] sm:$0xff] }
  0x70   :  { %4072 = vmatpush1.bf16.msra.mxu1 %v4071_v63  ;;  %3882 = vmatprep.subr.bf16.mxu0 %v3881_v0  ;;  %v260_v31 = vld [vmem:[#allocation4 + $0x448] sm:$0xff]  ;;  %v254_v32 = vld [vmem:[#allocation4 + $0x418] sm:$0xff]  ;;  %v3891_v34 = vpack.c.bf16 %v243_v26, %v235_v25  ;;  %v4083_v35 = vpack.c.bf16 %v245_v29, %v237_v27  ;;  %v251_v37 = vld [vmem:[#allocation4 + $0x400] sm:$0xff] }
  0x71   :  { %4074 = vmatprep.subr.bf16.mxu1 %v4073_v4  ;;  %v262_v33 = vld [vmem:[#allocation4 + $0x458] sm:$0xff]  ;;  %v3893_v36 = vpack.c.bf16 %v260_v31, %v252_v30  ;;  %v259_v38 = vld [vmem:[#allocation4 + $0x440] sm:$0xff]  ;;  %v253_v39 = vld [vmem:[#allocation4 + $0x410] sm:$0xff] }
  0x72   :  { %v4085_v40 = vpack.c.bf16 %v262_v33, %v254_v32  ;;  %v261_v41 = vld [vmem:[#allocation4 + $0x450] sm:$0xff]  ;;  %v268_v42 = vld [vmem:[#allocation4 + $0x488] sm:$0xff]  ;;  %v270_v44 = vld [vmem:[#allocation4 + $0x498] sm:$0xff]  ;;  %v3895_v46 = vpack.c.bf16 %v259_v38, %v251_v37 }
  0x73   :  { %3884 = vmatpush1.bf16.msra.mxu0 %v3883_v10  ;;  %v276_v43 = vld [vmem:[#allocation4 + $0x4c8] sm:$0xff]  ;;  %v278_v45 = vld [vmem:[#allocation4 + $0x4d8] sm:$0xff]  ;;  %v4087_v47 = vpack.c.bf16 %v261_v41, %v253_v39  ;;  %v267_v49 = vld [vmem:[#allocation4 + $0x480] sm:$0xff] }
  0x74   :  { %4076 = vmatpush1.bf16.msra.mxu1 %v4075_v11  ;;  %3886 = vmatprep.subr.bf16.mxu0 %v3885_v12  ;;  %v3897_v48 = vpack.c.bf16 %v276_v43, %v268_v42  ;;  %v275_v50 = vld [vmem:[#allocation4 + $0x4c0] sm:$0xff]  ;;  %v269_v51 = vld [vmem:[#allocation4 + $0x490] sm:$0xff]  ;;  %v4089_v52 = vpack.c.bf16 %v278_v45, %v270_v44  ;;  %v284_v54 = vld [vmem:[#allocation4 + $0x508] sm:$0xff] }
  0x75   :  { %4078 = vmatprep.subr.bf16.mxu1 %v4077_v16  ;;  %v277_v53 = vld [vmem:[#allocation4 + $0x4d0] sm:$0xff]  ;;  %v292_v55 = vld [vmem:[#allocation4 + $0x548] sm:$0xff]  ;;  %v286_v56 = vld [vmem:[#allocation4 + $0x518] sm:$0xff]  ;;  %v3899_v58 = vpack.c.bf16 %v275_v50, %v267_v49 }
  0x76   :  { %v294_v57 = vld [vmem:[#allocation4 + $0x558] sm:$0xff]  ;;  %v4091_v59 = vpack.c.bf16 %v277_v53, %v269_v51  ;;  %v3901_v60 = vpack.c.bf16 %v292_v55, %v284_v54  ;;  %v283_v61 = vld [vmem:[#allocation4 + $0x500] sm:$0xff]  ;;  %v285_v63 = vld [vmem:[#allocation4 + $0x510] sm:$0xff] }
  0x77   :  { %3888 = vmatpush1.bf16.msra.mxu0 %v3887_v22  ;;  %v291_v62 = vld [vmem:[#allocation4 + $0x540] sm:$0xff]  ;;  %v4093_v0 = vpack.c.bf16 %v294_v57, %v286_v56  ;;  %v293_v1 = vld [vmem:[#allocation4 + $0x550] sm:$0xff]  ;;  %v300_v2 = vld [vmem:[#allocation4 + $0x588] sm:$0xff] }
  0x78   :  { %4080 = vmatpush1.bf16.msra.mxu1 %v4079_v23  ;;  %3890 = vmatprep.subr.bf16.mxu0 %v3889_v24  ;;  %v308_v3 = vld [vmem:[#allocation4 + $0x5c8] sm:$0xff]  ;;  %v302_v4 = vld [vmem:[#allocation4 + $0x598] sm:$0xff]  ;;  %v3903_v6 = vpack.c.bf16 %v291_v62, %v283_v61  ;;  %v299_v7 = vld [vmem:[#allocation4 + $0x580] sm:$0xff]  ;;  %v4095_v8 = vpack.c.bf16 %v293_v1, %v285_v63 }
  0x79   :  { %4082 = vmatprep.subr.bf16.mxu1 %v4081_v28  ;;  %v310_v5 = vld [vmem:[#allocation4 + $0x5d8] sm:$0xff]  ;;  %v3905_v9 = vpack.c.bf16 %v308_v3, %v300_v2  ;;  %v307_v10 = vld [vmem:[#allocation4 + $0x5c0] sm:$0xff]  ;;  %v301_v11 = vld [vmem:[#allocation4 + $0x590] sm:$0xff] }
  0x7a   :  { %v309_v12 = vld [vmem:[#allocation4 + $0x5d0] sm:$0xff]  ;;  %v4097_v13 = vpack.c.bf16 %v310_v5, %v302_v4  ;;  %v316_v14 = vld [vmem:[#allocation4 + $0x608] sm:$0xff]  ;;  %v318_v17 = vld [vmem:[#allocation4 + $0x618] sm:$0xff]  ;;  %v3907_v19 = vpack.c.bf16 %v307_v10, %v299_v7 }
  0x7b   :  { %3892 = vmatpush1.bf16.msra.mxu0 %v3891_v34  ;;  %v324_v15 = vld [vmem:[#allocation4 + $0x648] sm:$0xff]  ;;  %v326_v18 = vld [vmem:[#allocation4 + $0x658] sm:$0xff]  ;;  %v4099_v20 = vpack.c.bf16 %v309_v12, %v301_v11  ;;  %v315_v22 = vld [vmem:[#allocation4 + $0x600] sm:$0xff] }
  0x7c   :  { %4084 = vmatpush1.bf16.msra.mxu1 %v4083_v35  ;;  %3894 = vmatprep.subr.bf16.mxu0 %v3893_v36  ;;  %v88_v16 = vld [vmem:[#allocation2 + $0x8] sm:$0xff]  ;;  %v3909_v21 = vpack.c.bf16 %v324_v15, %v316_v14  ;;  %v323_v23 = vld [vmem:[#allocation4 + $0x640] sm:$0xff]  ;;  %v317_v24 = vld [vmem:[#allocation4 + $0x610] sm:$0xff]  ;;  %v4101_v25 = vpack.c.bf16 %v326_v18, %v318_v17 }
  0x7d   :  { %4086 = vmatprep.subr.bf16.mxu1 %v4085_v40  ;;  %997 = vmatprep.mubr.f32.mxu0 %v88_v16  ;;  %v325_v26 = vld [vmem:[#allocation4 + $0x650] sm:$0xff]  ;;  %v332_v27 = vld [vmem:[#allocation4 + $0x688] sm:$0xff]  ;;  %v334_v29 = vld [vmem:[#allocation4 + $0x698] sm:$0xff]  ;;  %v3911_v31 = vpack.c.bf16 %v323_v23, %v315_v22 }
  0x7e   :  { %1300 = vmatprep.mubr.f32.mxu1 %v88_v16  ;;  %v340_v28 = vld [vmem:[#allocation4 + $0x6c8] sm:$0xff]  ;;  %v342_v30 = vld [vmem:[#allocation4 + $0x6d8] sm:$0xff]  ;;  %v4103_v32 = vpack.c.bf16 %v325_v26, %v317_v24  ;;  %v331_v34 = vld [vmem:[#allocation4 + $0x680] sm:$0xff] }
  0x7f   :  { %3896 = vmatpush1.bf16.msra.mxu0 %v3895_v46  ;;  %v3913_v33 = vpack.c.bf16 %v340_v28, %v332_v27  ;;  %v339_v35 = vld [vmem:[#allocation4 + $0x6c0] sm:$0xff]  ;;  %v333_v36 = vld [vmem:[#allocation4 + $0x690] sm:$0xff]  ;;  %v4105_v37 = vpack.c.bf16 %v342_v30, %v334_v29  ;;  %v348_v39 = vld [vmem:[#allocation4 + $0x708] sm:$0xff] }
  0x80   :  { %4088 = vmatpush1.bf16.msra.mxu1 %v4087_v47  ;;  %3898 = vmatprep.subr.bf16.mxu0 %v3897_v48  ;;  %v341_v38 = vld [vmem:[#allocation4 + $0x6d0] sm:$0xff]  ;;  %v356_v40 = vld [vmem:[#allocation4 + $0x748] sm:$0xff]  ;;  %v350_v41 = vld [vmem:[#allocation4 + $0x718] sm:$0xff]  ;;  %v3915_v43 = vpack.c.bf16 %v339_v35, %v331_v34 }
  0x81   :  { %4090 = vmatprep.subr.bf16.mxu1 %v4089_v52  ;;  %v358_v42 = vld [vmem:[#allocation4 + $0x758] sm:$0xff]  ;;  %v4107_v44 = vpack.c.bf16 %v341_v38, %v333_v36  ;;  %v3917_v45 = vpack.c.bf16 %v356_v40, %v348_v39  ;;  %v347_v46 = vld [vmem:[#allocation4 + $0x700] sm:$0xff]  ;;  %v349_v48 = vld [vmem:[#allocation4 + $0x710] sm:$0xff] }
  0x82   :  { %v355_v47 = vld [vmem:[#allocation4 + $0x740] sm:$0xff]  ;;  %v4109_v49 = vpack.c.bf16 %v358_v42, %v350_v41  ;;  %v357_v50 = vld [vmem:[#allocation4 + $0x750] sm:$0xff]  ;;  %v364_v51 = vld [vmem:[#allocation4 + $0x788] sm:$0xff] }
  0x83   :  { %3900 = vmatpush1.bf16.msra.mxu0 %v3899_v58  ;;  %v372_v52 = vld [vmem:[#allocation4 + $0x7c8] sm:$0xff]  ;;  %v366_v53 = vld [vmem:[#allocation4 + $0x798] sm:$0xff]  ;;  %v3919_v55 = vpack.c.bf16 %v355_v47, %v347_v46  ;;  %v4111_v56 = vpack.c.bf16 %v357_v50, %v349_v48  ;;  %v363_v58 = vld [vmem:[#allocation4 + $0x780] sm:$0xff] }
  0x84   :  { %4092 = vmatpush1.bf16.msra.mxu1 %v4091_v59  ;;  %3902 = vmatprep.subr.bf16.mxu0 %v3901_v60  ;;  %v374_v54 = vld [vmem:[#allocation4 + $0x7d8] sm:$0xff]  ;;  %v3921_v57 = vpack.c.bf16 %v372_v52, %v364_v51  ;;  %v371_v59 = vld [vmem:[#allocation4 + $0x7c0] sm:$0xff]  ;;  %v365_v60 = vld [vmem:[#allocation4 + $0x790] sm:$0xff] }
  0x85   :  { %4094 = vmatprep.subr.bf16.mxu1 %v4093_v0  ;;  %v4113_v61 = vpack.c.bf16 %v374_v54, %v366_v53  ;;  %v373_v62 = vld [vmem:[#allocation4 + $0x7d0] sm:$0xff]  ;;  %v380_v63 = vld [vmem:[#allocation4 + $0x808] sm:$0xff]  ;;  %v382_v1 = vld [vmem:[#allocation4 + $0x818] sm:$0xff]  ;;  %v3923_v3 = vpack.c.bf16 %v371_v59, %v363_v58 }
  0x86   :  { %v388_v0 = vld [vmem:[#allocation4 + $0x848] sm:$0xff]  ;;  %v390_v2 = vld [vmem:[#allocation4 + $0x858] sm:$0xff]  ;;  %v4115_v4 = vpack.c.bf16 %v373_v62, %v365_v60  ;;  %v387_v7 = vld [vmem:[#allocation4 + $0x840] sm:$0xff] }
  0x87   :  { %3904 = vmatpush1.bf16.msra.mxu0 %v3903_v6  ;;  %v3925_v5 = vpack.c.bf16 %v388_v0, %v380_v63  ;;  %v379_v6 = vld [vmem:[#allocation4 + $0x800] sm:$0xff]  ;;  %v389_v10 = vld [vmem:[#allocation4 + $0x850] sm:$0xff]  ;;  %v396_v11 = vld [vmem:[#allocation4 + $0x888] sm:$0xff] }
  0x88   :  { %4096 = vmatpush1.bf16.msra.mxu1 %v4095_v8  ;;  %3906 = vmatprep.subr.bf16.mxu0 %v3905_v9  ;;  %v381_v8 = vld [vmem:[#allocation4 + $0x810] sm:$0xff]  ;;  %v4117_v9 = vpack.c.bf16 %v390_v2, %v382_v1  ;;  %v404_v12 = vld [vmem:[#allocation4 + $0x8c8] sm:$0xff]  ;;  %v406_v14 = vld [vmem:[#allocation4 + $0x8d8] sm:$0xff]  ;;  %v3927_v16 = vpack.c.bf16 %v387_v7, %v379_v6 }
  0x89   :  { %4098 = vmatprep.subr.bf16.mxu1 %v4097_v13  ;;  %v398_v13 = vld [vmem:[#allocation4 + $0x898] sm:$0xff]  ;;  %v87_v15 = vld [vmem:[#allocation2] sm:$0xff]  ;;  %v4119_v17 = vpack.c.bf16 %v389_v10, %v381_v8  ;;  %v3929_v18 = vpack.c.bf16 %v404_v12, %v396_v11  ;;  %v405_v23 = vld [vmem:[#allocation4 + $0x8d0] sm:$0xff] }
  0x8a   :  { %v4121_v22 = vpack.c.bf16 %v406_v14, %v398_v13  ;;  %v412_v24 = vld [vmem:[#allocation4 + $0x908] sm:$0xff]  ;;  %v414_v26 = vld [vmem:[#allocation4 + $0x918] sm:$0xff]  ;;  %v421_v35 = vld [vmem:[#allocation4 + $0x950] sm:$0xff] }
  0x8b   :  { %3908 = vmatpush1.bf16.msra.mxu0 %v3907_v19  ;;  %v395_v19 = vld [vmem:[#allocation4 + $0x880] sm:$0xff]  ;;  %v422_v27 = vld [vmem:[#allocation4 + $0x958] sm:$0xff]  ;;  %v428_v36 = vld [vmem:[#allocation4 + $0x988] sm:$0xff] }
  0x8c   :  { %4100 = vmatpush1.bf16.msra.mxu1 %v4099_v20  ;;  %3910 = vmatprep.subr.bf16.mxu0 %v3909_v21  ;;  %v403_v20 = vld [vmem:[#allocation4 + $0x8c0] sm:$0xff]  ;;  %v397_v21 = vld [vmem:[#allocation4 + $0x890] sm:$0xff]  ;;  %v4125_v34 = vpack.c.bf16 %v422_v27, %v414_v26  ;;  %v430_v38 = vld [vmem:[#allocation4 + $0x998] sm:$0xff] }
  0x8d   :  { %4102 = vmatprep.subr.bf16.mxu1 %v4101_v25  ;;  %v420_v25 = vld [vmem:[#allocation4 + $0x948] sm:$0xff]  ;;  %v3931_v28 = vpack.c.bf16 %v403_v20, %v395_v19  ;;  %v4123_v29 = vpack.c.bf16 %v405_v23, %v397_v21  ;;  %v438_v39 = vld [vmem:[#allocation4 + $0x9d8] sm:$0xff]  ;;  %v427_v41 = vld [vmem:[#allocation4 + $0x980] sm:$0xff] }
  0x8e   :  { %v3933_v30 = vpack.c.bf16 %v420_v25, %v412_v24  ;;  %v94_v42 = vld [vmem:[#allocation2 + $0x38] sm:$0xff]  ;;  %v429_v46 = vld [vmem:[#allocation4 + $0x990] sm:$0xff]  ;;  %v4129_v48 = vpack.c.bf16 %v438_v39, %v430_v38  ;;  %v452_v50 = vld [vmem:[#allocation4 + $0xa48] sm:$0xff] }
  0x8f   :  { %3912 = vmatpush1.bf16.msra.mxu0 %v3911_v31  ;;  %v411_v31 = vld [vmem:[#allocation4 + $0x900] sm:$0xff]  ;;  %v437_v47 = vld [vmem:[#allocation4 + $0x9d0] sm:$0xff]  ;;  %v446_v52 = vld [vmem:[#allocation4 + $0xa18] sm:$0xff] }
  0x90   :  { %4104 = vmatpush1.bf16.msra.mxu1 %v4103_v32  ;;  %3914 = vmatprep.subr.bf16.mxu0 %v3913_v33  ;;  %v419_v32 = vld [vmem:[#allocation4 + $0x940] sm:$0xff]  ;;  %v413_v33 = vld [vmem:[#allocation4 + $0x910] sm:$0xff]  ;;  %v454_v53 = vld [vmem:[#allocation4 + $0xa58] sm:$0xff] }
  0x91   :  { %4106 = vmatprep.subr.bf16.mxu1 %v4105_v37  ;;  %v436_v37 = vld [vmem:[#allocation4 + $0x9c8] sm:$0xff]  ;;  %v3935_v40 = vpack.c.bf16 %v419_v32, %v411_v31  ;;  %v93_v51 = vld [vmem:[#allocation2 + $0x30] sm:$0xff]  ;;  %v451_v59 = vld [vmem:[#allocation4 + $0xa40] sm:$0xff]  ;;  %v4133_v62 = vpack.c.bf16 %v454_v53, %v446_v52 }
  0x92   :  { %v445_v60 = vld [vmem:[#allocation4 + $0xa10] sm:$0xff]  ;;  %v460_v0 = vld [vmem:[#allocation4 + $0xa88] sm:$0xff]  ;;  %v462_v2 = vld [vmem:[#allocation4 + $0xa98] sm:$0xff] }
  0x93   :  { %3916 = vmatpush1.bf16.msra.mxu0 %v3915_v43  ;;  %v4127_v43 = vpack.c.bf16 %v421_v35, %v413_v33  ;;  %v453_v63 = vld [vmem:[#allocation4 + $0xa50] sm:$0xff]  ;;  %v468_v1 = vld [vmem:[#allocation4 + $0xac8] sm:$0xff]  ;;  %v459_v6 = vld [vmem:[#allocation4 + $0xa80] sm:$0xff] }
  0x94   :  { %4108 = vmatpush1.bf16.msra.mxu1 %v4107_v44  ;;  %3918 = vmatprep.subr.bf16.mxu0 %v3917_v45  ;;  %v3937_v44 = vpack.c.bf16 %v436_v37, %v428_v36  ;;  %v435_v45 = vld [vmem:[#allocation4 + $0x9c0] sm:$0xff]  ;;  %v4135_v7 = vpack.c.bf16 %v453_v63, %v445_v60  ;;  %v3945_v8 = vpack.c.bf16 %v468_v1, %v460_v0  ;;  %v461_v10 = vld [vmem:[#allocation4 + $0xa90] sm:$0xff]  ;;  %v476_v14 = vld [vmem:[#allocation4 + $0xb08] sm:$0xff] }
  0x95   :  { %4110 = vmatprep.subr.bf16.mxu1 %v4109_v49  ;;  %v444_v49 = vld [vmem:[#allocation4 + $0xa08] sm:$0xff]  ;;  %v3939_v54 = vpack.c.bf16 %v435_v45, %v427_v41  ;;  %v105_v11 = vld [vmem:[#allocation2 + $0x90] sm:$0xff]  ;;  %v111_v20 = vld [vmem:[#allocation2 + $0xc0] sm:$0xff] }
  0x96   :  { %v3941_v58 = vpack.c.bf16 %v452_v50, %v444_v49  ;;  %v469_v13 = vld [vmem:[#allocation4 + $0xad0] sm:$0xff]  ;;  %v475_v23 = vld [vmem:[#allocation4 + $0xb00] sm:$0xff]  ;;  %v502_v31 = vld [vmem:[#allocation4 + $0xbd8] sm:$0xff] }
  0x97   :  { %3920 = vmatpush1.bf16.msra.mxu0 %v3919_v55  ;;  %v443_v55 = vld [vmem:[#allocation4 + $0xa00] sm:$0xff]  ;;  %v4139_v21 = vpack.c.bf16 %v469_v13, %v461_v10  ;;  %v477_v25 = vld [vmem:[#allocation4 + $0xb10] sm:$0xff]  ;;  %v118_v32 = vld [vmem:[#allocation2 + $0xf8] sm:$0xff] }
  0x98   :  { %4112 = vmatpush1.bf16.msra.mxu1 %v4111_v56  ;;  %3922 = vmatprep.subr.bf16.mxu0 %v3921_v57  ;;  %v100_v56 = vld [vmem:[#allocation2 + $0x68] sm:$0xff]  ;;  %v4131_v57 = vpack.c.bf16 %v437_v47, %v429_v46  ;;  %v483_v24 = vld [vmem:[#allocation4 + $0xb40] sm:$0xff]  ;;  %v485_v27 = vld [vmem:[#allocation4 + $0xb50] sm:$0xff] }
  0x99   :  { %4114 = vmatprep.subr.bf16.mxu1 %v4113_v61  ;;  %v99_v61 = vld [vmem:[#allocation2 + $0x60] sm:$0xff]  ;;  %v3951_v33 = vpack.c.bf16 %v483_v24, %v475_v23  ;;  %v4143_v35 = vpack.c.bf16 %v485_v27, %v477_v25  ;;  %v493_v39 = vld [vmem:[#allocation4 + $0xb90] sm:$0xff]  ;;  %v518_v45 = vld [vmem:[#allocation4 + $0xc58] sm:$0xff] }
  0x9a   :  { %v491_v37 = vld [vmem:[#allocation4 + $0xb80] sm:$0xff]  ;;  %v501_v41 = vld [vmem:[#allocation4 + $0xbd0] sm:$0xff]  ;;  %v90_v46 = vld [vmem:[#allocation2 + $0x18] sm:$0xff] }
  0x9b   :  { %3924 = vmatpush1.bf16.msra.mxu0 %v3923_v3  ;;  %v470_v3 = vld [vmem:[#allocation4 + $0xad8] sm:$0xff]  ;;  %v499_v38 = vld [vmem:[#allocation4 + $0xbc0] sm:$0xff]  ;;  %v509_v52 = vld [vmem:[#allocation4 + $0xc10] sm:$0xff] }
  0x9c   :  { %4116 = vmatpush1.bf16.msra.mxu1 %v4115_v4  ;;  %3926 = vmatprep.subr.bf16.mxu0 %v3925_v5  ;;  %v106_v4 = vld [vmem:[#allocation2 + $0x98] sm:$0xff]  ;;  %v3943_v5 = vpack.c.bf16 %v451_v59, %v443_v55  ;;  %v4137_v12 = vpack.c.bf16 %v470_v3, %v462_v2  ;;  %v3955_v47 = vpack.c.bf16 %v499_v38, %v491_v37  ;;  %v507_v50 = vld [vmem:[#allocation4 + $0xc00] sm:$0xff]  ;;  %v524_v55 = vld [vmem:[#allocation4 + $0xc88] sm:$0xff] }
  0x9d   :  { %4118 = vmatprep.subr.bf16.mxu1 %v4117_v9  ;;  %v467_v9 = vld [vmem:[#allocation4 + $0xac0] sm:$0xff]  ;;  %v525_v0 = vld [vmem:[#allocation4 + $0xc90] sm:$0xff]  ;;  %v540_v3 = vld [vmem:[#allocation4 + $0xd08] sm:$0xff] }
  0x9e   :  { %998 = vmatmul.mubr.f32.vlgmr.msra.gmra.mrb[0].mxu0 %v87_v15  ;;  %v3947_v19 = vpack.c.bf16 %v467_v9, %v459_v6  ;;  %v531_v63 = vld [vmem:[#allocation4 + $0xcc0] sm:$0xff]  ;;  %v533_v2 = vld [vmem:[#allocation4 + $0xcd0] sm:$0xff]  ;;  %v550_v6 = vld [vmem:[#allocation4 + $0xd58] sm:$0xff] }
  0x9f   :  { %3928 = vmatpush1.bf16.msra.mxu0 %v3927_v16  ;;  %1301 = vmatmul.mubr.f32.vlgmr.msra.gmra.mrb[0].mxu1 %v87_v15  ;;  %v484_v15 = vld [vmem:[#allocation4 + $0xb48] sm:$0xff]  ;;  %v478_v16 = vld [vmem:[#allocation4 + $0xb18] sm:$0xff]  ;;  %v539_v10 = vld [vmem:[#allocation4 + $0xd00] sm:$0xff] }
  0xa0   :  { %4120 = vmatpush1.bf16.msra.mxu1 %v4119_v17  ;;  %3930 = vmatprep.subr.bf16.mxu0 %v3929_v18  ;;  %v486_v17 = vld [vmem:[#allocation4 + $0xb58] sm:$0xff]  ;;  %v112_v18 = vld [vmem:[#allocation2 + $0xc8] sm:$0xff]  ;;  %v563_v23 = vld [vmem:[#allocation4 + $0xdc0] sm:$0xff] }
  0xa1   :  { %4122 = vmatprep.subr.bf16.mxu1 %v4121_v22  ;;  %1003 = vmatprep.mubr.f32.mxu0 %v94_v42  ;;  %v3949_v22 = vpack.c.bf16 %v484_v15, %v476_v14  ;;  %v4141_v26 = vpack.c.bf16 %v486_v17, %v478_v16  ;;  %v549_v14 = vld [vmem:[#allocation4 + $0xd50] sm:$0xff]  ;;  %v556_v15 = vld [vmem:[#allocation4 + $0xd88] sm:$0xff]  ;;  %v558_v17 = vld [vmem:[#allocation4 + $0xd98] sm:$0xff] }
  0xa2   :  { %1306 = vmatprep.mubr.f32.mxu1 %v94_v42  ;;  %1004 = vmatmul.mubr.f32.gmra.mrb[2].mxu0 %v93_v51  ;;  %v508_v42 = vld [vmem:[#allocation4 + $0xc08] sm:$0xff]  ;;  %v557_v24 = vld [vmem:[#allocation4 + $0xd90] sm:$0xff] }
  0xa3   :  { %3932 = vmatpush1.bf16.msra.mxu0 %v3931_v28  ;;  %1307 = vmatmul.mubr.f32.gmra.mrb[2].mxu1 %v93_v51  ;;  %v492_v28 = vld [vmem:[#allocation4 + $0xb88] sm:$0xff]  ;;  %v515_v51 = vld [vmem:[#allocation4 + $0xc40] sm:$0xff]  ;;  %v581_v38 = vld [vmem:[#allocation4 + $0xe50] sm:$0xff] }
  0xa4   :  { %4124 = vmatpush1.bf16.msra.mxu1 %v4123_v29  ;;  %3934 = vmatprep.subr.bf16.mxu0 %v3933_v30  ;;  %v500_v29 = vld [vmem:[#allocation4 + $0xbc8] sm:$0xff]  ;;  %v494_v30 = vld [vmem:[#allocation4 + $0xb98] sm:$0xff]  ;;  %v3959_v59 = vpack.c.bf16 %v515_v51, %v507_v50  ;;  %v597_v50 = vld [vmem:[#allocation4 + $0xed0] sm:$0xff] }
  0xa5   :  { %4126 = vmatprep.subr.bf16.mxu1 %v4125_v34  ;;  %1009 = vmatprep.mubr.f32.mxu0 %v100_v56  ;;  %v117_v34 = vld [vmem:[#allocation2 + $0xf0] sm:$0xff]  ;;  %v3953_v36 = vpack.c.bf16 %v500_v29, %v492_v28  ;;  %v564_v16 = vld [vmem:[#allocation4 + $0xdc8] sm:$0xff]  ;;  %v574_v29 = vld [vmem:[#allocation4 + $0xe18] sm:$0xff] }
  0xa6   :  { %1312 = vmatprep.mubr.f32.mxu1 %v100_v56  ;;  %1010 = vmatmul.mubr.f32.gmra.mrb[4].mxu0 %v99_v61  ;;  %v532_v56 = vld [vmem:[#allocation4 + $0xcc8] sm:$0xff] }
  0xa7   :  { %3936 = vmatpush1.bf16.msra.mxu0 %v3935_v40  ;;  %1313 = vmatmul.mubr.f32.gmra.mrb[4].mxu1 %v99_v61  ;;  %v4145_v40 = vpack.c.bf16 %v502_v31, %v494_v30  ;;  %v3961_v61 = vpack.c.bf16 %v532_v56, %v524_v55  ;;  %v572_v27 = vld [vmem:[#allocation4 + $0xe08] sm:$0xff]  ;;  %v582_v30 = vld [vmem:[#allocation4 + $0xe58] sm:$0xff] }
  0xa8   :  { %4128 = vmatpush1.bf16.msra.mxu1 %v4127_v43  ;;  %3938 = vmatprep.subr.bf16.mxu0 %v3937_v44  ;;  %v516_v43 = vld [vmem:[#allocation4 + $0xc48] sm:$0xff]  ;;  %v510_v44 = vld [vmem:[#allocation4 + $0xc18] sm:$0xff]  ;;  %v4165_v37 = vpack.c.bf16 %v582_v30, %v574_v29 }
  0xa9   :  { %4130 = vmatprep.subr.bf16.mxu1 %v4129_v48  ;;  %1015 = vmatprep.mubr.f32.mxu0 %v106_v4  ;;  %v4147_v48 = vpack.c.bf16 %v501_v41, %v493_v39  ;;  %v3957_v49 = vpack.c.bf16 %v516_v43, %v508_v42  ;;  %v4149_v53 = vpack.c.bf16 %v518_v45, %v510_v44  ;;  %v580_v28 = vld [vmem:[#allocation4 + $0xe48] sm:$0xff]  ;;  %v590_v41 = vld [vmem:[#allocation4 + $0xe98] sm:$0xff] }
  0xaa   :  { %1318 = vmatprep.mubr.f32.mxu1 %v106_v4  ;;  %1016 = vmatmul.mubr.f32.gmra.mrb[6].mxu0 %v105_v11  ;;  %v548_v4 = vld [vmem:[#allocation4 + $0xd48] sm:$0xff]  ;;  %v598_v42 = vld [vmem:[#allocation4 + $0xed8] sm:$0xff] }
  0xab   :  { %3940 = vmatpush1.bf16.msra.mxu0 %v3939_v54  ;;  %1319 = vmatmul.mubr.f32.gmra.mrb[6].mxu1 %v105_v11  ;;  %v517_v54 = vld [vmem:[#allocation4 + $0xc50] sm:$0xff]  ;;  %v3965_v9 = vpack.c.bf16 %v548_v4, %v540_v3  ;;  %v547_v11 = vld [vmem:[#allocation4 + $0xd40] sm:$0xff]  ;;  %v588_v39 = vld [vmem:[#allocation4 + $0xe88] sm:$0xff] }
  0xac   :  { %4132 = vmatpush1.bf16.msra.mxu1 %v4131_v57  ;;  %3942 = vmatprep.subr.bf16.mxu0 %v3941_v58  ;;  %v526_v57 = vld [vmem:[#allocation4 + $0xc98] sm:$0xff]  ;;  %v4151_v60 = vpack.c.bf16 %v517_v54, %v509_v52  ;;  %v604_v51 = vld [vmem:[#allocation4 + $0xf08] sm:$0xff] }
  0xad   :  { %4134 = vmatprep.subr.bf16.mxu1 %v4133_v62  ;;  %1021 = vmatprep.mubr.f32.mxu0 %v112_v18  ;;  %v534_v58 = vld [vmem:[#allocation4 + $0xcd8] sm:$0xff]  ;;  %v523_v62 = vld [vmem:[#allocation4 + $0xc80] sm:$0xff]  ;;  %v612_v52 = vld [vmem:[#allocation4 + $0xf48] sm:$0xff] }
  0xae   :  { %1324 = vmatprep.mubr.f32.mxu1 %v112_v18  ;;  %1022 = vmatmul.mubr.f32.gmra.mrb[8].mxu0 %v111_v20  ;;  %v4153_v1 = vpack.c.bf16 %v534_v58, %v526_v57  ;;  %v566_v18 = vld [vmem:[#allocation4 + $0xdd8] sm:$0xff]  ;;  %v3981_v57 = vpack.c.bf16 %v612_v52, %v604_v51  ;;  %v603_v58 = vld [vmem:[#allocation4 + $0xf00] sm:$0xff]  ;;  %v692_v51 = vld [vmem:[#allocation4 + $0x11c8] sm:$0xff] }
  0xaf   :  { %3944 = vmatpush1.bf16.msra.mxu0 %v3943_v5  ;;  %1325 = vmatmul.mubr.f32.gmra.mrb[8].mxu1 %v111_v20  ;;  %v542_v5 = vld [vmem:[#allocation4 + $0xd18] sm:$0xff]  ;;  %v4161_v25 = vpack.c.bf16 %v566_v18, %v558_v17  ;;  %v635_v18 = vld [vmem:[#allocation4 + $0x1000] sm:$0xff] }
  0xb0   :  { %4136 = vmatpush1.bf16.msra.mxu1 %v4135_v7  ;;  %3946 = vmatprep.subr.bf16.mxu0 %v3945_v8  ;;  %v3963_v7 = vpack.c.bf16 %v531_v63, %v523_v62  ;;  %v4155_v8 = vpack.c.bf16 %v533_v2, %v525_v0  ;;  %v4157_v13 = vpack.c.bf16 %v550_v6, %v542_v5  ;;  %v614_v54 = vld [vmem:[#allocation4 + $0xf58] sm:$0xff]  ;;  %v613_v62 = vld [vmem:[#allocation4 + $0xf50] sm:$0xff]  ;;  %v620_v63 = vld [vmem:[#allocation4 + $0xf88] sm:$0xff] }
  0xb1   :  { %4138 = vmatprep.subr.bf16.mxu1 %v4137_v12  ;;  %1027 = vmatprep.mubr.f32.mxu0 %v118_v32  ;;  %v541_v12 = vld [vmem:[#allocation4 + $0xd10] sm:$0xff]  ;;  %v628_v0 = vld [vmem:[#allocation4 + $0xfc8] sm:$0xff]  ;;  %v630_v2 = vld [vmem:[#allocation4 + $0xfd8] sm:$0xff] }
  0xb2   :  { %1330 = vmatprep.mubr.f32.mxu1 %v118_v32  ;;  %1028 = vmatmul.mubr.f32.gmra.mrb[10].mxu0 %v117_v34  ;;  %v4159_v20 = vpack.c.bf16 %v549_v14, %v541_v12  ;;  %v3985_v5 = vpack.c.bf16 %v628_v0, %v620_v63  ;;  %v619_v6 = vld [vmem:[#allocation4 + $0xf80] sm:$0xff]  ;;  %v644_v12 = vld [vmem:[#allocation4 + $0x1048] sm:$0xff]  ;;  %v646_v14 = vld [vmem:[#allocation4 + $0x1058] sm:$0xff] }
  0xb3   :  { %3948 = vmatpush1.bf16.msra.mxu0 %v3947_v19  ;;  %1331 = vmatmul.mubr.f32.gmra.mrb[10].mxu1 %v117_v34  ;;  %v3967_v19 = vpack.c.bf16 %v547_v11, %v539_v10  ;;  %v571_v34 = vld [vmem:[#allocation4 + $0xe00] sm:$0xff]  ;;  %v629_v10 = vld [vmem:[#allocation4 + $0xfd0] sm:$0xff]  ;;  %v636_v11 = vld [vmem:[#allocation4 + $0x1008] sm:$0xff] }
  0xb4   :  { %4140 = vmatpush1.bf16.msra.mxu1 %v4139_v21  ;;  %3950 = vmatprep.subr.bf16.mxu0 %v3949_v22  ;;  %v3969_v21 = vpack.c.bf16 %v564_v16, %v556_v15  ;;  %v555_v22 = vld [vmem:[#allocation4 + $0xd80] sm:$0xff]  ;;  %v3989_v17 = vpack.c.bf16 %v644_v12, %v636_v11  ;;  %v686_v52 = vld [vmem:[#allocation4 + $0x1198] sm:$0xff]  ;;  %v693_v63 = vld [vmem:[#allocation4 + $0x11d0] sm:$0xff] }
  0xb5   :  { %4142 = vmatprep.subr.bf16.mxu1 %v4141_v26  ;;  %1098 = vmatprep.mubr.f32.mxu0 %v90_v46  ;;  %v565_v26 = vld [vmem:[#allocation4 + $0xdd0] sm:$0xff]  ;;  %v3971_v31 = vpack.c.bf16 %v563_v23, %v555_v22  ;;  %v652_v23 = vld [vmem:[#allocation4 + $0x1088] sm:$0xff] }
  0xb6   :  { %1401 = vmatprep.mubr.f32.mxu1 %v90_v46  ;;  %v4163_v32 = vpack.c.bf16 %v565_v26, %v557_v24  ;;  %v587_v46 = vld [vmem:[#allocation4 + $0xe80] sm:$0xff]  ;;  %v645_v22 = vld [vmem:[#allocation4 + $0x1050] sm:$0xff]  ;;  %v660_v24 = vld [vmem:[#allocation4 + $0x10c8] sm:$0xff] }
  0xb7   :  { %3952 = vmatpush1.bf16.msra.mxu0 %v3951_v33  ;;  %v3973_v33 = vpack.c.bf16 %v580_v28, %v572_v27  ;;  %v662_v26 = vld [vmem:[#allocation4 + $0x10d8] sm:$0xff]  ;;  %v89_v27 = vld [vmem:[#allocation2 + $0x10] sm:$0xff]  ;;  %v3993_v30 = vpack.c.bf16 %v660_v24, %v652_v23  ;;  %v700_v0 = vld [vmem:[#allocation4 + $0x1208] sm:$0xff] }
  0xb8   :  { %4144 = vmatpush1.bf16.msra.mxu1 %v4143_v35  ;;  %3954 = vmatprep.subr.bf16.mxu0 %v3953_v36  ;;  %v579_v35 = vld [vmem:[#allocation4 + $0xe40] sm:$0xff]  ;;  %v573_v36 = vld [vmem:[#allocation4 + $0xe10] sm:$0xff] }
  0xb9   :  { %4146 = vmatprep.subr.bf16.mxu1 %v4145_v40  ;;  %v596_v40 = vld [vmem:[#allocation4 + $0xec8] sm:$0xff]  ;;  %v3975_v43 = vpack.c.bf16 %v579_v35, %v571_v34  ;;  %v4167_v44 = vpack.c.bf16 %v581_v38, %v573_v36  ;;  %v661_v35 = vld [vmem:[#allocation4 + $0x10d0] sm:$0xff]  ;;  %v670_v38 = vld [vmem:[#allocation4 + $0x1118] sm:$0xff] }
  0xba   :  { %v3977_v45 = vpack.c.bf16 %v596_v40, %v588_v39  ;;  %v668_v36 = vld [vmem:[#allocation4 + $0x1108] sm:$0xff]  ;;  %v678_v39 = vld [vmem:[#allocation4 + $0x1158] sm:$0xff]  ;;  %v701_v11 = vld [vmem:[#allocation4 + $0x1210] sm:$0xff] }
  0xbb   :  { %3956 = vmatpush1.bf16.msra.mxu0 %v3955_v47  ;;  %v595_v47 = vld [vmem:[#allocation4 + $0xec0] sm:$0xff]  ;;  %v96_v40 = vld [vmem:[#allocation2 + $0x48] sm:$0xff] }
  0xbc   :  { %4148 = vmatpush1.bf16.msra.mxu1 %v4147_v48  ;;  %3958 = vmatprep.subr.bf16.mxu0 %v3957_v49  ;;  %v589_v48 = vld [vmem:[#allocation4 + $0xe90] sm:$0xff]  ;;  %v4169_v49 = vpack.c.bf16 %v598_v42, %v590_v41  ;;  %v3979_v55 = vpack.c.bf16 %v595_v47, %v587_v46  ;;  %v95_v42 = vld [vmem:[#allocation2 + $0x40] sm:$0xff] }
  0xbd   :  { %4150 = vmatprep.subr.bf16.mxu1 %v4149_v53  ;;  %v606_v53 = vld [vmem:[#allocation4 + $0xf18] sm:$0xff]  ;;  %v4171_v56 = vpack.c.bf16 %v597_v50, %v589_v48  ;;  %v675_v46 = vld [vmem:[#allocation4 + $0x1140] sm:$0xff]  ;;  %v669_v47 = vld [vmem:[#allocation4 + $0x1110] sm:$0xff]  ;;  %v4189_v48 = vpack.c.bf16 %v678_v39, %v670_v38 }
  0xbe   :  { %v684_v50 = vld [vmem:[#allocation4 + $0x1188] sm:$0xff]  ;;  %v715_v23 = vld [vmem:[#allocation4 + $0x1280] sm:$0xff]  ;;  %v733_v39 = vld [vmem:[#allocation4 + $0x1310] sm:$0xff] }
  0xbf   :  { %3960 = vmatpush1.bf16.msra.mxu0 %v3959_v59  ;;  %v611_v59 = vld [vmem:[#allocation4 + $0xf40] sm:$0xff] }
  0xc0   :  { %4152 = vmatpush1.bf16.msra.mxu1 %v4151_v60  ;;  %3962 = vmatprep.subr.bf16.mxu0 %v3961_v61  ;;  %v605_v60 = vld [vmem:[#allocation4 + $0xf10] sm:$0xff]  ;;  %v4173_v61 = vpack.c.bf16 %v614_v54, %v606_v53  ;;  %v3983_v3 = vpack.c.bf16 %v611_v59, %v603_v58  ;;  %v694_v53 = vld [vmem:[#allocation4 + $0x11d8] sm:$0xff]  ;;  %v4001_v58 = vpack.c.bf16 %v692_v51, %v684_v50  ;;  %v683_v59 = vld [vmem:[#allocation4 + $0x1180] sm:$0xff] }
  0xc1   :  { %4154 = vmatprep.subr.bf16.mxu1 %v4153_v1  ;;  %v622_v1 = vld [vmem:[#allocation4 + $0xf98] sm:$0xff]  ;;  %v4175_v4 = vpack.c.bf16 %v613_v62, %v605_v60  ;;  %v691_v60 = vld [vmem:[#allocation4 + $0x11c0] sm:$0xff]  ;;  %v4193_v62 = vpack.c.bf16 %v694_v53, %v686_v52  ;;  %v749_v52 = vld [vmem:[#allocation4 + $0x1390] sm:$0xff] }
  0xc2   :  { %v102_v54 = vld [vmem:[#allocation2 + $0x78] sm:$0xff]  ;;  %v723_v24 = vld [vmem:[#allocation4 + $0x12c0] sm:$0xff] }
  0xc3   :  { %3964 = vmatpush1.bf16.msra.mxu0 %v3963_v7  ;;  %v627_v7 = vld [vmem:[#allocation4 + $0xfc0] sm:$0xff] }
  0xc4   :  { %4156 = vmatpush1.bf16.msra.mxu1 %v4155_v8  ;;  %3966 = vmatprep.subr.bf16.mxu0 %v3965_v9  ;;  %v621_v8 = vld [vmem:[#allocation4 + $0xf90] sm:$0xff]  ;;  %v4177_v9 = vpack.c.bf16 %v630_v2, %v622_v1  ;;  %v3987_v15 = vpack.c.bf16 %v627_v7, %v619_v6  ;;  %v708_v1 = vld [vmem:[#allocation4 + $0x1248] sm:$0xff]  ;;  %v702_v2 = vld [vmem:[#allocation4 + $0x1218] sm:$0xff] }
  0xc5   :  { %4158 = vmatprep.subr.bf16.mxu1 %v4157_v13  ;;  %v638_v13 = vld [vmem:[#allocation4 + $0x1018] sm:$0xff]  ;;  %v4179_v16 = vpack.c.bf16 %v629_v10, %v621_v8  ;;  %v107_v6 = vld [vmem:[#allocation2 + $0xa0] sm:$0xff]  ;;  %v4005_v8 = vpack.c.bf16 %v708_v1, %v700_v0  ;;  %v765_v0 = vld [vmem:[#allocation4 + $0x1410] sm:$0xff] }
  0xc6   :  { %v707_v10 = vld [vmem:[#allocation4 + $0x1240] sm:$0xff] }
  0xc7   :  { %3968 = vmatpush1.bf16.msra.mxu0 %v3967_v19  ;;  %v643_v19 = vld [vmem:[#allocation4 + $0x1040] sm:$0xff] }
  0xc8   :  { %4160 = vmatpush1.bf16.msra.mxu1 %v4159_v20  ;;  %3970 = vmatprep.subr.bf16.mxu0 %v3969_v21  ;;  %v637_v20 = vld [vmem:[#allocation4 + $0x1010] sm:$0xff]  ;;  %v4181_v21 = vpack.c.bf16 %v646_v14, %v638_v13  ;;  %v3991_v28 = vpack.c.bf16 %v643_v19, %v635_v18  ;;  %v716_v14 = vld [vmem:[#allocation4 + $0x1288] sm:$0xff]  ;;  %v114_v18 = vld [vmem:[#allocation2 + $0xd8] sm:$0xff] }
  0xc9   :  { %4162 = vmatprep.subr.bf16.mxu1 %v4161_v25  ;;  %v654_v25 = vld [vmem:[#allocation4 + $0x1098] sm:$0xff]  ;;  %v4183_v29 = vpack.c.bf16 %v645_v22, %v637_v20  ;;  %v709_v13 = vld [vmem:[#allocation4 + $0x1250] sm:$0xff]  ;;  %v739_v38 = vld [vmem:[#allocation4 + $0x1340] sm:$0xff] }
  0xca   :  { %v4185_v34 = vpack.c.bf16 %v662_v26, %v654_v25  ;;  %v113_v20 = vld [vmem:[#allocation2 + $0xd0] sm:$0xff]  ;;  %v747_v50 = vld [vmem:[#allocation4 + $0x1380] sm:$0xff] }
  0xcb   :  { %3972 = vmatpush1.bf16.msra.mxu0 %v3971_v31  ;;  %v651_v31 = vld [vmem:[#allocation4 + $0x1080] sm:$0xff]  ;;  %v717_v25 = vld [vmem:[#allocation4 + $0x1290] sm:$0xff] }
  0xcc   :  { %4164 = vmatpush1.bf16.msra.mxu1 %v4163_v32  ;;  %3974 = vmatprep.subr.bf16.mxu0 %v3973_v33  ;;  %v659_v32 = vld [vmem:[#allocation4 + $0x10c0] sm:$0xff]  ;;  %v653_v33 = vld [vmem:[#allocation4 + $0x1090] sm:$0xff] }
  0xcd   :  { %4166 = vmatprep.subr.bf16.mxu1 %v4165_v37  ;;  %v676_v37 = vld [vmem:[#allocation4 + $0x1148] sm:$0xff]  ;;  %v3995_v41 = vpack.c.bf16 %v659_v32, %v651_v31  ;;  %v742_v31 = vld [vmem:[#allocation4 + $0x1358] sm:$0xff]  ;;  %v755_v51 = vld [vmem:[#allocation4 + $0x13c0] sm:$0xff] }
  0xce   :  { %v120_v32 = vld [vmem:[#allocation2 + $0x108] sm:$0xff] }
  0xcf   :  { %3976 = vmatpush1.bf16.msra.mxu0 %v3975_v43  ;;  %v4187_v43 = vpack.c.bf16 %v661_v35, %v653_v33  ;;  %v4011_v33 = vpack.c.bf16 %v723_v24, %v715_v23  ;;  %v803_v23 = vld [vmem:[#allocation4 + $0x1540] sm:$0xff]  ;;  %v797_v24 = vld [vmem:[#allocation4 + $0x1510] sm:$0xff] }
  0xd0   :  { %4168 = vmatpush1.bf16.msra.mxu1 %v4167_v44  ;;  %3978 = vmatprep.subr.bf16.mxu0 %v3977_v45  ;;  %v3997_v44 = vpack.c.bf16 %v676_v37, %v668_v36  ;;  %v667_v45 = vld [vmem:[#allocation4 + $0x1100] sm:$0xff] }
  0xd1   :  { %4170 = vmatprep.subr.bf16.mxu1 %v4169_v49  ;;  %v677_v49 = vld [vmem:[#allocation4 + $0x1150] sm:$0xff]  ;;  %v731_v37 = vld [vmem:[#allocation4 + $0x1300] sm:$0xff] }
  0xd3   :  { %3980 = vmatpush1.bf16.msra.mxu0 %v3979_v55  ;;  %v3999_v55 = vpack.c.bf16 %v675_v46, %v667_v45  ;;  %v758_v45 = vld [vmem:[#allocation4 + $0x13d8] sm:$0xff]  ;;  %v92_v46 = vld [vmem:[#allocation2 + $0x28] sm:$0xff] }
  0xd4   :  { %4172 = vmatpush1.bf16.msra.mxu1 %v4171_v56  ;;  %3982 = vmatprep.subr.bf16.mxu0 %v3981_v57  ;;  %v101_v56 = vld [vmem:[#allocation2 + $0x70] sm:$0xff]  ;;  %v4191_v57 = vpack.c.bf16 %v677_v49, %v669_v47  ;;  %v4015_v47 = vpack.c.bf16 %v739_v38, %v731_v37 }
  0xd5   :  { %4174 = vmatprep.subr.bf16.mxu1 %v4173_v61  ;;  %v685_v61 = vld [vmem:[#allocation4 + $0x1190] sm:$0xff] }
  0xd6   :  { %v4195_v7 = vpack.c.bf16 %v693_v63, %v685_v61  ;;  %v771_v63 = vld [vmem:[#allocation4 + $0x1440] sm:$0xff]  ;;  %v821_v38 = vld [vmem:[#allocation4 + $0x15d0] sm:$0xff] }
  0xd7   :  { %3984 = vmatpush1.bf16.msra.mxu0 %v3983_v3  ;;  %v710_v3 = vld [vmem:[#allocation4 + $0x1258] sm:$0xff] }
  0xd8   :  { %4176 = vmatpush1.bf16.msra.mxu1 %v4175_v4  ;;  %3986 = vmatprep.subr.bf16.mxu0 %v3985_v5  ;;  %v108_v4 = vld [vmem:[#allocation2 + $0xa8] sm:$0xff]  ;;  %v4003_v5 = vpack.c.bf16 %v691_v60, %v683_v59  ;;  %v4197_v12 = vpack.c.bf16 %v710_v3, %v702_v2  ;;  %v4019_v59 = vpack.c.bf16 %v755_v51, %v747_v50  ;;  %v773_v2 = vld [vmem:[#allocation4 + $0x1450] sm:$0xff] }
  0xd9   :  { %4178 = vmatprep.subr.bf16.mxu1 %v4177_v9  ;;  %v699_v9 = vld [vmem:[#allocation4 + $0x1200] sm:$0xff]  ;;  %v780_v3 = vld [vmem:[#allocation4 + $0x1488] sm:$0xff]  ;;  %v837_v50 = vld [vmem:[#allocation4 + $0x1650] sm:$0xff] }
  0xda   :  { %v4007_v19 = vpack.c.bf16 %v707_v10, %v699_v9  ;;  %v779_v10 = vld [vmem:[#allocation4 + $0x1480] sm:$0xff]  ;;  %v844_v51 = vld [vmem:[#allocation4 + $0x1688] sm:$0xff] }
  0xdb   :  { %3988 = vmatpush1.bf16.msra.mxu0 %v3987_v15  ;;  %v724_v15 = vld [vmem:[#allocation4 + $0x12c8] sm:$0xff] }
  0xdc   :  { %4180 = vmatpush1.bf16.msra.mxu1 %v4179_v16  ;;  %3990 = vmatprep.subr.bf16.mxu0 %v3989_v17  ;;  %v718_v16 = vld [vmem:[#allocation4 + $0x1298] sm:$0xff]  ;;  %v4009_v22 = vpack.c.bf16 %v724_v15, %v716_v14  ;;  %v789_v14 = vld [vmem:[#allocation4 + $0x14d0] sm:$0xff]  ;;  %v796_v15 = vld [vmem:[#allocation4 + $0x1508] sm:$0xff] }
  0xdd   :  { %4182 = vmatprep.subr.bf16.mxu1 %v4181_v21  ;;  %v726_v17 = vld [vmem:[#allocation4 + $0x12d8] sm:$0xff]  ;;  %v4199_v21 = vpack.c.bf16 %v709_v13, %v701_v11  ;;  %v787_v11 = vld [vmem:[#allocation4 + $0x14c0] sm:$0xff] }
  0xde   :  { %1099 = vmatmul.mubr.f32.vlgmr.msra.gmra.mrb[0].mxu0 %v89_v27  ;;  %v4201_v26 = vpack.c.bf16 %v726_v17, %v718_v16  ;;  %v804_v16 = vld [vmem:[#allocation4 + $0x1548] sm:$0xff]  ;;  %v798_v17 = vld [vmem:[#allocation4 + $0x1518] sm:$0xff] }
  0xdf   :  { %3992 = vmatpush1.bf16.msra.mxu0 %v3991_v28  ;;  %1402 = vmatmul.mubr.f32.vlgmr.msra.gmra.mrb[0].mxu1 %v89_v27  ;;  %v725_v27 = vld [vmem:[#allocation4 + $0x12d0] sm:$0xff]  ;;  %v732_v28 = vld [vmem:[#allocation4 + $0x1308] sm:$0xff] }
  0xe0   :  { %4184 = vmatpush1.bf16.msra.mxu1 %v4183_v29  ;;  %3994 = vmatprep.subr.bf16.mxu0 %v3993_v30  ;;  %v740_v29 = vld [vmem:[#allocation4 + $0x1348] sm:$0xff]  ;;  %v734_v30 = vld [vmem:[#allocation4 + $0x1318] sm:$0xff]  ;;  %v4203_v35 = vpack.c.bf16 %v725_v27, %v717_v25 }
  0xe1   :  { %4186 = vmatprep.subr.bf16.mxu1 %v4185_v34  ;;  %1104 = vmatprep.mubr.f32.mxu0 %v96_v40  ;;  %v119_v34 = vld [vmem:[#allocation2 + $0x100] sm:$0xff]  ;;  %v4013_v36 = vpack.c.bf16 %v740_v29, %v732_v28  ;;  %v812_v27 = vld [vmem:[#allocation4 + $0x1588] sm:$0xff]  ;;  %v814_v29 = vld [vmem:[#allocation4 + $0x1598] sm:$0xff] }
  0xe2   :  { %1407 = vmatprep.mubr.f32.mxu1 %v96_v40  ;;  %1105 = vmatmul.mubr.f32.gmra.mrb[2].mxu0 %v95_v42  ;;  %v4205_v40 = vpack.c.bf16 %v742_v31, %v734_v30  ;;  %v820_v28 = vld [vmem:[#allocation4 + $0x15c8] sm:$0xff]  ;;  %v822_v30 = vld [vmem:[#allocation4 + $0x15d8] sm:$0xff] }
  0xe3   :  { %3996 = vmatpush1.bf16.msra.mxu0 %v3995_v41  ;;  %1408 = vmatmul.mubr.f32.gmra.mrb[2].mxu1 %v95_v42  ;;  %v741_v41 = vld [vmem:[#allocation4 + $0x1350] sm:$0xff]  ;;  %v748_v42 = vld [vmem:[#allocation4 + $0x1388] sm:$0xff]  ;;  %v4225_v37 = vpack.c.bf16 %v822_v30, %v814_v29  ;;  %v127_v30 = vld [vmem:[#allocation4 + $0x20] sm:$0xff] }
  0xe4   :  { %4188 = vmatpush1.bf16.msra.mxu1 %v4187_v43  ;;  %3998 = vmatprep.subr.bf16.mxu0 %v3997_v44  ;;  %v756_v43 = vld [vmem:[#allocation4 + $0x13c8] sm:$0xff]  ;;  %v750_v44 = vld [vmem:[#allocation4 + $0x1398] sm:$0xff] }
  0xe5   :  { %4190 = vmatprep.subr.bf16.mxu1 %v4189_v48  ;;  %1110 = vmatprep.mubr.f32.mxu0 %v102_v54  ;;  %v4207_v48 = vpack.c.bf16 %v741_v41, %v733_v39  ;;  %v4017_v49 = vpack.c.bf16 %v756_v43, %v748_v42  ;;  %v4209_v53 = vpack.c.bf16 %v758_v45, %v750_v44  ;;  %v828_v39 = vld [vmem:[#allocation4 + $0x1608] sm:$0xff]  ;;  %v830_v41 = vld [vmem:[#allocation4 + $0x1618] sm:$0xff] }
  0xe6   :  { %1413 = vmatprep.mubr.f32.mxu1 %v102_v54  ;;  %1111 = vmatmul.mubr.f32.gmra.mrb[4].mxu0 %v101_v56  ;;  %v757_v54 = vld [vmem:[#allocation4 + $0x13d0] sm:$0xff]  ;;  %v838_v42 = vld [vmem:[#allocation4 + $0x1658] sm:$0xff] }
  0xe7   :  { %4000 = vmatpush1.bf16.msra.mxu0 %v3999_v55  ;;  %1414 = vmatmul.mubr.f32.gmra.mrb[4].mxu1 %v101_v56  ;;  %v764_v55 = vld [vmem:[#allocation4 + $0x1408] sm:$0xff]  ;;  %v4211_v60 = vpack.c.bf16 %v757_v54, %v749_v52  ;;  %v854_v54 = vld [vmem:[#allocation4 + $0x16d8] sm:$0xff] }
  0xe8   :  { %4192 = vmatpush1.bf16.msra.mxu1 %v4191_v57  ;;  %4002 = vmatprep.subr.bf16.mxu0 %v4001_v58  ;;  %v772_v56 = vld [vmem:[#allocation4 + $0x1448] sm:$0xff]  ;;  %v766_v57 = vld [vmem:[#allocation4 + $0x1418] sm:$0xff] }
  0xe9   :  { %4194 = vmatprep.subr.bf16.mxu1 %v4193_v62  ;;  %1116 = vmatprep.mubr.f32.mxu0 %v108_v4  ;;  %v774_v58 = vld [vmem:[#allocation4 + $0x1458] sm:$0xff]  ;;  %v4021_v61 = vpack.c.bf16 %v772_v56, %v764_v55  ;;  %v763_v62 = vld [vmem:[#allocation4 + $0x1400] sm:$0xff]  ;;  %v852_v52 = vld [vmem:[#allocation4 + $0x16c8] sm:$0xff] }
  0xea   :  { %1419 = vmatprep.mubr.f32.mxu1 %v108_v4  ;;  %1117 = vmatmul.mubr.f32.gmra.mrb[6].mxu0 %v107_v6  ;;  %v4213_v1 = vpack.c.bf16 %v774_v58, %v766_v57  ;;  %v788_v4 = vld [vmem:[#allocation4 + $0x14c8] sm:$0xff]  ;;  %v4041_v57 = vpack.c.bf16 %v852_v52, %v844_v51  ;;  %v843_v58 = vld [vmem:[#allocation4 + $0x1680] sm:$0xff]  ;;  %v170_v51 = vld [vmem:[#allocation4 + $0x178] sm:$0xff] }
  0xeb   :  { %4004 = vmatpush1.bf16.msra.mxu0 %v4003_v5  ;;  %1420 = vmatmul.mubr.f32.gmra.mrb[6].mxu1 %v107_v6  ;;  %v782_v5 = vld [vmem:[#allocation4 + $0x1498] sm:$0xff]  ;;  %v4025_v9 = vpack.c.bf16 %v788_v4, %v780_v3 }
  0xec   :  { %4196 = vmatpush1.bf16.msra.mxu1 %v4195_v7  ;;  %4006 = vmatprep.subr.bf16.mxu0 %v4005_v8  ;;  %v790_v6 = vld [vmem:[#allocation4 + $0x14d8] sm:$0xff]  ;;  %v4023_v7 = vpack.c.bf16 %v771_v63, %v763_v62  ;;  %v4215_v8 = vpack.c.bf16 %v773_v2, %v765_v0  ;;  %v853_v62 = vld [vmem:[#allocation4 + $0x16d0] sm:$0xff]  ;;  %v860_v63 = vld [vmem:[#allocation4 + $0x1708] sm:$0xff] }
  0xed   :  { %4198 = vmatprep.subr.bf16.mxu1 %v4197_v12  ;;  %1122 = vmatprep.mubr.f32.mxu0 %v114_v18  ;;  %v781_v12 = vld [vmem:[#allocation4 + $0x1490] sm:$0xff]  ;;  %v4217_v13 = vpack.c.bf16 %v790_v6, %v782_v5  ;;  %v868_v0 = vld [vmem:[#allocation4 + $0x1748] sm:$0xff]  ;;  %v870_v2 = vld [vmem:[#allocation4 + $0x1758] sm:$0xff] }
  0xee   :  { %1425 = vmatprep.mubr.f32.mxu1 %v114_v18  ;;  %1123 = vmatmul.mubr.f32.gmra.mrb[8].mxu0 %v113_v20  ;;  %v806_v18 = vld [vmem:[#allocation4 + $0x1558] sm:$0xff]  ;;  %v4045_v5 = vpack.c.bf16 %v868_v0, %v860_v63  ;;  %v859_v6 = vld [vmem:[#allocation4 + $0x1700] sm:$0xff]  ;;  %v184_v63 = vld [vmem:[#allocation4 + $0x1e8] sm:$0xff] }
  0xef   :  { %4008 = vmatpush1.bf16.msra.mxu0 %v4007_v19  ;;  %1426 = vmatmul.mubr.f32.gmra.mrb[8].mxu1 %v113_v20  ;;  %v4027_v19 = vpack.c.bf16 %v787_v11, %v779_v10  ;;  %v4219_v20 = vpack.c.bf16 %v789_v14, %v781_v12  ;;  %v4221_v25 = vpack.c.bf16 %v806_v18, %v798_v17  ;;  %v869_v10 = vld [vmem:[#allocation4 + $0x1750] sm:$0xff]  ;;  %v876_v11 = vld [vmem:[#allocation4 + $0x1788] sm:$0xff]  ;;  %v886_v14 = vld [vmem:[#allocation4 + $0x17d8] sm:$0xff] }
  0xf0   :  { %4200 = vmatpush1.bf16.msra.mxu1 %v4199_v21  ;;  %4010 = vmatprep.subr.bf16.mxu0 %v4009_v22  ;;  %v4029_v21 = vpack.c.bf16 %v804_v16, %v796_v15  ;;  %v795_v22 = vld [vmem:[#allocation4 + $0x1500] sm:$0xff]  ;;  %v884_v12 = vld [vmem:[#allocation4 + $0x17c8] sm:$0xff]  ;;  %v98_v52 = vld [vmem:[#allocation2 + $0x58] sm:$0xff] }
  0xf1   :  { %4202 = vmatprep.subr.bf16.mxu1 %v4201_v26  ;;  %1128 = vmatprep.mubr.f32.mxu0 %v120_v32  ;;  %v805_v26 = vld [vmem:[#allocation4 + $0x1550] sm:$0xff]  ;;  %v4031_v31 = vpack.c.bf16 %v803_v23, %v795_v22  ;;  %v4049_v17 = vpack.c.bf16 %v884_v12, %v876_v11  ;;  %v875_v18 = vld [vmem:[#allocation4 + $0x1780] sm:$0xff]  ;;  %v128_v23 = vld [vmem:[#allocation4 + $0x28] sm:$0xff] }
  0xf2   :  { %1431 = vmatprep.mubr.f32.mxu1 %v120_v32  ;;  %1129 = vmatmul.mubr.f32.gmra.mrb[10].mxu0 %v119_v34  ;;  %v4223_v32 = vpack.c.bf16 %v805_v26, %v797_v24  ;;  %v885_v22 = vld [vmem:[#allocation4 + $0x17d0] sm:$0xff]  ;;  %v136_v24 = vld [vmem:[#allocation4 + $0x68] sm:$0xff]  ;;  %v138_v26 = vld [vmem:[#allocation4 + $0x78] sm:$0xff] }
  0xf3   :  { %4012 = vmatpush1.bf16.msra.mxu0 %v4011_v33  ;;  %1432 = vmatmul.mubr.f32.gmra.mrb[10].mxu1 %v119_v34  ;;  %v4033_v33 = vpack.c.bf16 %v820_v28, %v812_v27  ;;  %v811_v34 = vld [vmem:[#allocation4 + $0x1580] sm:$0xff]  ;;  %v4245_v29 = vpack.c.bf16 %v136_v24, %v128_v23  ;;  %v178_v0 = vld [vmem:[#allocation4 + $0x1b8] sm:$0xff]  ;;  %v185_v11 = vld [vmem:[#allocation4 + $0x1f0] sm:$0xff] }
  0xf4   :  { %4204 = vmatpush1.bf16.msra.mxu1 %v4203_v35  ;;  %4014 = vmatprep.subr.bf16.mxu0 %v4013_v36  ;;  %v819_v35 = vld [vmem:[#allocation4 + $0x15c0] sm:$0xff]  ;;  %v813_v36 = vld [vmem:[#allocation4 + $0x1590] sm:$0xff]  ;;  %v192_v12 = vld [vmem:[#allocation4 + $0x228] sm:$0xff] }
  0xf5   :  { %4206 = vmatprep.subr.bf16.mxu1 %v4205_v40  ;;  %1199 = vmatprep.mubr.f32.mxu0 %v92_v46  ;;  %v836_v40 = vld [vmem:[#allocation4 + $0x1648] sm:$0xff]  ;;  %v4035_v43 = vpack.c.bf16 %v819_v35, %v811_v34  ;;  %v4227_v44 = vpack.c.bf16 %v821_v38, %v813_v36  ;;  %v137_v34 = vld [vmem:[#allocation4 + $0x70] sm:$0xff]  ;;  %v154_v38 = vld [vmem:[#allocation4 + $0xf8] sm:$0xff] }
  0xf6   :  { %1502 = vmatprep.mubr.f32.mxu1 %v92_v46  ;;  %v4037_v45 = vpack.c.bf16 %v836_v40, %v828_v39  ;;  %v827_v46 = vld [vmem:[#allocation4 + $0x1600] sm:$0xff]  ;;  %v144_v35 = vld [vmem:[#allocation4 + $0xa8] sm:$0xff]  ;;  %v193_v23 = vld [vmem:[#allocation4 + $0x230] sm:$0xff] }
  0xf7   :  { %4016 = vmatpush1.bf16.msra.mxu0 %v4015_v47  ;;  %v835_v47 = vld [vmem:[#allocation4 + $0x1640] sm:$0xff]  ;;  %v152_v36 = vld [vmem:[#allocation4 + $0xe8] sm:$0xff] }
  0xf8   :  { %4208 = vmatpush1.bf16.msra.mxu1 %v4207_v48  ;;  %4018 = vmatprep.subr.bf16.mxu0 %v4017_v49  ;;  %v829_v48 = vld [vmem:[#allocation4 + $0x1610] sm:$0xff]  ;;  %v4229_v49 = vpack.c.bf16 %v838_v42, %v830_v41  ;;  %v4039_v55 = vpack.c.bf16 %v835_v47, %v827_v46  ;;  %v91_v39 = vld [vmem:[#allocation2 + $0x20] sm:$0xff]  ;;  %v4249_v42 = vpack.c.bf16 %v152_v36, %v144_v35 }
  0xf9   :  { %4210 = vmatprep.subr.bf16.mxu1 %v4209_v53  ;;  %v846_v53 = vld [vmem:[#allocation4 + $0x1698] sm:$0xff]  ;;  %v4231_v56 = vpack.c.bf16 %v837_v50, %v829_v48  ;;  %v153_v47 = vld [vmem:[#allocation4 + $0xf0] sm:$0xff]  ;;  %v160_v48 = vld [vmem:[#allocation4 + $0x128] sm:$0xff] }
  0xfa   :  { %v162_v50 = vld [vmem:[#allocation4 + $0x138] sm:$0xff]  ;;  %v207_v35 = vld [vmem:[#allocation4 + $0x2a0] sm:$0xff] }
  0xfb   :  { %4020 = vmatpush1.bf16.msra.mxu0 %v4019_v59  ;;  %v851_v59 = vld [vmem:[#allocation4 + $0x16c0] sm:$0xff] }
  0xfc   :  { %4212 = vmatpush1.bf16.msra.mxu1 %v4211_v60  ;;  %4022 = vmatprep.subr.bf16.mxu0 %v4021_v61  ;;  %v845_v60 = vld [vmem:[#allocation4 + $0x1690] sm:$0xff]  ;;  %v4233_v61 = vpack.c.bf16 %v854_v54, %v846_v53  ;;  %v4043_v3 = vpack.c.bf16 %v851_v59, %v843_v58  ;;  %v167_v58 = vld [vmem:[#allocation4 + $0x160] sm:$0xff] }
  0xfd   :  { %4214 = vmatprep.subr.bf16.mxu1 %v4213_v1  ;;  %v862_v1 = vld [vmem:[#allocation4 + $0x1718] sm:$0xff]  ;;  %v4235_v4 = vpack.c.bf16 %v853_v62, %v845_v60  ;;  %v97_v54 = vld [vmem:[#allocation2 + $0x50] sm:$0xff]  ;;  %v4445_v60 = vpack.c.bf16 %v170_v51, %v162_v50  ;;  %v176_v62 = vld [vmem:[#allocation4 + $0x1a8] sm:$0xff] }
  0xfe   :  { %v161_v59 = vld [vmem:[#allocation4 + $0x130] sm:$0xff]  ;;  %v215_v36 = vld [vmem:[#allocation4 + $0x2e0] sm:$0xff] }
  0xff   :  { %4024 = vmatpush1.bf16.msra.mxu0 %v4023_v7  ;;  %v867_v7 = vld [vmem:[#allocation4 + $0x1740] sm:$0xff]  ;;  %v225_v51 = vld [vmem:[#allocation4 + $0x330] sm:$0xff] }
 0x100   :  { %4216 = vmatpush1.bf16.msra.mxu1 %v4215_v8  ;;  %4026 = vmatprep.subr.bf16.mxu0 %v4025_v9  ;;  %v861_v8 = vld [vmem:[#allocation4 + $0x1710] sm:$0xff]  ;;  %v4237_v9 = vpack.c.bf16 %v870_v2, %v862_v1  ;;  %v4047_v15 = vpack.c.bf16 %v867_v7, %v859_v6  ;;  %v186_v1 = vld [vmem:[#allocation4 + $0x1f8] sm:$0xff]  ;;  %v104_v2 = vld [vmem:[#allocation2 + $0x88] sm:$0xff]  ;;  %v4257_v6 = vpack.c.bf16 %v184_v63, %v176_v62 }
 0x101   :  { %4218 = vmatprep.subr.bf16.mxu1 %v4217_v13  ;;  %v878_v13 = vld [vmem:[#allocation4 + $0x1798] sm:$0xff]  ;;  %v4239_v16 = vpack.c.bf16 %v869_v10, %v861_v8  ;;  %v175_v7 = vld [vmem:[#allocation4 + $0x1a0] sm:$0xff]  ;;  %v4449_v10 = vpack.c.bf16 %v186_v1, %v178_v0  ;;  %v241_v63 = vld [vmem:[#allocation4 + $0x3b0] sm:$0xff] }
 0x102   :  { %v183_v8 = vld [vmem:[#allocation4 + $0x1e0] sm:$0xff]  ;;  %v249_v1 = vld [vmem:[#allocation4 + $0x3f0] sm:$0xff] }
 0x103   :  { %4028 = vmatpush1.bf16.msra.mxu0 %v4027_v19  ;;  %v883_v19 = vld [vmem:[#allocation4 + $0x17c0] sm:$0xff] }
 0x104   :  { %4220 = vmatpush1.bf16.msra.mxu1 %v4219_v20  ;;  %4030 = vmatprep.subr.bf16.mxu0 %v4029_v21  ;;  %v877_v20 = vld [vmem:[#allocation4 + $0x1790] sm:$0xff]  ;;  %v4241_v21 = vpack.c.bf16 %v886_v14, %v878_v13  ;;  %v4051_v27 = vpack.c.bf16 %v883_v19, %v875_v18  ;;  %v200_v13 = vld [vmem:[#allocation4 + $0x268] sm:$0xff]  ;;  %v194_v14 = vld [vmem:[#allocation4 + $0x238] sm:$0xff] }
 0x105   :  { %4222 = vmatprep.subr.bf16.mxu1 %v4221_v25  ;;  %v130_v25 = vld [vmem:[#allocation4 + $0x38] sm:$0xff]  ;;  %v4243_v28 = vpack.c.bf16 %v885_v22, %v877_v20  ;;  %v109_v18 = vld [vmem:[#allocation2 + $0xb0] sm:$0xff]  ;;  %v4261_v20 = vpack.c.bf16 %v200_v13, %v192_v12  ;;  %v199_v22 = vld [vmem:[#allocation4 + $0x260] sm:$0xff] }
 0x106   :  { %v231_v50 = vld [vmem:[#allocation4 + $0x360] sm:$0xff]  ;;  %v257_v12 = vld [vmem:[#allocation4 + $0x430] sm:$0xff] }
 0x107   :  { %4032 = vmatpush1.bf16.msra.mxu0 %v4031_v31  ;;  %v135_v31 = vld [vmem:[#allocation4 + $0x60] sm:$0xff] }
 0x108   :  { %4224 = vmatpush1.bf16.msra.mxu1 %v4223_v32  ;;  %4034 = vmatprep.subr.bf16.mxu0 %v4033_v33  ;;  %v129_v32 = vld [vmem:[#allocation4 + $0x30] sm:$0xff]  ;;  %v4437_v33 = vpack.c.bf16 %v138_v26, %v130_v25  ;;  %v4247_v40 = vpack.c.bf16 %v135_v31, %v127_v30  ;;  %v208_v26 = vld [vmem:[#allocation4 + $0x2a8] sm:$0xff]  ;;  %v247_v62 = vld [vmem:[#allocation4 + $0x3e0] sm:$0xff] }
 0x109   :  { %4226 = vmatprep.subr.bf16.mxu1 %v4225_v37  ;;  %v146_v37 = vld [vmem:[#allocation4 + $0xb8] sm:$0xff]  ;;  %v4439_v41 = vpack.c.bf16 %v137_v34, %v129_v32  ;;  %v201_v25 = vld [vmem:[#allocation4 + $0x270] sm:$0xff]  ;;  %v116_v30 = vld [vmem:[#allocation2 + $0xe8] sm:$0xff] }
 0x10a   :  { %v4441_v46 = vpack.c.bf16 %v154_v38, %v146_v37  ;;  %v115_v32 = vld [vmem:[#allocation2 + $0xe0] sm:$0xff]  ;;  %v209_v37 = vld [vmem:[#allocation4 + $0x2b0] sm:$0xff] }
 0x10b   :  { %4036 = vmatpush1.bf16.msra.mxu0 %v4035_v43  ;;  %v143_v43 = vld [vmem:[#allocation4 + $0xa0] sm:$0xff] }
 0x10c   :  { %4228 = vmatpush1.bf16.msra.mxu1 %v4227_v44  ;;  %4038 = vmatprep.subr.bf16.mxu0 %v4037_v45  ;;  %v151_v44 = vld [vmem:[#allocation4 + $0xe0] sm:$0xff]  ;;  %v145_v45 = vld [vmem:[#allocation4 + $0xb0] sm:$0xff] }
 0x10d   :  { %4230 = vmatprep.subr.bf16.mxu1 %v4229_v49  ;;  %v168_v49 = vld [vmem:[#allocation4 + $0x168] sm:$0xff]  ;;  %v4251_v53 = vpack.c.bf16 %v151_v44, %v143_v43  ;;  %v234_v43 = vld [vmem:[#allocation4 + $0x378] sm:$0xff] }
 0x10e   :  { %v122_v44 = vld [vmem:[#allocation2 + $0x118] sm:$0xff] }
 0x10f   :  { %4040 = vmatpush1.bf16.msra.mxu0 %v4039_v55  ;;  %v4443_v55 = vpack.c.bf16 %v153_v47, %v145_v45  ;;  %v4267_v45 = vpack.c.bf16 %v215_v36, %v207_v35  ;;  %v295_v35 = vld [vmem:[#allocation4 + $0x560] sm:$0xff]  ;;  %v289_v36 = vld [vmem:[#allocation4 + $0x530] sm:$0xff] }
 0x110   :  { %4232 = vmatpush1.bf16.msra.mxu1 %v4231_v56  ;;  %4042 = vmatprep.subr.bf16.mxu0 %v4041_v57  ;;  %v4253_v56 = vpack.c.bf16 %v168_v49, %v160_v48  ;;  %v159_v57 = vld [vmem:[#allocation4 + $0x120] sm:$0xff] }
 0x111   :  { %4234 = vmatprep.subr.bf16.mxu1 %v4233_v61  ;;  %v169_v61 = vld [vmem:[#allocation4 + $0x170] sm:$0xff]  ;;  %v223_v49 = vld [vmem:[#allocation4 + $0x320] sm:$0xff] }
 0x113   :  { %4044 = vmatpush1.bf16.msra.mxu0 %v4043_v3  ;;  %v4255_v3 = vpack.c.bf16 %v167_v58, %v159_v57  ;;  %v250_v57 = vld [vmem:[#allocation4 + $0x3f8] sm:$0xff]  ;;  %v4271_v58 = vpack.c.bf16 %v231_v50, %v223_v49  ;;  %v313_v50 = vld [vmem:[#allocation4 + $0x5f0] sm:$0xff] }
 0x114   :  { %4236 = vmatpush1.bf16.msra.mxu1 %v4235_v4  ;;  %4046 = vmatprep.subr.bf16.mxu0 %v4045_v5  ;;  %v103_v4 = vld [vmem:[#allocation2 + $0x80] sm:$0xff]  ;;  %v4447_v5 = vpack.c.bf16 %v169_v61, %v161_v59 }
 0x115   :  { %4238 = vmatprep.subr.bf16.mxu1 %v4237_v9  ;;  %v177_v9 = vld [vmem:[#allocation4 + $0x1b0] sm:$0xff]  ;;  %v239_v61 = vld [vmem:[#allocation4 + $0x3a0] sm:$0xff] }
 0x116   :  { %v4451_v19 = vpack.c.bf16 %v185_v11, %v177_v9  ;;  %v263_v11 = vld [vmem:[#allocation4 + $0x460] sm:$0xff] }
 0x117   :  { %4048 = vmatpush1.bf16.msra.mxu0 %v4047_v15  ;;  %v202_v15 = vld [vmem:[#allocation4 + $0x278] sm:$0xff] }
 0x118   :  { %4240 = vmatpush1.bf16.msra.mxu1 %v4239_v16  ;;  %4050 = vmatprep.subr.bf16.mxu0 %v4049_v17  ;;  %v110_v16 = vld [vmem:[#allocation2 + $0xb8] sm:$0xff]  ;;  %v4259_v17 = vpack.c.bf16 %v183_v8, %v175_v7  ;;  %v4453_v24 = vpack.c.bf16 %v202_v15, %v194_v14  ;;  %v4275_v7 = vpack.c.bf16 %v247_v62, %v239_v61  ;;  %v265_v14 = vld [vmem:[#allocation4 + $0x470] sm:$0xff]  ;;  %v272_v15 = vld [vmem:[#allocation4 + $0x4a8] sm:$0xff] }
 0x119   :  { %4242 = vmatprep.subr.bf16.mxu1 %v4241_v21  ;;  %v191_v21 = vld [vmem:[#allocation4 + $0x220] sm:$0xff]  ;;  %v4467_v8 = vpack.c.bf16 %v249_v1, %v241_v63  ;;  %v329_v62 = vld [vmem:[#allocation4 + $0x670] sm:$0xff]  ;;  %v336_v63 = vld [vmem:[#allocation4 + $0x6a8] sm:$0xff] }
 0x11a   :  { %v4263_v31 = vpack.c.bf16 %v199_v22, %v191_v21  ;;  %v271_v22 = vld [vmem:[#allocation4 + $0x4a0] sm:$0xff]  ;;  %v338_v1 = vld [vmem:[#allocation4 + $0x6b8] sm:$0xff] }
 0x11b   :  { %4052 = vmatpush1.bf16.msra.mxu0 %v4051_v27  ;;  %v216_v27 = vld [vmem:[#allocation4 + $0x2e8] sm:$0xff] }
 0x11c   :  { %4244 = vmatpush1.bf16.msra.mxu1 %v4243_v28  ;;  %4246 = vmatprep.subr.bf16.mxu0 %v4245_v29  ;;  %v210_v28 = vld [vmem:[#allocation4 + $0x2b8] sm:$0xff]  ;;  %v4265_v34 = vpack.c.bf16 %v216_v27, %v208_v26  ;;  %v281_v26 = vld [vmem:[#allocation4 + $0x4f0] sm:$0xff]  ;;  %v288_v27 = vld [vmem:[#allocation4 + $0x528] sm:$0xff] }
 0x11d   :  { %4438 = vmatprep.subr.bf16.mxu1 %v4437_v33  ;;  %v218_v29 = vld [vmem:[#allocation4 + $0x2f8] sm:$0xff]  ;;  %v4455_v33 = vpack.c.bf16 %v201_v25, %v193_v23  ;;  %v279_v23 = vld [vmem:[#allocation4 + $0x4e0] sm:$0xff] }
 0x11e   :  { %1200 = vmatmul.mubr.f32.vlgmr.msra.gmra.mrb[0].mxu0 %v91_v39  ;;  %v4457_v38 = vpack.c.bf16 %v218_v29, %v210_v28  ;;  %v296_v28 = vld [vmem:[#allocation4 + $0x568] sm:$0xff]  ;;  %v290_v29 = vld [vmem:[#allocation4 + $0x538] sm:$0xff] }
 0x11f   :  { %1503 = vmatmul.mubr.f32.vlgmr.msra.gmra.mrb[0].mxu1 %v91_v39  ;;  %4248 = vmatpush1.bf16.msra.mxu0 %v4247_v40  ;;  %v217_v39 = vld [vmem:[#allocation4 + $0x2f0] sm:$0xff]  ;;  %v224_v40 = vld [vmem:[#allocation4 + $0x328] sm:$0xff] }
 0x120   :  { %4440 = vmatpush1.bf16.msra.mxu1 %v4439_v41  ;;  %4250 = vmatprep.subr.bf16.mxu0 %v4249_v42  ;;  %v232_v41 = vld [vmem:[#allocation4 + $0x368] sm:$0xff]  ;;  %v226_v42 = vld [vmem:[#allocation4 + $0x338] sm:$0xff]  ;;  %v4459_v47 = vpack.c.bf16 %v217_v39, %v209_v37 }
 0x121   :  { %4442 = vmatprep.subr.bf16.mxu1 %v4441_v46  ;;  %1205 = vmatprep.mubr.f32.mxu0 %v98_v52  ;;  %v121_v46 = vld [vmem:[#allocation2 + $0x110] sm:$0xff]  ;;  %v4269_v48 = vpack.c.bf16 %v232_v41, %v224_v40  ;;  %v304_v39 = vld [vmem:[#allocation4 + $0x5a8] sm:$0xff]  ;;  %v306_v41 = vld [vmem:[#allocation4 + $0x5b8] sm:$0xff] }
 0x122   :  { %1508 = vmatprep.mubr.f32.mxu1 %v98_v52  ;;  %1206 = vmatmul.mubr.f32.gmra.mrb[2].mxu0 %v97_v54  ;;  %v4461_v52 = vpack.c.bf16 %v234_v43, %v226_v42  ;;  %v312_v40 = vld [vmem:[#allocation4 + $0x5e8] sm:$0xff]  ;;  %v314_v42 = vld [vmem:[#allocation4 + $0x5f8] sm:$0xff] }
 0x123   :  { %4252 = vmatpush1.bf16.msra.mxu0 %v4251_v53  ;;  %1509 = vmatmul.mubr.f32.gmra.mrb[2].mxu1 %v97_v54  ;;  %v233_v53 = vld [vmem:[#allocation4 + $0x370] sm:$0xff]  ;;  %v240_v54 = vld [vmem:[#allocation4 + $0x3a8] sm:$0xff]  ;;  %v4481_v49 = vpack.c.bf16 %v314_v42, %v306_v41  ;;  %v383_v42 = vld [vmem:[#allocation4 + $0x820] sm:$0xff] }
 0x124   :  { %4444 = vmatpush1.bf16.msra.mxu1 %v4443_v55  ;;  %4254 = vmatprep.subr.bf16.mxu0 %v4253_v56  ;;  %v248_v55 = vld [vmem:[#allocation4 + $0x3e8] sm:$0xff]  ;;  %v242_v56 = vld [vmem:[#allocation4 + $0x3b8] sm:$0xff]  ;;  %v4463_v59 = vpack.c.bf16 %v233_v53, %v225_v51 }
 0x125   :  { %4446 = vmatprep.subr.bf16.mxu1 %v4445_v60  ;;  %1211 = vmatprep.mubr.f32.mxu0 %v104_v2  ;;  %v4273_v60 = vpack.c.bf16 %v248_v55, %v240_v54  ;;  %v4465_v0 = vpack.c.bf16 %v250_v57, %v242_v56  ;;  %v320_v51 = vld [vmem:[#allocation4 + $0x628] sm:$0xff]  ;;  %v322_v53 = vld [vmem:[#allocation4 + $0x638] sm:$0xff] }
 0x126   :  { %1514 = vmatprep.mubr.f32.mxu1 %v104_v2  ;;  %1212 = vmatmul.mubr.f32.gmra.mrb[4].mxu0 %v103_v4  ;;  %v256_v2 = vld [vmem:[#allocation4 + $0x428] sm:$0xff]  ;;  %v330_v54 = vld [vmem:[#allocation4 + $0x678] sm:$0xff] }
 0x127   :  { %4256 = vmatpush1.bf16.msra.mxu0 %v4255_v3  ;;  %1515 = vmatmul.mubr.f32.gmra.mrb[4].mxu1 %v103_v4  ;;  %v264_v3 = vld [vmem:[#allocation4 + $0x468] sm:$0xff]  ;;  %v4485_v61 = vpack.c.bf16 %v330_v54, %v322_v53  ;;  %v399_v54 = vld [vmem:[#allocation4 + $0x8a0] sm:$0xff] }
 0x128   :  { %4448 = vmatpush1.bf16.msra.mxu1 %v4447_v5  ;;  %4258 = vmatprep.subr.bf16.mxu0 %v4257_v6  ;;  %v5839_v4 = vld [vmem:[#allocation2 + $0x8] sm:$0xff]  ;;  %v258_v5 = vld [vmem:[#allocation4 + $0x438] sm:$0xff]  ;;  %v4277_v9 = vpack.c.bf16 %v264_v3, %v256_v2 }
 0x129   :  { %4450 = vmatprep.subr.bf16.mxu1 %v4449_v10  ;;  %1217 = vmatprep.mubr.f32.mxu0 %v110_v16  ;;  %v266_v6 = vld [vmem:[#allocation4 + $0x478] sm:$0xff]  ;;  %v255_v10 = vld [vmem:[#allocation4 + $0x420] sm:$0xff] }
 0x12a   :  { %1520 = vmatprep.mubr.f32.mxu1 %v110_v16  ;;  %1218 = vmatmul.mubr.f32.gmra.mrb[6].mxu0 %v109_v18  ;;  %v4469_v13 = vpack.c.bf16 %v266_v6, %v258_v5  ;;  %v280_v16 = vld [vmem:[#allocation4 + $0x4e8] sm:$0xff]  ;;  %v346_v2 = vld [vmem:[#allocation4 + $0x6f8] sm:$0xff]  ;;  %v335_v6 = vld [vmem:[#allocation4 + $0x6a0] sm:$0xff] }
 0x12b   :  { %4260 = vmatpush1.bf16.msra.mxu0 %v4259_v17  ;;  %1521 = vmatmul.mubr.f32.gmra.mrb[6].mxu1 %v109_v18  ;;  %v274_v17 = vld [vmem:[#allocation4 + $0x4b8] sm:$0xff]  ;;  %v4281_v21 = vpack.c.bf16 %v280_v16, %v272_v15 }
 0x12c   :  { %4452 = vmatpush1.bf16.msra.mxu1 %v4451_v19  ;;  %4262 = vmatprep.subr.bf16.mxu0 %v4261_v20  ;;  %v282_v18 = vld [vmem:[#allocation4 + $0x4f8] sm:$0xff]  ;;  %v4279_v19 = vpack.c.bf16 %v263_v11, %v255_v10  ;;  %v4471_v20 = vpack.c.bf16 %v265_v14, %v257_v12  ;;  %v345_v10 = vld [vmem:[#allocation4 + $0x6f0] sm:$0xff]  ;;  %v352_v11 = vld [vmem:[#allocation4 + $0x728] sm:$0xff] }
 0x12d   :  { %4454 = vmatprep.subr.bf16.mxu1 %v4453_v24  ;;  %1223 = vmatprep.mubr.f32.mxu0 %v116_v30  ;;  %v273_v24 = vld [vmem:[#allocation4 + $0x4b0] sm:$0xff]  ;;  %v4473_v25 = vpack.c.bf16 %v282_v18, %v274_v17  ;;  %v360_v12 = vld [vmem:[#allocation4 + $0x768] sm:$0xff]  ;;  %v362_v14 = vld [vmem:[#allocation4 + $0x778] sm:$0xff] }
 0x12e   :  { %1526 = vmatprep.mubr.f32.mxu1 %v116_v30  ;;  %1224 = vmatmul.mubr.f32.gmra.mrb[8].mxu0 %v115_v32  ;;  %v298_v30 = vld [vmem:[#allocation4 + $0x578] sm:$0xff]  ;;  %v4301_v17 = vpack.c.bf16 %v360_v12, %v352_v11  ;;  %v351_v18 = vld [vmem:[#allocation4 + $0x720] sm:$0xff] }
 0x12f   :  { %4264 = vmatpush1.bf16.msra.mxu0 %v4263_v31  ;;  %1527 = vmatmul.mubr.f32.gmra.mrb[8].mxu1 %v115_v32  ;;  %v4283_v31 = vpack.c.bf16 %v279_v23, %v271_v22  ;;  %v4475_v32 = vpack.c.bf16 %v281_v26, %v273_v24  ;;  %v4477_v37 = vpack.c.bf16 %v298_v30, %v290_v29  ;;  %v361_v22 = vld [vmem:[#allocation4 + $0x770] sm:$0xff]  ;;  %v368_v23 = vld [vmem:[#allocation4 + $0x7a8] sm:$0xff]  ;;  %v378_v26 = vld [vmem:[#allocation4 + $0x7f8] sm:$0xff] }
 0x130   :  { %4456 = vmatpush1.bf16.msra.mxu1 %v4455_v33  ;;  %4266 = vmatprep.subr.bf16.mxu0 %v4265_v34  ;;  %v4285_v33 = vpack.c.bf16 %v296_v28, %v288_v27  ;;  %v287_v34 = vld [vmem:[#allocation4 + $0x520] sm:$0xff]  ;;  %v376_v24 = vld [vmem:[#allocation4 + $0x7e8] sm:$0xff]  ;;  %v434_v11 = vld [vmem:[#allocation4 + $0x9b8] sm:$0xff] }
 0x131   :  { %4458 = vmatprep.subr.bf16.mxu1 %v4457_v38  ;;  %1229 = vmatprep.mubr.f32.mxu0 %v122_v44  ;;  %v297_v38 = vld [vmem:[#allocation4 + $0x570] sm:$0xff]  ;;  %v4287_v43 = vpack.c.bf16 %v295_v35, %v287_v34  ;;  %v4305_v29 = vpack.c.bf16 %v376_v24, %v368_v23  ;;  %v367_v30 = vld [vmem:[#allocation4 + $0x7a0] sm:$0xff]  ;;  %v384_v35 = vld [vmem:[#allocation4 + $0x828] sm:$0xff] }
 0x132   :  { %1532 = vmatprep.mubr.f32.mxu1 %v122_v44  ;;  %1230 = vmatmul.mubr.f32.gmra.mrb[10].mxu0 %v121_v46  ;;  %v4479_v44 = vpack.c.bf16 %v297_v38, %v289_v36  ;;  %v377_v34 = vld [vmem:[#allocation4 + $0x7f0] sm:$0xff]  ;;  %v392_v36 = vld [vmem:[#allocation4 + $0x868] sm:$0xff]  ;;  %v394_v38 = vld [vmem:[#allocation4 + $0x878] sm:$0xff] }
 0x133   :  { %4268 = vmatpush1.bf16.msra.mxu0 %v4267_v45  ;;  %1533 = vmatmul.mubr.f32.gmra.mrb[10].mxu1 %v121_v46  ;;  %v4289_v45 = vpack.c.bf16 %v312_v40, %v304_v39  ;;  %v303_v46 = vld [vmem:[#allocation4 + $0x5a0] sm:$0xff]  ;;  %v4309_v41 = vpack.c.bf16 %v392_v36, %v384_v35  ;;  %v442_v12 = vld [vmem:[#allocation4 + $0x9f8] sm:$0xff]  ;;  %v456_v23 = vld [vmem:[#allocation4 + $0xa68] sm:$0xff] }
 0x134   :  { %4460 = vmatpush1.bf16.msra.mxu1 %v4459_v47  ;;  %4270 = vmatprep.subr.bf16.mxu0 %v4269_v48  ;;  %v311_v47 = vld [vmem:[#allocation4 + $0x5e0] sm:$0xff]  ;;  %v305_v48 = vld [vmem:[#allocation4 + $0x5b0] sm:$0xff]  ;;  %v5843_v24 = vld [vmem:[#allocation2 + $0x68] sm:$0xff] }
 0x135   :  { %4462 = vmatprep.subr.bf16.mxu1 %v4461_v52  ;;  %1603 = vmatprep.mubr.f32.mxu0 %v5839_v4  ;;  %v328_v52 = vld [vmem:[#allocation4 + $0x668] sm:$0xff]  ;;  %v4291_v55 = vpack.c.bf16 %v311_v47, %v303_v46  ;;  %v4483_v56 = vpack.c.bf16 %v313_v50, %v305_v48  ;;  %v393_v46 = vld [vmem:[#allocation4 + $0x870] sm:$0xff]  ;;  %v410_v50 = vld [vmem:[#allocation4 + $0x8f8] sm:$0xff] }
 0x136   :  { %1906 = vmatprep.mubr.f32.mxu1 %v5839_v4  ;;  %v4293_v57 = vpack.c.bf16 %v328_v52, %v320_v51  ;;  %v400_v47 = vld [vmem:[#allocation4 + $0x8a8] sm:$0xff]  ;;  %v457_v35 = vld [vmem:[#allocation4 + $0xa70] sm:$0xff] }
 0x137   :  { %4272 = vmatpush1.bf16.msra.mxu0 %v4271_v58  ;;  %v319_v58 = vld [vmem:[#allocation4 + $0x620] sm:$0xff]  ;;  %v408_v48 = vld [vmem:[#allocation4 + $0x8e8] sm:$0xff] }
 0x138   :  { %4464 = vmatpush1.bf16.msra.mxu1 %v4463_v59  ;;  %4274 = vmatprep.subr.bf16.mxu0 %v4273_v60  ;;  %v327_v59 = vld [vmem:[#allocation4 + $0x660] sm:$0xff]  ;;  %v321_v60 = vld [vmem:[#allocation4 + $0x630] sm:$0xff]  ;;  %v4313_v53 = vpack.c.bf16 %v408_v48, %v400_v47  ;;  %v464_v36 = vld [vmem:[#allocation4 + $0xaa8] sm:$0xff] }
 0x139   :  { %4466 = vmatprep.subr.bf16.mxu1 %v4465_v0  ;;  %v344_v0 = vld [vmem:[#allocation4 + $0x6e8] sm:$0xff]  ;;  %v4295_v3 = vpack.c.bf16 %v327_v59, %v319_v58  ;;  %v4487_v4 = vpack.c.bf16 %v329_v62, %v321_v60  ;;  %v409_v58 = vld [vmem:[#allocation4 + $0x8f0] sm:$0xff]  ;;  %v418_v62 = vld [vmem:[#allocation4 + $0x938] sm:$0xff] }
 0x13a   :  { %v4297_v5 = vpack.c.bf16 %v344_v0, %v336_v63  ;;  %v416_v59 = vld [vmem:[#allocation4 + $0x928] sm:$0xff]  ;;  %v426_v63 = vld [vmem:[#allocation4 + $0x978] sm:$0xff]  ;;  %v465_v47 = vld [vmem:[#allocation4 + $0xab0] sm:$0xff] }
 0x13b   :  { %4276 = vmatpush1.bf16.msra.mxu0 %v4275_v7  ;;  %v343_v7 = vld [vmem:[#allocation4 + $0x6e0] sm:$0xff]  ;;  %v424_v60 = vld [vmem:[#allocation4 + $0x968] sm:$0xff] }
 0x13c   :  { %4468 = vmatpush1.bf16.msra.mxu1 %v4467_v8  ;;  %4278 = vmatprep.subr.bf16.mxu0 %v4277_v9  ;;  %v337_v8 = vld [vmem:[#allocation4 + $0x6b0] sm:$0xff]  ;;  %v4489_v9 = vpack.c.bf16 %v346_v2, %v338_v1  ;;  %v4299_v15 = vpack.c.bf16 %v343_v7, %v335_v6  ;;  %v4317_v2 = vpack.c.bf16 %v424_v60, %v416_v59  ;;  %v479_v59 = vld [vmem:[#allocation4 + $0xb20] sm:$0xff] }
 0x13d   :  { %4470 = vmatprep.subr.bf16.mxu1 %v4469_v13  ;;  %v354_v13 = vld [vmem:[#allocation4 + $0x738] sm:$0xff]  ;;  %v4491_v16 = vpack.c.bf16 %v345_v10, %v337_v8  ;;  %v4509_v6 = vpack.c.bf16 %v426_v63, %v418_v62  ;;  %v425_v7 = vld [vmem:[#allocation4 + $0x970] sm:$0xff]  ;;  %v432_v8 = vld [vmem:[#allocation4 + $0x9a8] sm:$0xff] }
 0x13e   :  { %v5841_v10 = vld [vmem:[#allocation2 + $0x38] sm:$0xff]  ;;  %v487_v60 = vld [vmem:[#allocation4 + $0xb60] sm:$0xff]  ;;  %v489_v63 = vld [vmem:[#allocation4 + $0xb70] sm:$0xff] }
 0x13f   :  { %4280 = vmatpush1.bf16.msra.mxu0 %v4279_v19  ;;  %v359_v19 = vld [vmem:[#allocation4 + $0x760] sm:$0xff] }
 0x140   :  { %4472 = vmatpush1.bf16.msra.mxu1 %v4471_v20  ;;  %4282 = vmatprep.subr.bf16.mxu0 %v4281_v21  ;;  %v353_v20 = vld [vmem:[#allocation4 + $0x730] sm:$0xff]  ;;  %v4493_v21 = vpack.c.bf16 %v362_v14, %v354_v13  ;;  %v4303_v27 = vpack.c.bf16 %v359_v19, %v351_v18  ;;  %v439_v18 = vld [vmem:[#allocation4 + $0x9e0] sm:$0xff] }
 0x141   :  { %4474 = vmatprep.subr.bf16.mxu1 %v4473_v25  ;;  %v370_v25 = vld [vmem:[#allocation4 + $0x7b8] sm:$0xff]  ;;  %v4495_v28 = vpack.c.bf16 %v361_v22, %v353_v20  ;;  %v5842_v13 = vld [vmem:[#allocation2 + $0x30] sm:$0xff]  ;;  %v4513_v20 = vpack.c.bf16 %v442_v12, %v434_v11  ;;  %v448_v22 = vld [vmem:[#allocation4 + $0xa28] sm:$0xff] }
 0x142   :  { %v433_v19 = vld [vmem:[#allocation4 + $0x9b0] sm:$0xff] }
 0x143   :  { %4284 = vmatpush1.bf16.msra.mxu0 %v4283_v31  ;;  %v375_v31 = vld [vmem:[#allocation4 + $0x7e0] sm:$0xff]  ;;  %v497_v11 = vld [vmem:[#allocation4 + $0xbb0] sm:$0xff] }
 0x144   :  { %4476 = vmatpush1.bf16.msra.mxu1 %v4475_v32  ;;  %4286 = vmatprep.subr.bf16.mxu0 %v4285_v33  ;;  %v369_v32 = vld [vmem:[#allocation4 + $0x7b0] sm:$0xff]  ;;  %v4497_v33 = vpack.c.bf16 %v378_v26, %v370_v25  ;;  %v4307_v39 = vpack.c.bf16 %v375_v31, %v367_v30  ;;  %v450_v25 = vld [vmem:[#allocation4 + $0xa38] sm:$0xff]  ;;  %v4325_v30 = vpack.c.bf16 %v456_v23, %v448_v22  ;;  %v447_v31 = vld [vmem:[#allocation4 + $0xa20] sm:$0xff] }
 0x145   :  { %4478 = vmatprep.subr.bf16.mxu1 %v4477_v37  ;;  %v386_v37 = vld [vmem:[#allocation4 + $0x838] sm:$0xff]  ;;  %v4499_v40 = vpack.c.bf16 %v377_v34, %v369_v32  ;;  %v455_v32 = vld [vmem:[#allocation4 + $0xa60] sm:$0xff] }
 0x146   :  { %v458_v26 = vld [vmem:[#allocation4 + $0xa78] sm:$0xff]  ;;  %v511_v22 = vld [vmem:[#allocation4 + $0xc20] sm:$0xff] }
 0x147   :  { %4288 = vmatpush1.bf16.msra.mxu0 %v4287_v43  ;;  %v391_v43 = vld [vmem:[#allocation4 + $0x860] sm:$0xff]  ;;  %v4517_v34 = vpack.c.bf16 %v458_v26, %v450_v25  ;;  %v521_v26 = vld [vmem:[#allocation4 + $0xc70] sm:$0xff] }
 0x148   :  { %4480 = vmatpush1.bf16.msra.mxu1 %v4479_v44  ;;  %4290 = vmatprep.subr.bf16.mxu0 %v4289_v45  ;;  %v385_v44 = vld [vmem:[#allocation4 + $0x830] sm:$0xff]  ;;  %v4501_v45 = vpack.c.bf16 %v394_v38, %v386_v37  ;;  %v4311_v51 = vpack.c.bf16 %v391_v43, %v383_v42  ;;  %v472_v37 = vld [vmem:[#allocation4 + $0xae8] sm:$0xff]  ;;  %v5845_v38 = vld [vmem:[#allocation2 + $0x98] sm:$0xff]  ;;  %v4327_v42 = vpack.c.bf16 %v455_v32, %v447_v31 }
 0x149   :  { %4482 = vmatprep.subr.bf16.mxu1 %v4481_v49  ;;  %v402_v49 = vld [vmem:[#allocation4 + $0x8b8] sm:$0xff]  ;;  %v4503_v52 = vpack.c.bf16 %v393_v46, %v385_v44  ;;  %v4329_v44 = vpack.c.bf16 %v472_v37, %v464_v36  ;;  %v471_v46 = vld [vmem:[#allocation4 + $0xae0] sm:$0xff]  ;;  %v529_v36 = vld [vmem:[#allocation4 + $0xcb0] sm:$0xff] }
 0x14a   :  { %v519_v23 = vld [vmem:[#allocation4 + $0xc60] sm:$0xff] }
 0x14b   :  { %4292 = vmatpush1.bf16.msra.mxu0 %v4291_v55  ;;  %v407_v55 = vld [vmem:[#allocation4 + $0x8e0] sm:$0xff]  ;;  %v4343_v31 = vpack.c.bf16 %v519_v23, %v511_v22  ;;  %v601_v22 = vld [vmem:[#allocation4 + $0xef0] sm:$0xff]  ;;  %v608_v23 = vld [vmem:[#allocation4 + $0xf28] sm:$0xff] }
 0x14c   :  { %4484 = vmatpush1.bf16.msra.mxu1 %v4483_v56  ;;  %4294 = vmatprep.subr.bf16.mxu0 %v4293_v57  ;;  %v401_v56 = vld [vmem:[#allocation4 + $0x8b0] sm:$0xff]  ;;  %v4505_v57 = vpack.c.bf16 %v410_v50, %v402_v49  ;;  %v4315_v0 = vpack.c.bf16 %v407_v55, %v399_v54  ;;  %v480_v50 = vld [vmem:[#allocation4 + $0xb28] sm:$0xff]  ;;  %v490_v54 = vld [vmem:[#allocation4 + $0xb78] sm:$0xff] }
 0x14d   :  { %4486 = vmatprep.subr.bf16.mxu1 %v4485_v61  ;;  %v5840_v61 = vld [vmem:[#allocation2] sm:$0xff]  ;;  %v4507_v1 = vpack.c.bf16 %v409_v58, %v401_v56  ;;  %v473_v49 = vld [vmem:[#allocation4 + $0xaf0] sm:$0xff] }
 0x14e   :  { %v5848_v55 = vld [vmem:[#allocation2 + $0xc0] sm:$0xff] }
 0x14f   :  { %4296 = vmatpush1.bf16.msra.mxu0 %v4295_v3  ;;  %v415_v3 = vld [vmem:[#allocation4 + $0x920] sm:$0xff] }
 0x150   :  { %4488 = vmatpush1.bf16.msra.mxu1 %v4487_v4  ;;  %4298 = vmatprep.subr.bf16.mxu0 %v4297_v5  ;;  %v423_v4 = vld [vmem:[#allocation4 + $0x960] sm:$0xff]  ;;  %v417_v5 = vld [vmem:[#allocation4 + $0x930] sm:$0xff] }
 0x151   :  { %4490 = vmatprep.subr.bf16.mxu1 %v4489_v9  ;;  %v440_v9 = vld [vmem:[#allocation4 + $0x9e8] sm:$0xff]  ;;  %v4319_v14 = vpack.c.bf16 %v423_v4, %v415_v3  ;;  %v498_v3 = vld [vmem:[#allocation4 + $0xbb8] sm:$0xff] }
 0x152   :  { %v506_v4 = vld [vmem:[#allocation4 + $0xbf8] sm:$0xff] }
 0x153   :  { %4300 = vmatpush1.bf16.msra.mxu0 %v4299_v15  ;;  %v4511_v15 = vpack.c.bf16 %v425_v7, %v417_v5  ;;  %v5850_v5 = vld [vmem:[#allocation2 + $0xf0] sm:$0xff]  ;;  %v4529_v12 = vpack.c.bf16 %v506_v4, %v498_v3 }
 0x154   :  { %4492 = vmatpush1.bf16.msra.mxu1 %v4491_v16  ;;  %4302 = vmatprep.subr.bf16.mxu0 %v4301_v17  ;;  %v4321_v16 = vpack.c.bf16 %v440_v9, %v432_v8  ;;  %v431_v17 = vld [vmem:[#allocation4 + $0x9a0] sm:$0xff] }
 0x155   :  { %4494 = vmatprep.subr.bf16.mxu1 %v4493_v21  ;;  %v441_v21 = vld [vmem:[#allocation4 + $0x9f0] sm:$0xff]  ;;  %v495_v9 = vld [vmem:[#allocation4 + $0xba0] sm:$0xff] }
 0x157   :  { %4304 = vmatpush1.bf16.msra.mxu0 %v4303_v27  ;;  %v5844_v27 = vld [vmem:[#allocation2 + $0x60] sm:$0xff] }
 0x158   :  { %4496 = vmatpush1.bf16.msra.mxu1 %v4495_v28  ;;  %4306 = vmatprep.subr.bf16.mxu0 %v4305_v29  ;;  %v4323_v28 = vpack.c.bf16 %v439_v18, %v431_v17  ;;  %v4515_v29 = vpack.c.bf16 %v441_v21, %v433_v19  ;;  %v514_v17 = vld [vmem:[#allocation4 + $0xc38] sm:$0xff] }
 0x159   :  { %4498 = vmatprep.subr.bf16.mxu1 %v4497_v33  ;;  %v449_v33 = vld [vmem:[#allocation4 + $0xa30] sm:$0xff]  ;;  %v522_v18 = vld [vmem:[#allocation4 + $0xc78] sm:$0xff] }
 0x15a   :  { %v4519_v43 = vpack.c.bf16 %v457_v35, %v449_v33  ;;  %v4533_v25 = vpack.c.bf16 %v522_v18, %v514_v17  ;;  %v535_v35 = vld [vmem:[#allocation4 + $0xce0] sm:$0xff] }
 0x15b   :  { %4308 = vmatpush1.bf16.msra.mxu0 %v4307_v39  ;;  %v466_v39 = vld [vmem:[#allocation4 + $0xab8] sm:$0xff]  ;;  %v591_v18 = vld [vmem:[#allocation4 + $0xea0] sm:$0xff] }
 0x15c   :  { %4500 = vmatpush1.bf16.msra.mxu1 %v4499_v40  ;;  %4310 = vmatprep.subr.bf16.mxu0 %v4309_v41  ;;  %v474_v40 = vld [vmem:[#allocation4 + $0xaf8] sm:$0xff]  ;;  %v5846_v41 = vld [vmem:[#allocation2 + $0x90] sm:$0xff] }
 0x15d   :  { %4502 = vmatprep.subr.bf16.mxu1 %v4501_v45  ;;  %v463_v45 = vld [vmem:[#allocation4 + $0xaa0] sm:$0xff]  ;;  %v4521_v48 = vpack.c.bf16 %v474_v40, %v466_v39  ;;  %v544_v39 = vld [vmem:[#allocation4 + $0xd28] sm:$0xff] }
 0x15e   :  { %1604 = vmatmul.mubr.f32.vlgmr.msra.gmra.mrb[12].mxu0 %v5840_v61  ;;  %v4331_v56 = vpack.c.bf16 %v471_v46, %v463_v45  ;;  %v552_v40 = vld [vmem:[#allocation4 + $0xd68] sm:$0xff]  ;;  %v543_v46 = vld [vmem:[#allocation4 + $0xd20] sm:$0xff] }
 0x15f   :  { %4312 = vmatpush1.bf16.msra.mxu0 %v4311_v51  ;;  %1907 = vmatmul.mubr.f32.vlgmr.msra.gmra.mrb[12].mxu1 %v5840_v61  ;;  %v488_v51 = vld [vmem:[#allocation4 + $0xb68] sm:$0xff]  ;;  %v481_v61 = vld [vmem:[#allocation4 + $0xb30] sm:$0xff]  ;;  %v4349_v45 = vpack.c.bf16 %v552_v40, %v544_v39 }
 0x160   :  { %4504 = vmatpush1.bf16.msra.mxu1 %v4503_v52  ;;  %4314 = vmatprep.subr.bf16.mxu0 %v4313_v53  ;;  %v5847_v52 = vld [vmem:[#allocation2 + $0xc8] sm:$0xff]  ;;  %v482_v53 = vld [vmem:[#allocation4 + $0xb38] sm:$0xff]  ;;  %v4333_v58 = vpack.c.bf16 %v488_v51, %v480_v50  ;;  %v4527_v7 = vpack.c.bf16 %v489_v63, %v481_v61  ;;  %v553_v50 = vld [vmem:[#allocation4 + $0xd70] sm:$0xff] }
 0x161   :  { %4506 = vmatprep.subr.bf16.mxu1 %v4505_v57  ;;  %1609 = vmatprep.mubr.f32.mxu0 %v5841_v10  ;;  %v4523_v57 = vpack.c.bf16 %v473_v49, %v465_v47  ;;  %v4525_v62 = vpack.c.bf16 %v490_v54, %v482_v53  ;;  %v551_v47 = vld [vmem:[#allocation4 + $0xd60] sm:$0xff]  ;;  %v560_v51 = vld [vmem:[#allocation4 + $0xda8] sm:$0xff]  ;;  %v562_v53 = vld [vmem:[#allocation4 + $0xdb8] sm:$0xff] }
 0x162   :  { %1912 = vmatprep.mubr.f32.mxu1 %v5841_v10  ;;  %1610 = vmatmul.mubr.f32.gmra.mrb[14].mxu0 %v5842_v13  ;;  %v503_v10 = vld [vmem:[#allocation4 + $0xbe0] sm:$0xff]  ;;  %v570_v54 = vld [vmem:[#allocation4 + $0xdf8] sm:$0xff]  ;;  %v576_v63 = vld [vmem:[#allocation4 + $0xe28] sm:$0xff] }
 0x163   :  { %4316 = vmatpush1.bf16.msra.mxu0 %v4315_v0  ;;  %1913 = vmatmul.mubr.f32.gmra.mrb[14].mxu1 %v5842_v13  ;;  %v496_v0 = vld [vmem:[#allocation4 + $0xba8] sm:$0xff]  ;;  %v505_v13 = vld [vmem:[#allocation4 + $0xbf0] sm:$0xff]  ;;  %v4339_v19 = vpack.c.bf16 %v503_v10, %v495_v9  ;;  %v4545_v61 = vpack.c.bf16 %v570_v54, %v562_v53  ;;  %v639_v54 = vld [vmem:[#allocation4 + $0x1020] sm:$0xff] }
 0x164   :  { %4508 = vmatpush1.bf16.msra.mxu1 %v4507_v1  ;;  %4318 = vmatprep.subr.bf16.mxu0 %v4317_v2  ;;  %v504_v1 = vld [vmem:[#allocation4 + $0xbe8] sm:$0xff]  ;;  %v5849_v2 = vld [vmem:[#allocation2 + $0xf8] sm:$0xff]  ;;  %v585_v10 = vld [vmem:[#allocation4 + $0xe70] sm:$0xff] }
 0x165   :  { %4510 = vmatprep.subr.bf16.mxu1 %v4509_v6  ;;  %1615 = vmatprep.mubr.f32.mxu0 %v5843_v24  ;;  %v4335_v6 = vpack.c.bf16 %v487_v60, %v479_v59  ;;  %v4337_v8 = vpack.c.bf16 %v504_v1, %v496_v0  ;;  %v567_v59 = vld [vmem:[#allocation4 + $0xde0] sm:$0xff]  ;;  %v561_v60 = vld [vmem:[#allocation4 + $0xdb0] sm:$0xff]  ;;  %v584_v0 = vld [vmem:[#allocation4 + $0xe68] sm:$0xff] }
 0x166   :  { %1918 = vmatprep.mubr.f32.mxu1 %v5843_v24  ;;  %1616 = vmatmul.mubr.f32.gmra.mrb[16].mxu0 %v5844_v27  ;;  %v513_v24 = vld [vmem:[#allocation4 + $0xc30] sm:$0xff]  ;;  %v578_v1 = vld [vmem:[#allocation4 + $0xe38] sm:$0xff] }
 0x167   :  { %4320 = vmatpush1.bf16.msra.mxu0 %v4319_v14  ;;  %1919 = vmatmul.mubr.f32.gmra.mrb[16].mxu1 %v5844_v27  ;;  %v512_v14 = vld [vmem:[#allocation4 + $0xc28] sm:$0xff]  ;;  %v4535_v32 = vpack.c.bf16 %v521_v26, %v513_v24  ;;  %v618_v26 = vld [vmem:[#allocation4 + $0xf78] sm:$0xff] }
 0x168   :  { %4512 = vmatpush1.bf16.msra.mxu1 %v4511_v15  ;;  %4322 = vmatprep.subr.bf16.mxu0 %v4321_v16  ;;  %v520_v15 = vld [vmem:[#allocation4 + $0xc68] sm:$0xff]  ;;  %v5851_v16 = vld [vmem:[#allocation2 + $0x18] sm:$0xff] }
 0x169   :  { %4514 = vmatprep.subr.bf16.mxu1 %v4513_v20  ;;  %1621 = vmatprep.mubr.f32.mxu0 %v5845_v38  ;;  %v4531_v20 = vpack.c.bf16 %v505_v13, %v497_v11  ;;  %v4341_v21 = vpack.c.bf16 %v520_v15, %v512_v14  ;;  %v528_v27 = vld [vmem:[#allocation4 + $0xca8] sm:$0xff]  ;;  %v594_v13 = vld [vmem:[#allocation4 + $0xeb8] sm:$0xff] }
 0x16a   :  { %1924 = vmatprep.mubr.f32.mxu1 %v5845_v38  ;;  %1622 = vmatmul.mubr.f32.gmra.mrb[18].mxu0 %v5846_v41  ;;  %v537_v38 = vld [vmem:[#allocation4 + $0xcf0] sm:$0xff]  ;;  %v592_v11 = vld [vmem:[#allocation4 + $0xea8] sm:$0xff]  ;;  %v602_v14 = vld [vmem:[#allocation4 + $0xef8] sm:$0xff] }
 0x16b   :  { %4324 = vmatpush1.bf16.msra.mxu0 %v4323_v28  ;;  %1925 = vmatmul.mubr.f32.gmra.mrb[18].mxu1 %v5846_v41  ;;  %v536_v28 = vld [vmem:[#allocation4 + $0xce8] sm:$0xff]  ;;  %v546_v41 = vld [vmem:[#allocation4 + $0xd38] sm:$0xff] }
 0x16c   :  { %4516 = vmatpush1.bf16.msra.mxu1 %v4515_v29  ;;  %4326 = vmatprep.subr.bf16.mxu0 %v4325_v30  ;;  %v530_v29 = vld [vmem:[#allocation4 + $0xcb8] sm:$0xff]  ;;  %v4345_v33 = vpack.c.bf16 %v536_v28, %v528_v27  ;;  %v616_v24 = vld [vmem:[#allocation4 + $0xf68] sm:$0xff] }
 0x16d   :  { %4518 = vmatprep.subr.bf16.mxu1 %v4517_v34  ;;  %1627 = vmatprep.mubr.f32.mxu0 %v5847_v52  ;;  %v538_v30 = vld [vmem:[#allocation4 + $0xcf8] sm:$0xff]  ;;  %v527_v34 = vld [vmem:[#allocation4 + $0xca0] sm:$0xff] }
 0x16e   :  { %1930 = vmatprep.mubr.f32.mxu1 %v5847_v52  ;;  %1628 = vmatmul.mubr.f32.gmra.mrb[20].mxu0 %v5848_v55  ;;  %v4537_v37 = vpack.c.bf16 %v538_v30, %v530_v29  ;;  %v568_v52 = vld [vmem:[#allocation4 + $0xde8] sm:$0xff]  ;;  %v4365_v29 = vpack.c.bf16 %v616_v24, %v608_v23  ;;  %v607_v30 = vld [vmem:[#allocation4 + $0xf20] sm:$0xff]  ;;  %v690_v23 = vld [vmem:[#allocation4 + $0x11b8] sm:$0xff] }
 0x16f   :  { %4328 = vmatpush1.bf16.msra.mxu0 %v4327_v42  ;;  %1931 = vmatmul.mubr.f32.gmra.mrb[20].mxu1 %v5848_v55  ;;  %v554_v42 = vld [vmem:[#allocation4 + $0xd78] sm:$0xff]  ;;  %v4351_v55 = vpack.c.bf16 %v551_v47, %v543_v46  ;;  %v633_v46 = vld [vmem:[#allocation4 + $0xff0] sm:$0xff]  ;;  %v640_v47 = vld [vmem:[#allocation4 + $0x1028] sm:$0xff] }
 0x170   :  { %4520 = vmatpush1.bf16.msra.mxu1 %v4519_v43  ;;  %4330 = vmatprep.subr.bf16.mxu0 %v4329_v44  ;;  %v4347_v43 = vpack.c.bf16 %v535_v35, %v527_v34  ;;  %v4539_v44 = vpack.c.bf16 %v537_v38, %v529_v36  ;;  %v4541_v49 = vpack.c.bf16 %v554_v42, %v546_v41  ;;  %v617_v34 = vld [vmem:[#allocation4 + $0xf70] sm:$0xff]  ;;  %v624_v35 = vld [vmem:[#allocation4 + $0xfa8] sm:$0xff]  ;;  %v634_v38 = vld [vmem:[#allocation4 + $0xff8] sm:$0xff] }
 0x171   :  { %4522 = vmatprep.subr.bf16.mxu1 %v4521_v48  ;;  %1633 = vmatprep.mubr.f32.mxu0 %v5849_v2  ;;  %v545_v48 = vld [vmem:[#allocation4 + $0xd30] sm:$0xff]  ;;  %v632_v36 = vld [vmem:[#allocation4 + $0xfe8] sm:$0xff]  ;;  %v623_v42 = vld [vmem:[#allocation4 + $0xfa0] sm:$0xff] }
 0x172   :  { %1936 = vmatprep.mubr.f32.mxu1 %v5849_v2  ;;  %1634 = vmatmul.mubr.f32.gmra.mrb[22].mxu0 %v5850_v5  ;;  %v586_v2 = vld [vmem:[#allocation4 + $0xe78] sm:$0xff]  ;;  %v4369_v41 = vpack.c.bf16 %v632_v36, %v624_v35  ;;  %v712_v35 = vld [vmem:[#allocation4 + $0x1268] sm:$0xff] }
 0x173   :  { %4332 = vmatpush1.bf16.msra.mxu0 %v4331_v56  ;;  %1937 = vmatmul.mubr.f32.gmra.mrb[22].mxu1 %v5850_v5  ;;  %v4543_v56 = vpack.c.bf16 %v553_v50, %v545_v48  ;;  %v4357_v5 = vpack.c.bf16 %v584_v0, %v576_v63  ;;  %v4549_v9 = vpack.c.bf16 %v586_v2, %v578_v1  ;;  %v648_v48 = vld [vmem:[#allocation4 + $0x1068] sm:$0xff]  ;;  %v650_v50 = vld [vmem:[#allocation4 + $0x1078] sm:$0xff]  ;;  %v655_v2 = vld [vmem:[#allocation4 + $0x10a0] sm:$0xff] }
 0x174   :  { %4524 = vmatpush1.bf16.msra.mxu1 %v4523_v57  ;;  %4334 = vmatprep.subr.bf16.mxu0 %v4333_v58  ;;  %v4353_v57 = vpack.c.bf16 %v568_v52, %v560_v51  ;;  %v559_v58 = vld [vmem:[#allocation4 + $0xda0] sm:$0xff]  ;;  %v4373_v53 = vpack.c.bf16 %v648_v48, %v640_v47  ;;  %v698_v24 = vld [vmem:[#allocation4 + $0x11f8] sm:$0xff]  ;;  %v713_v47 = vld [vmem:[#allocation4 + $0x1270] sm:$0xff] }
 0x175   :  { %4526 = vmatprep.subr.bf16.mxu1 %v4525_v62  ;;  %1704 = vmatprep.mubr.f32.mxu0 %v5851_v16  ;;  %v569_v62 = vld [vmem:[#allocation4 + $0xdf0] sm:$0xff]  ;;  %v4355_v3 = vpack.c.bf16 %v567_v59, %v559_v58  ;;  %v656_v59 = vld [vmem:[#allocation4 + $0x10a8] sm:$0xff]  ;;  %v5855_v36 = vld [vmem:[#allocation2 + $0x78] sm:$0xff] }
 0x176   :  { %2007 = vmatprep.mubr.f32.mxu1 %v5851_v16  ;;  %v4547_v4 = vpack.c.bf16 %v569_v62, %v561_v60  ;;  %v649_v58 = vld [vmem:[#allocation4 + $0x1070] sm:$0xff]  ;;  %v664_v60 = vld [vmem:[#allocation4 + $0x10e8] sm:$0xff]  ;;  %v666_v62 = vld [vmem:[#allocation4 + $0x10f8] sm:$0xff] }
 0x177   :  { %4336 = vmatpush1.bf16.msra.mxu0 %v4335_v6  ;;  %v575_v6 = vld [vmem:[#allocation4 + $0xe20] sm:$0xff]  ;;  %v4377_v1 = vpack.c.bf16 %v664_v60, %v656_v59  ;;  %v720_v48 = vld [vmem:[#allocation4 + $0x12a8] sm:$0xff]  ;;  %v721_v59 = vld [vmem:[#allocation4 + $0x12b0] sm:$0xff] }
 0x178   :  { %4528 = vmatpush1.bf16.msra.mxu1 %v4527_v7  ;;  %4338 = vmatprep.subr.bf16.mxu0 %v4337_v8  ;;  %v583_v7 = vld [vmem:[#allocation4 + $0xe60] sm:$0xff]  ;;  %v577_v8 = vld [vmem:[#allocation4 + $0xe30] sm:$0xff] }
 0x179   :  { %4530 = vmatprep.subr.bf16.mxu1 %v4529_v12  ;;  %v600_v12 = vld [vmem:[#allocation4 + $0xee8] sm:$0xff]  ;;  %v4359_v15 = vpack.c.bf16 %v583_v7, %v575_v6  ;;  %v4551_v16 = vpack.c.bf16 %v585_v10, %v577_v8  ;;  %v665_v6 = vld [vmem:[#allocation4 + $0x10f0] sm:$0xff]  ;;  %v674_v10 = vld [vmem:[#allocation4 + $0x1138] sm:$0xff] }
 0x17a   :  { %v4361_v17 = vpack.c.bf16 %v600_v12, %v592_v11  ;;  %v672_v7 = vld [vmem:[#allocation4 + $0x1128] sm:$0xff]  ;;  %v682_v11 = vld [vmem:[#allocation4 + $0x1178] sm:$0xff] }
 0x17b   :  { %4340 = vmatpush1.bf16.msra.mxu0 %v4339_v19  ;;  %v599_v19 = vld [vmem:[#allocation4 + $0xee0] sm:$0xff]  ;;  %v680_v8 = vld [vmem:[#allocation4 + $0x1168] sm:$0xff] }
 0x17c   :  { %4532 = vmatpush1.bf16.msra.mxu1 %v4531_v20  ;;  %4342 = vmatprep.subr.bf16.mxu0 %v4341_v21  ;;  %v593_v20 = vld [vmem:[#allocation4 + $0xeb0] sm:$0xff]  ;;  %v4553_v21 = vpack.c.bf16 %v602_v14, %v594_v13  ;;  %v4363_v27 = vpack.c.bf16 %v599_v19, %v591_v18  ;;  %v4381_v14 = vpack.c.bf16 %v680_v8, %v672_v7  ;;  %v735_v7 = vld [vmem:[#allocation4 + $0x1320] sm:$0xff] }
 0x17d   :  { %4534 = vmatprep.subr.bf16.mxu1 %v4533_v25  ;;  %v610_v25 = vld [vmem:[#allocation4 + $0xf38] sm:$0xff]  ;;  %v4555_v28 = vpack.c.bf16 %v601_v22, %v593_v20  ;;  %v4573_v18 = vpack.c.bf16 %v682_v11, %v674_v10  ;;  %v681_v19 = vld [vmem:[#allocation4 + $0x1170] sm:$0xff]  ;;  %v688_v20 = vld [vmem:[#allocation4 + $0x11a8] sm:$0xff] }
 0x17e   :  { %v5853_v22 = vld [vmem:[#allocation2 + $0x48] sm:$0xff]  ;;  %v743_v8 = vld [vmem:[#allocation4 + $0x1360] sm:$0xff]  ;;  %v745_v11 = vld [vmem:[#allocation4 + $0x1370] sm:$0xff] }
 0x17f   :  { %4344 = vmatpush1.bf16.msra.mxu0 %v4343_v31  ;;  %v615_v31 = vld [vmem:[#allocation4 + $0xf60] sm:$0xff] }
 0x180   :  { %4536 = vmatpush1.bf16.msra.mxu1 %v4535_v32  ;;  %4346 = vmatprep.subr.bf16.mxu0 %v4345_v33  ;;  %v609_v32 = vld [vmem:[#allocation4 + $0xf30] sm:$0xff]  ;;  %v4557_v33 = vpack.c.bf16 %v618_v26, %v610_v25  ;;  %v4367_v39 = vpack.c.bf16 %v615_v31, %v607_v30  ;;  %v5854_v25 = vld [vmem:[#allocation2 + $0x40] sm:$0xff] }
 0x181   :  { %4538 = vmatprep.subr.bf16.mxu1 %v4537_v37  ;;  %v626_v37 = vld [vmem:[#allocation4 + $0xfb8] sm:$0xff]  ;;  %v4559_v40 = vpack.c.bf16 %v617_v34, %v609_v32  ;;  %v695_v30 = vld [vmem:[#allocation4 + $0x11e0] sm:$0xff]  ;;  %v689_v31 = vld [vmem:[#allocation4 + $0x11b0] sm:$0xff]  ;;  %v4577_v32 = vpack.c.bf16 %v698_v24, %v690_v23 }
 0x182   :  { %v704_v34 = vld [vmem:[#allocation4 + $0x1228] sm:$0xff]  ;;  %v753_v23 = vld [vmem:[#allocation4 + $0x13b0] sm:$0xff] }
 0x183   :  { %4348 = vmatpush1.bf16.msra.mxu0 %v4347_v43  ;;  %v631_v43 = vld [vmem:[#allocation4 + $0xfe0] sm:$0xff] }
 0x184   :  { %4540 = vmatpush1.bf16.msra.mxu1 %v4539_v44  ;;  %4350 = vmatprep.subr.bf16.mxu0 %v4349_v45  ;;  %v625_v44 = vld [vmem:[#allocation4 + $0xfb0] sm:$0xff]  ;;  %v4561_v45 = vpack.c.bf16 %v634_v38, %v626_v37  ;;  %v4371_v51 = vpack.c.bf16 %v631_v43, %v623_v42  ;;  %v706_v37 = vld [vmem:[#allocation4 + $0x1238] sm:$0xff]  ;;  %v4389_v42 = vpack.c.bf16 %v712_v35, %v704_v34  ;;  %v703_v43 = vld [vmem:[#allocation4 + $0x1220] sm:$0xff] }
 0x185   :  { %4542 = vmatprep.subr.bf16.mxu1 %v4541_v49  ;;  %v642_v49 = vld [vmem:[#allocation4 + $0x1038] sm:$0xff]  ;;  %v4563_v52 = vpack.c.bf16 %v633_v46, %v625_v44  ;;  %v711_v44 = vld [vmem:[#allocation4 + $0x1260] sm:$0xff] }
 0x186   :  { %v714_v38 = vld [vmem:[#allocation4 + $0x1278] sm:$0xff]  ;;  %v767_v34 = vld [vmem:[#allocation4 + $0x1420] sm:$0xff] }
 0x187   :  { %4352 = vmatpush1.bf16.msra.mxu0 %v4351_v55  ;;  %v647_v55 = vld [vmem:[#allocation4 + $0x1060] sm:$0xff]  ;;  %v4581_v46 = vpack.c.bf16 %v714_v38, %v706_v37  ;;  %v777_v38 = vld [vmem:[#allocation4 + $0x1470] sm:$0xff] }
 0x188   :  { %4544 = vmatpush1.bf16.msra.mxu1 %v4543_v56  ;;  %4354 = vmatprep.subr.bf16.mxu0 %v4353_v57  ;;  %v641_v56 = vld [vmem:[#allocation4 + $0x1030] sm:$0xff]  ;;  %v4565_v57 = vpack.c.bf16 %v650_v50, %v642_v49  ;;  %v4375_v63 = vpack.c.bf16 %v647_v55, %v639_v54  ;;  %v728_v49 = vld [vmem:[#allocation4 + $0x12e8] sm:$0xff]  ;;  %v4391_v54 = vpack.c.bf16 %v711_v44, %v703_v43  ;;  %v775_v35 = vld [vmem:[#allocation4 + $0x1460] sm:$0xff] }
 0x189   :  { %4546 = vmatprep.subr.bf16.mxu1 %v4545_v61  ;;  %v658_v61 = vld [vmem:[#allocation4 + $0x10b8] sm:$0xff]  ;;  %v4567_v0 = vpack.c.bf16 %v649_v58, %v641_v56  ;;  %v5857_v50 = vld [vmem:[#allocation2 + $0xa8] sm:$0xff]  ;;  %v4393_v56 = vpack.c.bf16 %v728_v49, %v720_v48  ;;  %v727_v58 = vld [vmem:[#allocation4 + $0x12e0] sm:$0xff]  ;;  %v4407_v43 = vpack.c.bf16 %v775_v35, %v767_v34 }
 0x18a   :  { %v785_v48 = vld [vmem:[#allocation4 + $0x14b0] sm:$0xff]  ;;  %v864_v35 = vld [vmem:[#allocation4 + $0x1728] sm:$0xff] }
 0x18b   :  { %4356 = vmatpush1.bf16.msra.mxu0 %v4355_v3  ;;  %v663_v3 = vld [vmem:[#allocation4 + $0x10e0] sm:$0xff]  ;;  %v857_v34 = vld [vmem:[#allocation4 + $0x16f0] sm:$0xff] }
 0x18c   :  { %4548 = vmatpush1.bf16.msra.mxu1 %v4547_v4  ;;  %4358 = vmatprep.subr.bf16.mxu0 %v4357_v5  ;;  %v657_v4 = vld [vmem:[#allocation4 + $0x10b0] sm:$0xff]  ;;  %v4569_v5 = vpack.c.bf16 %v666_v62, %v658_v61  ;;  %v4379_v12 = vpack.c.bf16 %v663_v3, %v655_v2  ;;  %v736_v62 = vld [vmem:[#allocation4 + $0x1328] sm:$0xff]  ;;  %v746_v2 = vld [vmem:[#allocation4 + $0x1378] sm:$0xff] }
 0x18d   :  { %4550 = vmatprep.subr.bf16.mxu1 %v4549_v9  ;;  %v5852_v9 = vld [vmem:[#allocation2 + $0x10] sm:$0xff]  ;;  %v4571_v13 = vpack.c.bf16 %v665_v6, %v657_v4 }
 0x18e   :  { %v729_v61 = vld [vmem:[#allocation4 + $0x12f0] sm:$0xff] }
 0x18f   :  { %4360 = vmatpush1.bf16.msra.mxu0 %v4359_v15  ;;  %v671_v15 = vld [vmem:[#allocation4 + $0x1120] sm:$0xff]  ;;  %v5860_v3 = vld [vmem:[#allocation2 + $0xd0] sm:$0xff] }
 0x190   :  { %4552 = vmatpush1.bf16.msra.mxu1 %v4551_v16  ;;  %4362 = vmatprep.subr.bf16.mxu0 %v4361_v17  ;;  %v679_v16 = vld [vmem:[#allocation4 + $0x1160] sm:$0xff]  ;;  %v673_v17 = vld [vmem:[#allocation4 + $0x1130] sm:$0xff] }
 0x191   :  { %4554 = vmatprep.subr.bf16.mxu1 %v4553_v21  ;;  %v696_v21 = vld [vmem:[#allocation4 + $0x11e8] sm:$0xff]  ;;  %v4383_v26 = vpack.c.bf16 %v679_v16, %v671_v15  ;;  %v754_v15 = vld [vmem:[#allocation4 + $0x13b8] sm:$0xff] }
 0x192   :  { %v762_v16 = vld [vmem:[#allocation4 + $0x13f8] sm:$0xff] }
 0x193   :  { %4364 = vmatpush1.bf16.msra.mxu0 %v4363_v27  ;;  %v4575_v27 = vpack.c.bf16 %v681_v19, %v673_v17  ;;  %v5862_v17 = vld [vmem:[#allocation2 + $0x100] sm:$0xff]  ;;  %v4593_v24 = vpack.c.bf16 %v762_v16, %v754_v15 }
 0x194   :  { %4556 = vmatpush1.bf16.msra.mxu1 %v4555_v28  ;;  %4366 = vmatprep.subr.bf16.mxu0 %v4365_v29  ;;  %v4385_v28 = vpack.c.bf16 %v696_v21, %v688_v20  ;;  %v687_v29 = vld [vmem:[#allocation4 + $0x11a0] sm:$0xff] }
 0x195   :  { %4558 = vmatprep.subr.bf16.mxu1 %v4557_v33  ;;  %v697_v33 = vld [vmem:[#allocation4 + $0x11f0] sm:$0xff]  ;;  %v751_v21 = vld [vmem:[#allocation4 + $0x13a0] sm:$0xff] }
 0x197   :  { %4368 = vmatpush1.bf16.msra.mxu0 %v4367_v39  ;;  %v5856_v39 = vld [vmem:[#allocation2 + $0x70] sm:$0xff] }
 0x198   :  { %4560 = vmatpush1.bf16.msra.mxu1 %v4559_v40  ;;  %4370 = vmatprep.subr.bf16.mxu0 %v4369_v41  ;;  %v4387_v40 = vpack.c.bf16 %v695_v30, %v687_v29  ;;  %v4579_v41 = vpack.c.bf16 %v697_v33, %v689_v31  ;;  %v770_v29 = vld [vmem:[#allocation4 + $0x1438] sm:$0xff] }
 0x199   :  { %4562 = vmatprep.subr.bf16.mxu1 %v4561_v45  ;;  %v705_v45 = vld [vmem:[#allocation4 + $0x1230] sm:$0xff]  ;;  %v778_v30 = vld [vmem:[#allocation4 + $0x1478] sm:$0xff] }
 0x19a   :  { %v4583_v55 = vpack.c.bf16 %v713_v47, %v705_v45  ;;  %v4597_v37 = vpack.c.bf16 %v778_v30, %v770_v29  ;;  %v791_v47 = vld [vmem:[#allocation4 + $0x14e0] sm:$0xff] }
 0x19b   :  { %4372 = vmatpush1.bf16.msra.mxu0 %v4371_v51  ;;  %v722_v51 = vld [vmem:[#allocation4 + $0x12b8] sm:$0xff]  ;;  %v847_v30 = vld [vmem:[#allocation4 + $0x16a0] sm:$0xff] }
 0x19c   :  { %4564 = vmatpush1.bf16.msra.mxu1 %v4563_v52  ;;  %4374 = vmatprep.subr.bf16.mxu0 %v4373_v53  ;;  %v730_v52 = vld [vmem:[#allocation4 + $0x12f8] sm:$0xff]  ;;  %v5858_v53 = vld [vmem:[#allocation2 + $0xa0] sm:$0xff] }
 0x19d   :  { %4566 = vmatprep.subr.bf16.mxu1 %v4565_v57  ;;  %v719_v57 = vld [vmem:[#allocation4 + $0x12a0] sm:$0xff]  ;;  %v4585_v60 = vpack.c.bf16 %v730_v52, %v722_v51  ;;  %v800_v51 = vld [vmem:[#allocation4 + $0x1528] sm:$0xff] }
 0x19e   :  { %1705 = vmatmul.mubr.f32.vlgmr.msra.gmra.mrb[12].mxu0 %v5852_v9  ;;  %v4395_v4 = vpack.c.bf16 %v727_v58, %v719_v57  ;;  %v808_v52 = vld [vmem:[#allocation4 + $0x1568] sm:$0xff]  ;;  %v799_v58 = vld [vmem:[#allocation4 + $0x1520] sm:$0xff] }
 0x19f   :  { %4376 = vmatpush1.bf16.msra.mxu0 %v4375_v63  ;;  %2008 = vmatmul.mubr.f32.vlgmr.msra.gmra.mrb[12].mxu1 %v5852_v9  ;;  %v744_v63 = vld [vmem:[#allocation4 + $0x1368] sm:$0xff]  ;;  %v737_v9 = vld [vmem:[#allocation4 + $0x1330] sm:$0xff]  ;;  %v4413_v57 = vpack.c.bf16 %v808_v52, %v800_v51 }
 0x1a0   :  { %4568 = vmatpush1.bf16.msra.mxu1 %v4567_v0  ;;  %4378 = vmatprep.subr.bf16.mxu0 %v4377_v1  ;;  %v5859_v0 = vld [vmem:[#allocation2 + $0xd8] sm:$0xff]  ;;  %v4397_v6 = vpack.c.bf16 %v744_v63, %v736_v62  ;;  %v4591_v19 = vpack.c.bf16 %v745_v11, %v737_v9  ;;  %v809_v62 = vld [vmem:[#allocation4 + $0x1570] sm:$0xff]  ;;  %v816_v63 = vld [vmem:[#allocation4 + $0x15a8] sm:$0xff] }
 0x1a1   :  { %4570 = vmatprep.subr.bf16.mxu1 %v4569_v5  ;;  %1710 = vmatprep.mubr.f32.mxu0 %v5853_v22  ;;  %v738_v1 = vld [vmem:[#allocation4 + $0x1338] sm:$0xff]  ;;  %v4587_v5 = vpack.c.bf16 %v729_v61, %v721_v59  ;;  %v807_v59 = vld [vmem:[#allocation4 + $0x1560] sm:$0xff]  ;;  %v832_v11 = vld [vmem:[#allocation4 + $0x1628] sm:$0xff] }
 0x1a2   :  { %2013 = vmatprep.mubr.f32.mxu1 %v5853_v22  ;;  %1711 = vmatmul.mubr.f32.gmra.mrb[14].mxu0 %v5854_v25  ;;  %v4589_v10 = vpack.c.bf16 %v746_v2, %v738_v1  ;;  %v759_v22 = vld [vmem:[#allocation4 + $0x13e0] sm:$0xff]  ;;  %v818_v1 = vld [vmem:[#allocation4 + $0x15b8] sm:$0xff] }
 0x1a3   :  { %4380 = vmatpush1.bf16.msra.mxu0 %v4379_v12  ;;  %2014 = vmatmul.mubr.f32.gmra.mrb[14].mxu1 %v5854_v25  ;;  %v752_v12 = vld [vmem:[#allocation4 + $0x13a8] sm:$0xff]  ;;  %v761_v25 = vld [vmem:[#allocation4 + $0x13f0] sm:$0xff]  ;;  %v4403_v31 = vpack.c.bf16 %v759_v22, %v751_v21  ;;  %v826_v2 = vld [vmem:[#allocation4 + $0x15f8] sm:$0xff] }
 0x1a4   :  { %4572 = vmatpush1.bf16.msra.mxu1 %v4571_v13  ;;  %4382 = vmatprep.subr.bf16.mxu0 %v4381_v14  ;;  %v760_v13 = vld [vmem:[#allocation4 + $0x13e8] sm:$0xff]  ;;  %v4609_v9 = vpack.c.bf16 %v826_v2, %v818_v1  ;;  %v841_v22 = vld [vmem:[#allocation4 + $0x1670] sm:$0xff]  ;;  %v2145_v2 = vld [vmem:[#allocation6] sm:$0xff] }
 0x1a5   :  { %4574 = vmatprep.subr.bf16.mxu1 %v4573_v18  ;;  %1716 = vmatprep.mubr.f32.mxu0 %v5855_v36  ;;  %v5861_v14 = vld [vmem:[#allocation2 + $0x108] sm:$0xff]  ;;  %v4399_v18 = vpack.c.bf16 %v743_v8, %v735_v7  ;;  %v4401_v20 = vpack.c.bf16 %v760_v13, %v752_v12  ;;  %v823_v7 = vld [vmem:[#allocation4 + $0x15e0] sm:$0xff]  ;;  %v817_v8 = vld [vmem:[#allocation4 + $0x15b0] sm:$0xff] }
 0x1a6   :  { %2019 = vmatprep.mubr.f32.mxu1 %v5855_v36  ;;  %1717 = vmatmul.mubr.f32.gmra.mrb[16].mxu0 %v5856_v39  ;;  %v769_v36 = vld [vmem:[#allocation4 + $0x1430] sm:$0xff]  ;;  %v840_v12 = vld [vmem:[#allocation4 + $0x1668] sm:$0xff]  ;;  %v834_v13 = vld [vmem:[#allocation4 + $0x1638] sm:$0xff] }
 0x1a7   :  { %4384 = vmatpush1.bf16.msra.mxu0 %v4383_v26  ;;  %2020 = vmatmul.mubr.f32.gmra.mrb[16].mxu1 %v5856_v39  ;;  %v768_v26 = vld [vmem:[#allocation4 + $0x1428] sm:$0xff]  ;;  %v4599_v44 = vpack.c.bf16 %v777_v38, %v769_v36  ;;  %v874_v38 = vld [vmem:[#allocation4 + $0x1778] sm:$0xff] }
 0x1a8   :  { %4576 = vmatpush1.bf16.msra.mxu1 %v4575_v27  ;;  %4386 = vmatprep.subr.bf16.mxu0 %v4385_v28  ;;  %v776_v27 = vld [vmem:[#allocation4 + $0x1468] sm:$0xff] }
 0x1a9   :  { %4578 = vmatprep.subr.bf16.mxu1 %v4577_v32  ;;  %1722 = vmatprep.mubr.f32.mxu0 %v5857_v50  ;;  %v5863_v28 = vld [vmem:[#allocation2 + $0x28] sm:$0xff]  ;;  %v4595_v32 = vpack.c.bf16 %v761_v25, %v753_v23  ;;  %v4405_v33 = vpack.c.bf16 %v776_v27, %v768_v26  ;;  %v850_v25 = vld [vmem:[#allocation4 + $0x16b8] sm:$0xff] }
 0x1aa   :  { %2025 = vmatprep.mubr.f32.mxu1 %v5857_v50  ;;  %1723 = vmatmul.mubr.f32.gmra.mrb[18].mxu0 %v5858_v53  ;;  %v784_v39 = vld [vmem:[#allocation4 + $0x14a8] sm:$0xff]  ;;  %v793_v50 = vld [vmem:[#allocation4 + $0x14f0] sm:$0xff]  ;;  %v858_v26 = vld [vmem:[#allocation4 + $0x16f8] sm:$0xff] }
 0x1ab   :  { %4388 = vmatpush1.bf16.msra.mxu0 %v4387_v40  ;;  %2026 = vmatmul.mubr.f32.gmra.mrb[18].mxu1 %v5858_v53  ;;  %v792_v40 = vld [vmem:[#allocation4 + $0x14e8] sm:$0xff]  ;;  %v802_v53 = vld [vmem:[#allocation4 + $0x1538] sm:$0xff] }
 0x1ac   :  { %4580 = vmatpush1.bf16.msra.mxu1 %v4579_v41  ;;  %4390 = vmatprep.subr.bf16.mxu0 %v4389_v42  ;;  %v786_v41 = vld [vmem:[#allocation4 + $0x14b8] sm:$0xff]  ;;  %v4409_v45 = vpack.c.bf16 %v792_v40, %v784_v39  ;;  %v848_v23 = vld [vmem:[#allocation4 + $0x16a8] sm:$0xff] }
 0x1ad   :  { %4582 = vmatprep.subr.bf16.mxu1 %v4581_v46  ;;  %1728 = vmatprep.mubr.f32.mxu0 %v5859_v0  ;;  %v794_v42 = vld [vmem:[#allocation4 + $0x14f8] sm:$0xff]  ;;  %v783_v46 = vld [vmem:[#allocation4 + $0x14a0] sm:$0xff]  ;;  %v872_v36 = vld [vmem:[#allocation4 + $0x1768] sm:$0xff] }
 0x1ae   :  { %2031 = vmatprep.mubr.f32.mxu1 %v5859_v0  ;;  %1729 = vmatmul.mubr.f32.gmra.mrb[20].mxu0 %v5860_v3  ;;  %v4601_v49 = vpack.c.bf16 %v794_v42, %v786_v41  ;;  %v824_v0 = vld [vmem:[#allocation4 + $0x15e8] sm:$0xff]  ;;  %v4429_v41 = vpack.c.bf16 %v872_v36, %v864_v35  ;;  %v863_v42 = vld [vmem:[#allocation4 + $0x1720] sm:$0xff]  ;;  %v2196_v35 = vld [vmem:[#allocation6 + $0x198] sm:$0xff] }
 0x1af   :  { %4392 = vmatpush1.bf16.msra.mxu0 %v4391_v54  ;;  %2032 = vmatmul.mubr.f32.gmra.mrb[20].mxu1 %v5860_v3  ;;  %v810_v54 = vld [vmem:[#allocation4 + $0x1578] sm:$0xff]  ;;  %v4415_v3 = vpack.c.bf16 %v807_v59, %v799_v58  ;;  %v889_v58 = vld [vmem:[#allocation4 + $0x17f0] sm:$0xff]  ;;  %v2146_v59 = vld [vmem:[#allocation6 + $0x8] sm:$0xff] }
 0x1b0   :  { %4584 = vmatpush1.bf16.msra.mxu1 %v4583_v55  ;;  %4394 = vmatprep.subr.bf16.mxu0 %v4393_v56  ;;  %v4411_v55 = vpack.c.bf16 %v791_v47, %v783_v46  ;;  %v4603_v56 = vpack.c.bf16 %v793_v50, %v785_v48  ;;  %v4605_v61 = vpack.c.bf16 %v810_v54, %v802_v53  ;;  %v873_v46 = vld [vmem:[#allocation4 + $0x1770] sm:$0xff]  ;;  %v880_v47 = vld [vmem:[#allocation4 + $0x17a8] sm:$0xff]  ;;  %v890_v50 = vld [vmem:[#allocation4 + $0x17f8] sm:$0xff] }
 0x1b1   :  { %4586 = vmatprep.subr.bf16.mxu1 %v4585_v60  ;;  %1734 = vmatprep.mubr.f32.mxu0 %v5861_v14  ;;  %v801_v60 = vld [vmem:[#allocation4 + $0x1530] sm:$0xff]  ;;  %v888_v48 = vld [vmem:[#allocation4 + $0x17e8] sm:$0xff]  ;;  %v879_v54 = vld [vmem:[#allocation4 + $0x17a0] sm:$0xff] }
 0x1b2   :  { %2037 = vmatprep.mubr.f32.mxu1 %v5861_v14  ;;  %1735 = vmatmul.mubr.f32.gmra.mrb[22].mxu0 %v5862_v17  ;;  %v842_v14 = vld [vmem:[#allocation4 + $0x1678] sm:$0xff]  ;;  %v4433_v53 = vpack.c.bf16 %v888_v48, %v880_v47  ;;  %v2218_v47 = vld [vmem:[#allocation6 + $0x248] sm:$0xff] }
 0x1b3   :  { %4396 = vmatpush1.bf16.msra.mxu0 %v4395_v4  ;;  %2038 = vmatmul.mubr.f32.gmra.mrb[22].mxu1 %v5862_v17  ;;  %v4607_v4 = vpack.c.bf16 %v809_v62, %v801_v60  ;;  %v4421_v17 = vpack.c.bf16 %v840_v12, %v832_v11  ;;  %v4613_v21 = vpack.c.bf16 %v842_v14, %v834_v13  ;;  %v2154_v60 = vld [vmem:[#allocation6 + $0x48] sm:$0xff]  ;;  %v2156_v62 = vld [vmem:[#allocation6 + $0x58] sm:$0xff]  ;;  %v2161_v14 = vld [vmem:[#allocation6 + $0x80] sm:$0xff] }
 0x1b4   :  { %4588 = vmatpush1.bf16.msra.mxu1 %v4587_v5  ;;  %4398 = vmatprep.subr.bf16.mxu0 %v4397_v6  ;;  %v4417_v5 = vpack.c.bf16 %v824_v0, %v816_v63  ;;  %v815_v6 = vld [vmem:[#allocation4 + $0x15a0] sm:$0xff]  ;;  %v6102_v1 = vpack.c.bf16 %v2154_v60, %v2146_v59  ;;  %v2204_v36 = vld [vmem:[#allocation6 + $0x1d8] sm:$0xff]  ;;  %v5867_v48 = vld [vmem:[#allocation2 + $0x88] sm:$0xff] }
 0x1b5   :  { %4590 = vmatprep.subr.bf16.mxu1 %v4589_v10  ;;  %1805 = vmatprep.mubr.f32.mxu0 %v5863_v28  ;;  %v825_v10 = vld [vmem:[#allocation4 + $0x15f0] sm:$0xff]  ;;  %v4419_v15 = vpack.c.bf16 %v823_v7, %v815_v6  ;;  %v2162_v7 = vld [vmem:[#allocation6 + $0x88] sm:$0xff] }
 0x1b6   :  { %2108 = vmatprep.mubr.f32.mxu1 %v5863_v28  ;;  %v4611_v16 = vpack.c.bf16 %v825_v10, %v817_v8  ;;  %v2155_v6 = vld [vmem:[#allocation6 + $0x50] sm:$0xff]  ;;  %v2170_v8 = vld [vmem:[#allocation6 + $0xc8] sm:$0xff]  ;;  %v2172_v10 = vld [vmem:[#allocation6 + $0xd8] sm:$0xff] }
 0x1b7   :  { %4400 = vmatpush1.bf16.msra.mxu0 %v4399_v18  ;;  %v831_v18 = vld [vmem:[#allocation4 + $0x1620] sm:$0xff]  ;;  %v6111_v13 = vpack.c.bf16 %v2170_v8, %v2162_v7  ;;  %v2219_v59 = vld [vmem:[#allocation6 + $0x250] sm:$0xff]  ;;  %v2226_v60 = vld [vmem:[#allocation6 + $0x288] sm:$0xff] }
 0x1b8   :  { %4592 = vmatpush1.bf16.msra.mxu1 %v4591_v19  ;;  %4402 = vmatprep.subr.bf16.mxu0 %v4401_v20  ;;  %v839_v19 = vld [vmem:[#allocation4 + $0x1660] sm:$0xff]  ;;  %v833_v20 = vld [vmem:[#allocation4 + $0x1630] sm:$0xff] }
 0x1b9   :  { %4594 = vmatprep.subr.bf16.mxu1 %v4593_v24  ;;  %v856_v24 = vld [vmem:[#allocation4 + $0x16e8] sm:$0xff]  ;;  %v4423_v27 = vpack.c.bf16 %v839_v19, %v831_v18  ;;  %v4615_v28 = vpack.c.bf16 %v841_v22, %v833_v20  ;;  %v2171_v18 = vld [vmem:[#allocation6 + $0xd0] sm:$0xff]  ;;  %v2180_v22 = vld [vmem:[#allocation6 + $0x118] sm:$0xff] }
 0x1ba   :  { %v4425_v29 = vpack.c.bf16 %v856_v24, %v848_v23  ;;  %v2178_v19 = vld [vmem:[#allocation6 + $0x108] sm:$0xff]  ;;  %v2188_v23 = vld [vmem:[#allocation6 + $0x158] sm:$0xff]  ;;  %v2225_v7 = vld [vmem:[#allocation6 + $0x280] sm:$0xff] }
 0x1bb   :  { %4404 = vmatpush1.bf16.msra.mxu0 %v4403_v31  ;;  %v855_v31 = vld [vmem:[#allocation4 + $0x16e0] sm:$0xff]  ;;  %v2186_v20 = vld [vmem:[#allocation6 + $0x148] sm:$0xff] }
 0x1bc   :  { %4596 = vmatpush1.bf16.msra.mxu1 %v4595_v32  ;;  %4406 = vmatprep.subr.bf16.mxu0 %v4405_v33  ;;  %v849_v32 = vld [vmem:[#allocation4 + $0x16b0] sm:$0xff]  ;;  %v4617_v33 = vpack.c.bf16 %v858_v26, %v850_v25  ;;  %v4427_v39 = vpack.c.bf16 %v855_v31, %v847_v30  ;;  %v6123_v26 = vpack.c.bf16 %v2186_v20, %v2178_v19  ;;  %v2233_v8 = vld [vmem:[#allocation6 + $0x2c0] sm:$0xff]  ;;  %v2244_v19 = vld [vmem:[#allocation6 + $0x318] sm:$0xff] }
 0x1bd   :  { %4598 = vmatprep.subr.bf16.mxu1 %v4597_v37  ;;  %v866_v37 = vld [vmem:[#allocation4 + $0x1738] sm:$0xff]  ;;  %v4619_v40 = vpack.c.bf16 %v857_v34, %v849_v32  ;;  %v6126_v30 = vpack.c.bf16 %v2188_v23, %v2180_v22  ;;  %v2187_v31 = vld [vmem:[#allocation6 + $0x150] sm:$0xff]  ;;  %v2194_v32 = vld [vmem:[#allocation6 + $0x188] sm:$0xff]  ;;  %v6165_v22 = vpack.c.bf16 %v2233_v8, %v2225_v7 }
 0x1be   :  { %v5865_v34 = vld [vmem:[#allocation2 + $0x58] sm:$0xff]  ;;  %v2275_v7 = vld [vmem:[#allocation6 + $0x410] sm:$0xff] }
 0x1bf   :  { %4408 = vmatpush1.bf16.msra.mxu0 %v4407_v43  ;;  %v871_v43 = vld [vmem:[#allocation4 + $0x1760] sm:$0xff]  ;;  %v2252_v20 = vld [vmem:[#allocation6 + $0x358] sm:$0xff] }
 0x1c0   :  { %4600 = vmatpush1.bf16.msra.mxu1 %v4599_v44  ;;  %4410 = vmatprep.subr.bf16.mxu0 %v4409_v45  ;;  %v865_v44 = vld [vmem:[#allocation4 + $0x1730] sm:$0xff]  ;;  %v4621_v45 = vpack.c.bf16 %v874_v38, %v866_v37  ;;  %v4431_v51 = vpack.c.bf16 %v871_v43, %v863_v42  ;;  %v2201_v42 = vld [vmem:[#allocation6 + $0x1c0] sm:$0xff] }
 0x1c1   :  { %4602 = vmatprep.subr.bf16.mxu1 %v4601_v49  ;;  %v882_v49 = vld [vmem:[#allocation4 + $0x17b8] sm:$0xff]  ;;  %v4623_v52 = vpack.c.bf16 %v873_v46, %v865_v44  ;;  %v5866_v37 = vld [vmem:[#allocation2 + $0x50] sm:$0xff]  ;;  %v6138_v44 = vpack.c.bf16 %v2204_v36, %v2196_v35  ;;  %v2210_v46 = vld [vmem:[#allocation6 + $0x208] sm:$0xff] }
 0x1c2   :  { %v2195_v43 = vld [vmem:[#allocation6 + $0x190] sm:$0xff]  ;;  %v2266_v35 = vld [vmem:[#allocation6 + $0x3c8] sm:$0xff]  ;;  %v5873_v36 = vld [vmem:[#allocation2 + $0x118] sm:$0xff] }
 0x1c3   :  { %4412 = vmatpush1.bf16.msra.mxu0 %v4411_v55  ;;  %v887_v55 = vld [vmem:[#allocation4 + $0x17e0] sm:$0xff] }
 0x1c4   :  { %4604 = vmatpush1.bf16.msra.mxu1 %v4603_v56  ;;  %4414 = vmatprep.subr.bf16.mxu0 %v4413_v57  ;;  %v881_v56 = vld [vmem:[#allocation4 + $0x17b0] sm:$0xff]  ;;  %v4625_v57 = vpack.c.bf16 %v890_v50, %v882_v49  ;;  %v4435_v63 = vpack.c.bf16 %v887_v55, %v879_v54  ;;  %v2212_v49 = vld [vmem:[#allocation6 + $0x218] sm:$0xff]  ;;  %v6147_v54 = vpack.c.bf16 %v2218_v47, %v2210_v46  ;;  %v2209_v55 = vld [vmem:[#allocation6 + $0x200] sm:$0xff] }
 0x1c5   :  { %4606 = vmatprep.subr.bf16.mxu1 %v4605_v61  ;;  %v2148_v61 = vld [vmem:[#allocation6 + $0x18] sm:$0xff]  ;;  %v4627_v0 = vpack.c.bf16 %v889_v58, %v881_v56  ;;  %v2217_v56 = vld [vmem:[#allocation6 + $0x240] sm:$0xff] }
 0x1c6   :  { %v2220_v50 = vld [vmem:[#allocation6 + $0x258] sm:$0xff]  ;;  %v2257_v47 = vld [vmem:[#allocation6 + $0x380] sm:$0xff] }
 0x1c7   :  { %4416 = vmatpush1.bf16.msra.mxu0 %v4415_v3  ;;  %v2153_v3 = vld [vmem:[#allocation6 + $0x40] sm:$0xff]  ;;  %v6150_v58 = vpack.c.bf16 %v2220_v50, %v2212_v49  ;;  %v2259_v49 = vld [vmem:[#allocation6 + $0x390] sm:$0xff] }
 0x1c8   :  { %4608 = vmatpush1.bf16.msra.mxu1 %v4607_v4  ;;  %4418 = vmatprep.subr.bf16.mxu0 %v4417_v5  ;;  %v2147_v4 = vld [vmem:[#allocation6 + $0x10] sm:$0xff]  ;;  %v6104_v5 = vpack.c.bf16 %v2156_v62, %v2148_v61  ;;  %v6106_v11 = vpack.c.bf16 %v2153_v3, %v2145_v2  ;;  %v2234_v61 = vld [vmem:[#allocation6 + $0x2c8] sm:$0xff]  ;;  %v5869_v62 = vld [vmem:[#allocation2 + $0xb8] sm:$0xff]  ;;  %v6153_v3 = vpack.c.bf16 %v2217_v56, %v2209_v55 }
 0x1c9   :  { %4610 = vmatprep.subr.bf16.mxu1 %v4609_v9  ;;  %v2164_v9 = vld [vmem:[#allocation6 + $0x98] sm:$0xff]  ;;  %v6109_v12 = vpack.c.bf16 %v2155_v6, %v2147_v4  ;;  %v5870_v2 = vld [vmem:[#allocation2 + $0xb0] sm:$0xff]  ;;  %v6159_v6 = vpack.c.bf16 %v2234_v61, %v2226_v60  ;;  %v2274_v55 = vld [vmem:[#allocation6 + $0x408] sm:$0xff] }
 0x1ca   :  { %v2282_v56 = vld [vmem:[#allocation6 + $0x448] sm:$0xff]  ;;  %v2284_v60 = vld [vmem:[#allocation6 + $0x458] sm:$0xff] }
 0x1cb   :  { %4420 = vmatpush1.bf16.msra.mxu0 %v4419_v15  ;;  %v2169_v15 = vld [vmem:[#allocation6 + $0xc0] sm:$0xff] }
 0x1cc   :  { %4612 = vmatpush1.bf16.msra.mxu1 %v4611_v16  ;;  %4422 = vmatprep.subr.bf16.mxu0 %v4421_v17  ;;  %v2163_v16 = vld [vmem:[#allocation6 + $0x90] sm:$0xff]  ;;  %v6114_v17 = vpack.c.bf16 %v2172_v10, %v2164_v9  ;;  %v6117_v24 = vpack.c.bf16 %v2169_v15, %v2161_v14  ;;  %v2242_v15 = vld [vmem:[#allocation6 + $0x308] sm:$0xff] }
 0x1cd   :  { %4614 = vmatprep.subr.bf16.mxu1 %v4613_v21  ;;  %v5864_v21 = vld [vmem:[#allocation2 + $0x20] sm:$0xff]  ;;  %v6121_v25 = vpack.c.bf16 %v2171_v18, %v2163_v16  ;;  %v2227_v9 = vld [vmem:[#allocation6 + $0x290] sm:$0xff]  ;;  %v2250_v16 = vld [vmem:[#allocation6 + $0x348] sm:$0xff] }
 0x1ce   :  { %v2235_v14 = vld [vmem:[#allocation6 + $0x2d0] sm:$0xff]  ;;  %v5871_v18 = vld [vmem:[#allocation2 + $0xe8] sm:$0xff] }
 0x1cf   :  { %4424 = vmatpush1.bf16.msra.mxu0 %v4423_v27  ;;  %v2177_v27 = vld [vmem:[#allocation6 + $0x100] sm:$0xff]  ;;  %v6169_v23 = vpack.c.bf16 %v2235_v14, %v2227_v9  ;;  %v2283_v9 = vld [vmem:[#allocation6 + $0x450] sm:$0xff]  ;;  %v2290_v14 = vld [vmem:[#allocation6 + $0x488] sm:$0xff] }
 0x1d0   :  { %4616 = vmatpush1.bf16.msra.mxu1 %v4615_v28  ;;  %4426 = vmatprep.subr.bf16.mxu0 %v4425_v29  ;;  %v2185_v28 = vld [vmem:[#allocation6 + $0x140] sm:$0xff]  ;;  %v2179_v29 = vld [vmem:[#allocation6 + $0x110] sm:$0xff] }
 0x1d1   :  { %4618 = vmatprep.subr.bf16.mxu1 %v4617_v33  ;;  %v2202_v33 = vld [vmem:[#allocation6 + $0x1c8] sm:$0xff]  ;;  %v6129_v38 = vpack.c.bf16 %v2185_v28, %v2177_v27  ;;  %v6171_v27 = vpack.c.bf16 %v2250_v16, %v2242_v15  ;;  %v2241_v28 = vld [vmem:[#allocation6 + $0x300] sm:$0xff]  ;;  %v2292_v16 = vld [vmem:[#allocation6 + $0x498] sm:$0xff] }
 0x1d2   :  { %v2298_v15 = vld [vmem:[#allocation6 + $0x4c8] sm:$0xff] }
 0x1d3   :  { %4428 = vmatpush1.bf16.msra.mxu0 %v4427_v39  ;;  %v6133_v39 = vpack.c.bf16 %v2187_v31, %v2179_v29  ;;  %v2249_v29 = vld [vmem:[#allocation6 + $0x340] sm:$0xff]  ;;  %v2243_v31 = vld [vmem:[#allocation6 + $0x310] sm:$0xff] }
 0x1d4   :  { %4620 = vmatpush1.bf16.msra.mxu1 %v4619_v40  ;;  %4430 = vmatprep.subr.bf16.mxu0 %v4429_v41  ;;  %v6135_v40 = vpack.c.bf16 %v2202_v33, %v2194_v32  ;;  %v2193_v41 = vld [vmem:[#allocation6 + $0x180] sm:$0xff]  ;;  %v6174_v32 = vpack.c.bf16 %v2252_v20, %v2244_v19  ;;  %v2251_v33 = vld [vmem:[#allocation6 + $0x350] sm:$0xff]  ;;  %v6207_v20 = vpack.c.bf16 %v2283_v9, %v2275_v7  ;;  %v2332_v7 = vld [vmem:[#allocation6 + $0x5d8] sm:$0xff] }
 0x1d5   :  { %4622 = vmatprep.subr.bf16.mxu1 %v4621_v45  ;;  %v2203_v45 = vld [vmem:[#allocation6 + $0x1d0] sm:$0xff] }
 0x1d6   :  { %7186 = vst [vmem:[#allocation21_spill] sm:$0xff] %v6207_v20 }
 0x1d7   :  { %4432 = vmatpush1.bf16.msra.mxu0 %v4431_v51  ;;  %v5868_v51 = vld [vmem:[#allocation2 + $0x80] sm:$0xff] }
 0x1d8   :  { %4624 = vmatpush1.bf16.msra.mxu1 %v4623_v52  ;;  %4434 = vmatprep.subr.bf16.mxu0 %v4433_v53  ;;  %v6141_v52 = vpack.c.bf16 %v2201_v42, %v2193_v41  ;;  %v6145_v53 = vpack.c.bf16 %v2203_v45, %v2195_v43  ;;  %v2268_v41 = vld [vmem:[#allocation6 + $0x3d8] sm:$0xff]  ;;  %v5874_v42 = vld [vmem:[#allocation2 + $0x110] sm:$0xff]  ;;  %v6177_v43 = vpack.c.bf16 %v2249_v29, %v2241_v28  ;;  %v2289_v28 = vld [vmem:[#allocation6 + $0x480] sm:$0xff] }
 0x1d9   :  { %4626 = vmatprep.subr.bf16.mxu1 %v4625_v57  ;;  %v2211_v57 = vld [vmem:[#allocation6 + $0x210] sm:$0xff]  ;;  %v6181_v45 = vpack.c.bf16 %v2251_v33, %v2243_v31  ;;  %v2297_v29 = vld [vmem:[#allocation6 + $0x4c0] sm:$0xff] }
 0x1da   :  { %v6157_v4 = vpack.c.bf16 %v2219_v59, %v2211_v57  ;;  %v6999_v57 = vmov 0.0   ;;  %v2276_v59 = vld [vmem:[#allocation6 + $0x418] sm:$0xff]  ;;  %v2291_v31 = vld [vmem:[#allocation6 + $0x490] sm:$0xff] }
 0x1db   :  { %4436 = vmatpush1.bf16.msra.mxu0 %v4435_v63  ;;  %v2228_v63 = vld [vmem:[#allocation6 + $0x298] sm:$0xff]  ;;  %7178 = vst [vmem:[#allocation13_spill] sm:$0xff] %v6181_v45  ;;  %v6200_v8 = vpack.c.bf16 %v2284_v60, %v2276_v59  ;;  %v2315_v59 = vld [vmem:[#allocation6 + $0x550] sm:$0xff]  ;;  %v2322_v60 = vld [vmem:[#allocation6 + $0x588] sm:$0xff] }
 0x1dc   :  { %4628 = vmatpush1.bf16.msra.mxu1 %v4627_v0  ;;  %4630 = vmatprep.subr.bf16.mxu0 %v6102_v1  ;;  %v2236_v0 = vld [vmem:[#allocation6 + $0x2d8] sm:$0xff] }
 0x1dd   :  { %4694 = vmatprep.subr.bf16.mxu1 %v6104_v5  ;;  %v6162_v10 = vpack.c.bf16 %v2236_v0, %v2228_v63  ;;  %v6197_v63 = vpack.c.bf16 %v2282_v56, %v2274_v55  ;;  %v2273_v0 = vld [vmem:[#allocation6 + $0x400] sm:$0xff]  ;;  %7184 = vst [vmem:[#allocation19_spill] sm:$0xff] %v6200_v8  ;;  %v2307_v55 = vld [vmem:[#allocation6 + $0x510] sm:$0xff] }
 0x1de   :  { %1806 = vmatmul.mubr.f32.vlgmr.msra.gmra.mrb[12].mxu0 %v5864_v21 }
 0x1df   :  { %2109 = vmatmul.mubr.f32.vlgmr.msra.gmra.mrb[12].mxu1 %v5864_v21  ;;  %4632 = vmatpush1.bf16.msra.mxu0 %v6106_v11  ;;  %v5872_v21 = vld [vmem:[#allocation2 + $0xe0] sm:$0xff]  ;;  %7183 = vst [vmem:[#allocation18_spill] sm:$0xff] %v6197_v63 }
 0x1e0   :  { %4696 = vmatpush1.bf16.msra.mxu1 %v6109_v12  ;;  %4634 = vmatprep.subr.bf16.mxu0 %v6111_v13 }
 0x1e1   :  { %4698 = vmatprep.subr.bf16.mxu1 %v6114_v17  ;;  %1811 = vmatprep.mubr.f32.mxu0 %v5865_v34 }
 0x1e2   :  { %2114 = vmatprep.mubr.f32.mxu1 %v5865_v34  ;;  %1812 = vmatmul.mubr.f32.gmra.mrb[14].mxu0 %v5866_v37  ;;  %v2258_v34 = vld [vmem:[#allocation6 + $0x388] sm:$0xff] }
 0x1e3   :  { %4636 = vmatpush1.bf16.msra.mxu0 %v6117_v24  ;;  %2115 = vmatmul.mubr.f32.gmra.mrb[14].mxu1 %v5866_v37  ;;  %v2260_v37 = vld [vmem:[#allocation6 + $0x398] sm:$0xff]  ;;  %v6183_v46 = vpack.c.bf16 %v2266_v35, %v2258_v34  ;;  %v2299_v34 = vld [vmem:[#allocation6 + $0x4d0] sm:$0xff]  ;;  %v2306_v35 = vld [vmem:[#allocation6 + $0x508] sm:$0xff] }
 0x1e4   :  { %4700 = vmatpush1.bf16.msra.mxu1 %v6121_v25  ;;  %4638 = vmatprep.subr.bf16.mxu0 %v6123_v26  ;;  %v6186_v50 = vpack.c.bf16 %v2268_v41, %v2260_v37  ;;  %v2308_v37 = vld [vmem:[#allocation6 + $0x518] sm:$0xff] }
 0x1e5   :  { %4702 = vmatprep.subr.bf16.mxu1 %v6126_v30  ;;  %1817 = vmatprep.mubr.f32.mxu0 %v5867_v48  ;;  %7179 = vst [vmem:[#allocation14_spill] sm:$0xff] %v6183_v46  ;;  %v2316_v41 = vld [vmem:[#allocation6 + $0x558] sm:$0xff] }
 0x1e6   :  { %2120 = vmatprep.mubr.f32.mxu1 %v5867_v48  ;;  %1818 = vmatmul.mubr.f32.gmra.mrb[16].mxu0 %v5868_v51  ;;  %v2265_v48 = vld [vmem:[#allocation6 + $0x3c0] sm:$0xff]  ;;  %7180 = vst [vmem:[#allocation15_spill] sm:$0xff] %v6186_v50  ;;  %v6224_v56 = vpack.c.bf16 %v2316_v41, %v2308_v37  ;;  %v2348_v37 = vld [vmem:[#allocation6 + $0x658] sm:$0xff] }
 0x1e7   :  { %4640 = vmatpush1.bf16.msra.mxu0 %v6129_v38  ;;  %2121 = vmatmul.mubr.f32.gmra.mrb[16].mxu1 %v5868_v51  ;;  %v2267_v51 = vld [vmem:[#allocation6 + $0x3d0] sm:$0xff]  ;;  %v6191_v61 = vpack.c.bf16 %v2265_v48, %v2257_v47  ;;  %v6219_v47 = vpack.c.bf16 %v2299_v34, %v2291_v31  ;;  %v2338_v34 = vld [vmem:[#allocation6 + $0x608] sm:$0xff] }
 0x1e8   :  { %4704 = vmatpush1.bf16.msra.mxu1 %v6133_v39  ;;  %4642 = vmatprep.subr.bf16.mxu0 %v6135_v40  ;;  %7192 = vst [vmem:[#allocation27_spill] sm:$0xff] %v6224_v56  ;;  %v2331_v31 = vld [vmem:[#allocation6 + $0x5d0] sm:$0xff] }
 0x1e9   :  { %4706 = vmatprep.subr.bf16.mxu1 %v6138_v44  ;;  %1823 = vmatprep.mubr.f32.mxu0 %v5869_v62  ;;  %7181 = vst [vmem:[#allocation16_spill] sm:$0xff] %v6191_v61  ;;  %7190 = vst [vmem:[#allocation25_spill] sm:$0xff] %v6219_v47 }
 0x1ea   :  { %2126 = vmatprep.mubr.f32.mxu1 %v5869_v62  ;;  %1824 = vmatmul.mubr.f32.gmra.mrb[18].mxu0 %v5870_v2  ;;  %v6195_v62 = vpack.c.bf16 %v2267_v51, %v2259_v49  ;;  %v2305_v49 = vld [vmem:[#allocation6 + $0x500] sm:$0xff] }
 0x1eb   :  { %4644 = vmatpush1.bf16.msra.mxu0 %v6141_v52  ;;  %2127 = vmatmul.mubr.f32.gmra.mrb[18].mxu1 %v5870_v2  ;;  %v2281_v2 = vld [vmem:[#allocation6 + $0x440] sm:$0xff] }
 0x1ec   :  { %4708 = vmatpush1.bf16.msra.mxu1 %v6145_v53  ;;  %4646 = vmatprep.subr.bf16.mxu0 %v6147_v54  ;;  %7182 = vst [vmem:[#allocation17_spill] sm:$0xff] %v6195_v62  ;;  %v6203_v19 = vpack.c.bf16 %v2281_v2, %v2273_v0  ;;  %v2313_v51 = vld [vmem:[#allocation6 + $0x540] sm:$0xff]  ;;  %v2330_v0 = vld [vmem:[#allocation6 + $0x5c8] sm:$0xff]  ;;  %v2324_v2 = vld [vmem:[#allocation6 + $0x598] sm:$0xff] }
 0x1ed   :  { %4710 = vmatprep.subr.bf16.mxu1 %v6150_v58  ;;  %1829 = vmatprep.mubr.f32.mxu0 %v5871_v18  ;;  %v6227_v9 = vpack.c.bf16 %v2313_v51, %v2305_v49 }
 0x1ee   :  { %2132 = vmatprep.mubr.f32.mxu1 %v5871_v18  ;;  %1830 = vmatmul.mubr.f32.gmra.mrb[20].mxu0 %v5872_v21  ;;  %v2300_v18 = vld [vmem:[#allocation6 + $0x4d8] sm:$0xff]  ;;  %7185 = vst [vmem:[#allocation20_spill] sm:$0xff] %v6203_v19 }
 0x1ef   :  { %4648 = vmatpush1.bf16.msra.mxu0 %v6153_v3  ;;  %2133 = vmatmul.mubr.f32.gmra.mrb[20].mxu1 %v5872_v21  ;;  %v6209_v21 = vpack.c.bf16 %v2298_v15, %v2290_v14  ;;  %v6212_v33 = vpack.c.bf16 %v2300_v18, %v2292_v16  ;;  %7193 = vst [vmem:[#allocation28_spill] sm:$0xff] %v6227_v9  ;;  %v2321_v16 = vld [vmem:[#allocation6 + $0x580] sm:$0xff] }
 0x1f0   :  { %4712 = vmatpush1.bf16.msra.mxu1 %v6157_v4  ;;  %4650 = vmatprep.subr.bf16.mxu0 %v6159_v6  ;;  %v6231_v14 = vpack.c.bf16 %v2315_v59, %v2307_v55  ;;  %v6233_v15 = vpack.c.bf16 %v2330_v0, %v2322_v60  ;;  %v2329_v18 = vld [vmem:[#allocation6 + $0x5c0] sm:$0xff]  ;;  %v2339_v60 = vld [vmem:[#allocation6 + $0x610] sm:$0xff] }
 0x1f1   :  { %4714 = vmatprep.subr.bf16.mxu1 %v6162_v10  ;;  %1835 = vmatprep.mubr.f32.mxu0 %v5873_v36  ;;  %7187 = vst [vmem:[#allocation22_spill] sm:$0xff] %v6209_v21  ;;  %7188 = vst [vmem:[#allocation23_spill] sm:$0xff] %v6212_v33  ;;  %v6239_v41 = vpack.c.bf16 %v2329_v18, %v2321_v16  ;;  %v2337_v55 = vld [vmem:[#allocation6 + $0x600] sm:$0xff]  ;;  %v2356_v16 = vld [vmem:[#allocation6 + $0x698] sm:$0xff] }
 0x1f2   :  { %2138 = vmatprep.mubr.f32.mxu1 %v5873_v36  ;;  %1836 = vmatmul.mubr.f32.gmra.mrb[22].mxu0 %v5874_v42  ;;  %v2314_v36 = vld [vmem:[#allocation6 + $0x548] sm:$0xff]  ;;  %7194 = vst [vmem:[#allocation29_spill] sm:$0xff] %v6231_v14  ;;  %7195 = vst [vmem:[#allocation30_spill] sm:$0xff] %v6233_v15  ;;  %v2345_v59 = vld [vmem:[#allocation6 + $0x640] sm:$0xff] }
 0x1f3   :  { %4652 = vmatpush1.bf16.msra.mxu0 %v6165_v22  ;;  %2139 = vmatmul.mubr.f32.gmra.mrb[22].mxu1 %v5874_v42  ;;  %v6215_v42 = vpack.c.bf16 %v2297_v29, %v2289_v28  ;;  %v6221_v48 = vpack.c.bf16 %v2314_v36, %v2306_v35  ;;  %v2323_v28 = vld [vmem:[#allocation6 + $0x590] sm:$0xff]  ;;  %v6236_v29 = vpack.c.bf16 %v2332_v7, %v2324_v2  ;;  %v2346_v35 = vld [vmem:[#allocation6 + $0x648] sm:$0xff]  ;;  %v2340_v36 = vld [vmem:[#allocation6 + $0x618] sm:$0xff] }
 0x1f4   :  { %4716 = vmatpush1.bf16.msra.mxu1 %v6169_v23  ;;  %4654 = vmatprep.subr.bf16.mxu0 %v6171_v27  ;;  %7197 = vst [vmem:[#allocation32_spill] sm:$0xff] %v6239_v41  ;;  %v6243_v49 = vpack.c.bf16 %v2331_v31, %v2323_v28  ;;  %v6245_v51 = vpack.c.bf16 %v2346_v35, %v2338_v34  ;;  %v2347_v2 = vld [vmem:[#allocation6 + $0x650] sm:$0xff]  ;;  %v2354_v7 = vld [vmem:[#allocation6 + $0x688] sm:$0xff]  ;;  %v2364_v18 = vld [vmem:[#allocation6 + $0x6d8] sm:$0xff] }
 0x1f5   :  { %4718 = vmatprep.subr.bf16.mxu1 %v6174_v32  ;;  %2465 = vmatprep.mubr.f32.mxu0 %v6999_v57  ;;  %7189 = vst [vmem:[#allocation24_spill] sm:$0xff] %v6215_v42  ;;  %7191 = vst [vmem:[#allocation26_spill] sm:$0xff] %v6221_v48  ;;  %v6248_v0 = vpack.c.bf16 %v2348_v37, %v2340_v36  ;;  %v6255_v28 = vpack.c.bf16 %v2347_v2, %v2339_v60  ;;  %v2353_v34 = vld [vmem:[#allocation6 + $0x680] sm:$0xff]  ;;  %v2355_v36 = vld [vmem:[#allocation6 + $0x690] sm:$0xff] }
 0x1f6   :  { %2542 = vmatprep.mubr.f32.mxu1 %v6999_v57  ;;  %7196 = vst [vmem:[#allocation31_spill] sm:$0xff] %v6236_v29  ;;  %7198 = vst [vmem:[#allocation33_spill] sm:$0xff] %v6243_v49  ;;  %v2362_v57 = vld [vmem:[#allocation6 + $0x6c8] sm:$0xff]  ;;  %v2361_v35 = vld [vmem:[#allocation6 + $0x6c0] sm:$0xff]  ;;  %v6260_v37 = vpack.c.bf16 %v2364_v18, %v2356_v16 }
 0x1f7   :  { %4656 = vmatpush1.bf16.msra.mxu0 %v6177_v43  ;;  %7199 = vst [vmem:[#allocation34_spill] sm:$0xff] %v6245_v51  ;;  %7200 = vst [vmem:[#allocation35_spill] sm:$0xff] %v6248_v0  ;;  %v6257_v31 = vpack.c.bf16 %v2362_v57, %v2354_v7  ;;  %v2369_v2 = vld [vmem:[#allocation6 + $0x700] sm:$0xff]  ;;  %v2371_v16 = vld [vmem:[#allocation6 + $0x710] sm:$0xff] }
 0x1f8   :  { %4720 = vmatpush1.bf16.msra.mxu1 %v6181_v45  ;;  %4658 = vmatprep.subr.bf16.mxu0 %v6183_v46  ;;  %7202 = vst [vmem:[#allocation37_spill] sm:$0xff] %v6255_v28  ;;  %7204 = vst [vmem:[#allocation39_spill] sm:$0xff] %v6260_v37  ;;  %v2377_v7 = vld [vmem:[#allocation6 + $0x740] sm:$0xff] }
 0x1f9   :  { %4722 = vmatprep.subr.bf16.mxu1 %v6186_v50  ;;  %7203 = vst [vmem:[#allocation38_spill] sm:$0xff] %v6257_v31 }
 0x1fb   :  { %4660 = vmatpush1.bf16.msra.mxu0 %v6191_v61 }
 0x1fc   :  { %4724 = vmatpush1.bf16.msra.mxu1 %v6195_v62  ;;  %4662 = vmatprep.subr.bf16.mxu0 %v6197_v63 }
 0x1fd   :  { %4726 = vmatprep.subr.bf16.mxu1 %v6200_v8 }
 0x1ff   :  { %4664 = vmatpush1.bf16.msra.mxu0 %v6203_v19 }
 0x200   :  { %4728 = vmatpush1.bf16.msra.mxu1 %v6207_v20  ;;  %4666 = vmatprep.subr.bf16.mxu0 %v6209_v21 }
 0x201   :  { %4730 = vmatprep.subr.bf16.mxu1 %v6212_v33 }
 0x203   :  { %4668 = vmatpush1.bf16.msra.mxu0 %v6215_v42 }
 0x204   :  { %4732 = vmatpush1.bf16.msra.mxu1 %v6219_v47  ;;  %4670 = vmatprep.subr.bf16.mxu0 %v6221_v48 }
 0x205   :  { %4734 = vmatprep.subr.bf16.mxu1 %v6224_v56 }
 0x207   :  { %4672 = vmatpush1.bf16.msra.mxu0 %v6227_v9  ;;  %v2214_v9 = vld [vmem:[#allocation6 + $0x228] sm:$0xff] }
 0x208   :  { %4736 = vmatpush1.bf16.msra.mxu1 %v6231_v14  ;;  %4674 = vmatprep.subr.bf16.mxu0 %v6233_v15  ;;  %v6251_v14 = vpack.c.bf16 %v2345_v59, %v2337_v55  ;;  %v2370_v15 = vld [vmem:[#allocation6 + $0x708] sm:$0xff]  ;;  %v2372_v55 = vld [vmem:[#allocation6 + $0x718] sm:$0xff] }
 0x209   :  { %4738 = vmatprep.subr.bf16.mxu1 %v6236_v29  ;;  %v2363_v29 = vld [vmem:[#allocation6 + $0x6d0] sm:$0xff]  ;;  %v2380_v59 = vld [vmem:[#allocation6 + $0x758] sm:$0xff] }
 0x20a   :  { %7201 = vst [vmem:[#allocation36_spill] sm:$0xff] %v6251_v14  ;;  %v6267_v57 = vpack.c.bf16 %v2363_v29, %v2355_v36  ;;  %v6272_v18 = vpack.c.bf16 %v2380_v59, %v2372_v55  ;;  %v2393_v36 = vld [vmem:[#allocation6 + $0x7c0] sm:$0xff]  ;;  %v2387_v55 = vld [vmem:[#allocation6 + $0x790] sm:$0xff] }
 0x20b   :  { %4676 = vmatpush1.bf16.msra.mxu0 %v6239_v41  ;;  %v2378_v41 = vld [vmem:[#allocation6 + $0x748] sm:$0xff] }
 0x20c   :  { %4740 = vmatpush1.bf16.msra.mxu1 %v6243_v49  ;;  %4678 = vmatprep.subr.bf16.mxu0 %v6245_v51  ;;  %v6263_v49 = vpack.c.bf16 %v2361_v35, %v2353_v34  ;;  %7206 = vst [vmem:[#allocation41_spill] sm:$0xff] %v6267_v57  ;;  %v6269_v60 = vpack.c.bf16 %v2378_v41, %v2370_v15  ;;  %7208 = vst [vmem:[#allocation43_spill] sm:$0xff] %v6272_v18  ;;  %v2386_v51 = vld [vmem:[#allocation6 + $0x788] sm:$0xff]  ;;  %v2388_v34 = vld [vmem:[#allocation6 + $0x798] sm:$0xff] }
 0x20d   :  { %4742 = vmatprep.subr.bf16.mxu1 %v6248_v0  ;;  %v2379_v0 = vld [vmem:[#allocation6 + $0x750] sm:$0xff]  ;;  %v2396_v35 = vld [vmem:[#allocation6 + $0x7d8] sm:$0xff]  ;;  %v2385_v41 = vld [vmem:[#allocation6 + $0x780] sm:$0xff] }
 0x20e   :  { %7205 = vst [vmem:[#allocation40_spill] sm:$0xff] %v6263_v49  ;;  %7207 = vst [vmem:[#allocation42_spill] sm:$0xff] %v6269_v60  ;;  %v6279_v15 = vpack.c.bf16 %v2379_v0, %v2371_v16  ;;  %v6284_v59 = vpack.c.bf16 %v2396_v35, %v2388_v34  ;;  %v2149_v0 = vld [vmem:[#allocation6 + $0x20] sm:$0xff]  ;;  %v2151_v35 = vld [vmem:[#allocation6 + $0x30] sm:$0xff] }
 0x20f   :  { %4680 = vmatpush1.bf16.msra.mxu0 %v6251_v14  ;;  %v2394_v14 = vld [vmem:[#allocation6 + $0x7c8] sm:$0xff]  ;;  %v2157_v16 = vld [vmem:[#allocation6 + $0x60] sm:$0xff] }
 0x210   :  { %4744 = vmatpush1.bf16.msra.mxu1 %v6255_v28  ;;  %4682 = vmatprep.subr.bf16.mxu0 %v6257_v31  ;;  %v6275_v28 = vpack.c.bf16 %v2377_v7, %v2369_v2  ;;  %7210 = vst [vmem:[#allocation45_spill] sm:$0xff] %v6279_v15  ;;  %v6281_v29 = vpack.c.bf16 %v2394_v14, %v2386_v51  ;;  %7212 = vst [vmem:[#allocation47_spill] sm:$0xff] %v6284_v59  ;;  %v2150_v31 = vld [vmem:[#allocation6 + $0x28] sm:$0xff]  ;;  %v2152_v2 = vld [vmem:[#allocation6 + $0x38] sm:$0xff] }
 0x211   :  { %4746 = vmatprep.subr.bf16.mxu1 %v6260_v37  ;;  %v2395_v37 = vld [vmem:[#allocation6 + $0x7d0] sm:$0xff]  ;;  %v2160_v7 = vld [vmem:[#allocation6 + $0x78] sm:$0xff] }
 0x212   :  { %7209 = vst [vmem:[#allocation44_spill] sm:$0xff] %v6275_v28  ;;  %7211 = vst [vmem:[#allocation46_spill] sm:$0xff] %v6281_v29  ;;  %v6291_v14 = vpack.c.bf16 %v2395_v37, %v2387_v55  ;;  %v6296_v34 = vpack.c.bf16 %v2160_v7, %v2152_v2  ;;  %v2173_v37 = vld [vmem:[#allocation6 + $0xe0] sm:$0xff]  ;;  %v2167_v55 = vld [vmem:[#allocation6 + $0xb0] sm:$0xff] }
 0x213   :  { %4684 = vmatpush1.bf16.msra.mxu0 %v6263_v49  ;;  %v2158_v49 = vld [vmem:[#allocation6 + $0x68] sm:$0xff]  ;;  %v2175_v7 = vld [vmem:[#allocation6 + $0xf0] sm:$0xff] }
 0x214   :  { %4748 = vmatpush1.bf16.msra.mxu1 %v6267_v57  ;;  %4686 = vmatprep.subr.bf16.mxu0 %v6269_v60  ;;  %v6287_v57 = vpack.c.bf16 %v2393_v36, %v2385_v41  ;;  %7214 = vst [vmem:[#allocation49_spill] sm:$0xff] %v6291_v14  ;;  %v6293_v51 = vpack.c.bf16 %v2158_v49, %v2150_v31  ;;  %7216 = vst [vmem:[#allocation51_spill] sm:$0xff] %v6296_v34  ;;  %v2166_v60 = vld [vmem:[#allocation6 + $0xa8] sm:$0xff]  ;;  %v2168_v36 = vld [vmem:[#allocation6 + $0xb8] sm:$0xff] }
 0x215   :  { %4750 = vmatprep.subr.bf16.mxu1 %v6272_v18  ;;  %v2159_v18 = vld [vmem:[#allocation6 + $0x70] sm:$0xff]  ;;  %v6299_v41 = vpack.c.bf16 %v2157_v16, %v2149_v0  ;;  %v2165_v31 = vld [vmem:[#allocation6 + $0xa0] sm:$0xff]  ;;  %v7220_v0 = vmov 0.0  }
 0x216   :  { %7213 = vst [vmem:[#allocation48_spill] sm:$0xff] %v6287_v57  ;;  %7215 = vst [vmem:[#allocation50_spill] sm:$0xff] %v6293_v51  ;;  %v6303_v49 = vpack.c.bf16 %v2159_v18, %v2151_v35  ;;  %v6313_v18 = vpack.c.bf16 %v2173_v37, %v2165_v31  ;;  %v2181_v35 = vld [vmem:[#allocation6 + $0x120] sm:$0xff]  ;;  %v2198_v31 = vld [vmem:[#allocation6 + $0x1a8] sm:$0xff] }
 0x217   :  { %4688 = vmatpush1.bf16.msra.mxu0 %v6275_v28  ;;  %v2174_v28 = vld [vmem:[#allocation6 + $0xe8] sm:$0xff]  ;;  %7217 = vst [vmem:[#allocation52_spill] sm:$0xff] %v6299_v41 }
 0x218   :  { %4752 = vmatpush1.bf16.msra.mxu1 %v6279_v15  ;;  %4690 = vmatprep.subr.bf16.mxu0 %v6281_v29  ;;  %v2176_v29 = vld [vmem:[#allocation6 + $0xf8] sm:$0xff]  ;;  %7218 = vst [vmem:[#allocation53_spill] sm:$0xff] %v6303_v49  ;;  %v6306_v2 = vpack.c.bf16 %v2174_v28, %v2166_v60  ;;  %7222 = vst [vmem:[#allocation56_spill] sm:$0xff] %v6313_v18  ;;  %v6317_v28 = vpack.c.bf16 %v2175_v7, %v2167_v55  ;;  %v2206_v37 = vld [vmem:[#allocation6 + $0x1e8] sm:$0xff] }
 0x219   :  { %4754 = vmatprep.subr.bf16.mxu1 %v6284_v59  ;;  %v2182_v59 = vld [vmem:[#allocation6 + $0x128] sm:$0xff]  ;;  %v6309_v16 = vpack.c.bf16 %v2176_v29, %v2168_v36  ;;  %v2184_v15 = vld [vmem:[#allocation6 + $0x138] sm:$0xff]  ;;  %v2183_v29 = vld [vmem:[#allocation6 + $0x130] sm:$0xff] }
 0x21a   :  { %7219 = vst [vmem:[#allocation54_spill] sm:$0xff] %v6306_v2  ;;  %7223 = vst [vmem:[#allocation57_spill] sm:$0xff] %v6317_v28  ;;  %v2200_v55 = vld [vmem:[#allocation6 + $0x1b8] sm:$0xff] }
 0x21b   :  { %4692 = vmatpush1.bf16.msra.mxu0 %v6287_v57  ;;  %v2190_v57 = vld [vmem:[#allocation6 + $0x168] sm:$0xff]  ;;  %7221 = vst [vmem:[#allocation55_spill] sm:$0xff] %v6309_v16  ;;  %v2208_v7 = vld [vmem:[#allocation6 + $0x1f8] sm:$0xff] }
 0x21c   :  { %4756 = vmatpush1.bf16.msra.mxu1 %v6291_v14  ;;  %4758 = vmatprep.subr.bf16.mxu0 %v6293_v51  ;;  %v2192_v14 = vld [vmem:[#allocation6 + $0x178] sm:$0xff]  ;;  %v6319_v60 = vpack.c.bf16 %v2190_v57, %v2182_v59  ;;  %v6335_v59 = vpack.c.bf16 %v2206_v37, %v2198_v31  ;;  %v2207_v51 = vld [vmem:[#allocation6 + $0x1f0] sm:$0xff]  ;;  %v2213_v37 = vld [vmem:[#allocation6 + $0x220] sm:$0xff] }
 0x21d   :  { %4822 = vmatprep.subr.bf16.mxu1 %v6296_v34  ;;  %v2189_v34 = vld [vmem:[#allocation6 + $0x160] sm:$0xff]  ;;  %v6323_v36 = vpack.c.bf16 %v2192_v14, %v2184_v15 }
 0x21e   :  { %2466 = vmatmul.mubr.f32.vlgmr.msra.gmra.mrb[0].mxu0 %v7220_v0  ;;  %7224 = vst [vmem:[#allocation58_spill] sm:$0xff] %v6319_v60  ;;  %v6329_v57 = vpack.c.bf16 %v2189_v34, %v2181_v35  ;;  %7228 = vst [vmem:[#allocation62_spill] sm:$0xff] %v6335_v59  ;;  %v2197_v14 = vld [vmem:[#allocation6 + $0x1a0] sm:$0xff]  ;;  %v2216_v34 = vld [vmem:[#allocation6 + $0x238] sm:$0xff] }
 0x21f   :  { %2543 = vmatmul.mubr.f32.vlgmr.msra.gmra.mrb[0].mxu1 %v7220_v0  ;;  %4760 = vmatpush1.bf16.msra.mxu0 %v6299_v41  ;;  %7225 = vst [vmem:[#allocation59_spill] sm:$0xff] %v6323_v36  ;;  %v2191_v41 = vld [vmem:[#allocation6 + $0x170] sm:$0xff]  ;;  %v2224_v35 = vld [vmem:[#allocation6 + $0x278] sm:$0xff] }
 0x220   :  { %4824 = vmatpush1.bf16.msra.mxu1 %v6303_v49  ;;  %2471 = vmatprep.mubr.f32.mxu0 %v7220_v0  ;;  %7226 = vst [vmem:[#allocation60_spill] sm:$0xff] %v6329_v57  ;;  %v6333_v15 = vpack.c.bf16 %v2191_v41, %v2183_v29  ;;  %v2199_v49 = vld [vmem:[#allocation6 + $0x1b0] sm:$0xff] }
 0x221   :  { %2548 = vmatprep.mubr.f32.mxu1 %v7220_v0  ;;  %4762 = vmatprep.subr.bf16.mxu0 %v6306_v2  ;;  %v2205_v2 = vld [vmem:[#allocation6 + $0x1e0] sm:$0xff]  ;;  %v6347_v29 = vpack.c.bf16 %v2207_v51, %v2199_v49 }
 0x222   :  { %2472 = vmatmul.mubr.f32.gmra.mrb[2].mxu0 %v7220_v0  ;;  %4826 = vmatprep.subr.bf16.mxu1 %v6309_v16  ;;  %7227 = vst [vmem:[#allocation61_spill] sm:$0xff] %v6333_v15  ;;  %v6338_v16 = vpack.c.bf16 %v2208_v7, %v2200_v55  ;;  %v6343_v41 = vpack.c.bf16 %v2205_v2, %v2197_v14  ;;  %v2221_v55 = vld [vmem:[#allocation6 + $0x260] sm:$0xff]  ;;  %v2215_v7 = vld [vmem:[#allocation6 + $0x230] sm:$0xff]  ;;  %v2232_v2 = vld [vmem:[#allocation6 + $0x2b8] sm:$0xff] }
 0x223   :  { %2549 = vmatmul.mubr.f32.gmra.mrb[2].mxu1 %v7220_v0  ;;  %4764 = vmatpush1.bf16.msra.mxu0 %v6313_v18  ;;  %v2222_v18 = vld [vmem:[#allocation6 + $0x268] sm:$0xff]  ;;  %7231 = vst [vmem:[#allocation65_spill] sm:$0xff] %v6347_v29  ;;  %v2240_v14 = vld [vmem:[#allocation6 + $0x2f8] sm:$0xff]  ;;  %v2229_v49 = vld [vmem:[#allocation6 + $0x2a0] sm:$0xff] }
 0x224   :  { %4828 = vmatpush1.bf16.msra.mxu1 %v6317_v28  ;;  %4766 = vmatprep.subr.bf16.mxu0 %v6319_v60  ;;  %7229 = vst [vmem:[#allocation63_spill] sm:$0xff] %v6338_v16  ;;  %7230 = vst [vmem:[#allocation64_spill] sm:$0xff] %v6343_v41  ;;  %v6349_v31 = vpack.c.bf16 %v2222_v18, %v2214_v9  ;;  %v2223_v60 = vld [vmem:[#allocation6 + $0x270] sm:$0xff]  ;;  %v2230_v28 = vld [vmem:[#allocation6 + $0x2a8] sm:$0xff] }
 0x225   :  { %4830 = vmatprep.subr.bf16.mxu1 %v6323_v36  ;;  %2619 = vmatprep.mubr.f32.mxu0 %v7220_v0  ;;  %v6352_v36 = vpack.c.bf16 %v2224_v35, %v2216_v34  ;;  %v6359_v9 = vpack.c.bf16 %v2223_v60, %v2215_v7  ;;  %v2237_v18 = vld [vmem:[#allocation6 + $0x2e0] sm:$0xff]  ;;  %v2231_v34 = vld [vmem:[#allocation6 + $0x2b0] sm:$0xff]  ;;  %v6364_v35 = vpack.c.bf16 %v2240_v14, %v2232_v2 }
 0x226   :  { %2696 = vmatprep.mubr.f32.mxu1 %v7220_v0  ;;  %7232 = vst [vmem:[#allocation66_spill] sm:$0xff] %v6349_v31  ;;  %v2253_v7 = vld [vmem:[#allocation6 + $0x360] sm:$0xff]  ;;  %v2247_v2 = vld [vmem:[#allocation6 + $0x330] sm:$0xff] }
 0x227   :  { %4768 = vmatpush1.bf16.msra.mxu0 %v6329_v57  ;;  %7233 = vst [vmem:[#allocation67_spill] sm:$0xff] %v6352_v36  ;;  %v2238_v57 = vld [vmem:[#allocation6 + $0x2e8] sm:$0xff]  ;;  %7235 = vst [vmem:[#allocation69_spill] sm:$0xff] %v6359_v9 }
 0x228   :  { %4832 = vmatpush1.bf16.msra.mxu1 %v6333_v15  ;;  %4770 = vmatprep.subr.bf16.mxu0 %v6335_v59  ;;  %v6355_v15 = vpack.c.bf16 %v2221_v55, %v2213_v37  ;;  %v6361_v51 = vpack.c.bf16 %v2238_v57, %v2230_v28  ;;  %7237 = vst [vmem:[#allocation71_spill] sm:$0xff] %v6364_v35  ;;  %v2246_v59 = vld [vmem:[#allocation6 + $0x328] sm:$0xff]  ;;  %v2248_v37 = vld [vmem:[#allocation6 + $0x338] sm:$0xff]  ;;  %v2245_v57 = vld [vmem:[#allocation6 + $0x320] sm:$0xff] }
 0x229   :  { %4834 = vmatprep.subr.bf16.mxu1 %v6338_v16  ;;  %v2239_v16 = vld [vmem:[#allocation6 + $0x2f0] sm:$0xff]  ;;  %v2256_v55 = vld [vmem:[#allocation6 + $0x378] sm:$0xff] }
 0x22a   :  { %7234 = vst [vmem:[#allocation68_spill] sm:$0xff] %v6355_v15  ;;  %7236 = vst [vmem:[#allocation70_spill] sm:$0xff] %v6361_v51  ;;  %v6371_v28 = vpack.c.bf16 %v2239_v16, %v2231_v34  ;;  %v6376_v14 = vpack.c.bf16 %v2256_v55, %v2248_v37  ;;  %v2269_v34 = vld [vmem:[#allocation6 + $0x3e0] sm:$0xff]  ;;  %v2263_v37 = vld [vmem:[#allocation6 + $0x3b0] sm:$0xff] }
 0x22b   :  { %4772 = vmatpush1.bf16.msra.mxu0 %v6343_v41  ;;  %v2254_v41 = vld [vmem:[#allocation6 + $0x368] sm:$0xff] }
 0x22c   :  { %4836 = vmatpush1.bf16.msra.mxu1 %v6347_v29  ;;  %4774 = vmatprep.subr.bf16.mxu0 %v6349_v31  ;;  %v6367_v29 = vpack.c.bf16 %v2237_v18, %v2229_v49  ;;  %7239 = vst [vmem:[#allocation73_spill] sm:$0xff] %v6371_v28  ;;  %v6373_v60 = vpack.c.bf16 %v2254_v41, %v2246_v59  ;;  %7241 = vst [vmem:[#allocation75_spill] sm:$0xff] %v6376_v14  ;;  %v2262_v31 = vld [vmem:[#allocation6 + $0x3a8] sm:$0xff]  ;;  %v2264_v49 = vld [vmem:[#allocation6 + $0x3b8] sm:$0xff] }
 0x22d   :  { %4838 = vmatprep.subr.bf16.mxu1 %v6352_v36  ;;  %v2255_v36 = vld [vmem:[#allocation6 + $0x370] sm:$0xff]  ;;  %v2272_v18 = vld [vmem:[#allocation6 + $0x3f8] sm:$0xff]  ;;  %v2261_v41 = vld [vmem:[#allocation6 + $0x3a0] sm:$0xff] }
 0x22e   :  { %7238 = vst [vmem:[#allocation72_spill] sm:$0xff] %v6367_v29  ;;  %7240 = vst [vmem:[#allocation74_spill] sm:$0xff] %v6373_v60  ;;  %v6383_v16 = vpack.c.bf16 %v2255_v36, %v2247_v2  ;;  %v6388_v55 = vpack.c.bf16 %v2272_v18, %v2264_v49  ;;  %v2285_v2 = vld [vmem:[#allocation6 + $0x460] sm:$0xff]  ;;  %v2279_v49 = vld [vmem:[#allocation6 + $0x430] sm:$0xff] }
 0x22f   :  { %4776 = vmatpush1.bf16.msra.mxu0 %v6355_v15  ;;  %v2270_v15 = vld [vmem:[#allocation6 + $0x3e8] sm:$0xff] }
 0x230   :  { %4840 = vmatpush1.bf16.msra.mxu1 %v6359_v9  ;;  %4778 = vmatprep.subr.bf16.mxu0 %v6361_v51  ;;  %v6379_v9 = vpack.c.bf16 %v2253_v7, %v2245_v57  ;;  %7243 = vst [vmem:[#allocation77_spill] sm:$0xff] %v6383_v16  ;;  %v6385_v59 = vpack.c.bf16 %v2270_v15, %v2262_v31  ;;  %7245 = vst [vmem:[#allocation79_spill] sm:$0xff] %v6388_v55  ;;  %v2278_v51 = vld [vmem:[#allocation6 + $0x428] sm:$0xff]  ;;  %v2280_v57 = vld [vmem:[#allocation6 + $0x438] sm:$0xff] }
 0x231   :  { %4842 = vmatprep.subr.bf16.mxu1 %v6364_v35  ;;  %v2271_v35 = vld [vmem:[#allocation6 + $0x3f0] sm:$0xff]  ;;  %v2288_v7 = vld [vmem:[#allocation6 + $0x478] sm:$0xff]  ;;  %v2277_v31 = vld [vmem:[#allocation6 + $0x420] sm:$0xff] }
 0x232   :  { %7242 = vst [vmem:[#allocation76_spill] sm:$0xff] %v6379_v9  ;;  %7244 = vst [vmem:[#allocation78_spill] sm:$0xff] %v6385_v59  ;;  %v6395_v36 = vpack.c.bf16 %v2271_v35, %v2263_v37  ;;  %v6400_v18 = vpack.c.bf16 %v2288_v7, %v2280_v57  ;;  %v2293_v35 = vld [vmem:[#allocation6 + $0x4a0] sm:$0xff]  ;;  %v2295_v57 = vld [vmem:[#allocation6 + $0x4b0] sm:$0xff] }
 0x233   :  { %4780 = vmatpush1.bf16.msra.mxu0 %v6367_v29  ;;  %v2286_v29 = vld [vmem:[#allocation6 + $0x468] sm:$0xff]  ;;  %v2301_v37 = vld [vmem:[#allocation6 + $0x4e0] sm:$0xff] }
 0x234   :  { %4844 = vmatpush1.bf16.msra.mxu1 %v6371_v28  ;;  %4782 = vmatprep.subr.bf16.mxu0 %v6373_v60  ;;  %v6391_v28 = vpack.c.bf16 %v2269_v34, %v2261_v41  ;;  %7247 = vst [vmem:[#allocation81_spill] sm:$0xff] %v6395_v36  ;;  %v6397_v15 = vpack.c.bf16 %v2286_v29, %v2278_v51  ;;  %7249 = vst [vmem:[#allocation83_spill] sm:$0xff] %v6400_v18  ;;  %v2294_v60 = vld [vmem:[#allocation6 + $0x4a8] sm:$0xff]  ;;  %v2296_v41 = vld [vmem:[#allocation6 + $0x4b8] sm:$0xff] }
 0x235   :  { %4846 = vmatprep.subr.bf16.mxu1 %v6376_v14  ;;  %v2287_v14 = vld [vmem:[#allocation6 + $0x470] sm:$0xff]  ;;  %v2304_v34 = vld [vmem:[#allocation6 + $0x4f8] sm:$0xff] }
 0x236   :  { %7246 = vst [vmem:[#allocation80_spill] sm:$0xff] %v6391_v28  ;;  %7248 = vst [vmem:[#allocation82_spill] sm:$0xff] %v6397_v15  ;;  %v6407_v29 = vpack.c.bf16 %v2287_v14, %v2279_v49  ;;  %v6412_v7 = vpack.c.bf16 %v2304_v34, %v2296_v41  ;;  %v2309_v14 = vld [vmem:[#allocation6 + $0x520] sm:$0xff]  ;;  %v2311_v41 = vld [vmem:[#allocation6 + $0x530] sm:$0xff] }
 0x237   :  { %4784 = vmatpush1.bf16.msra.mxu0 %v6379_v9  ;;  %v2302_v9 = vld [vmem:[#allocation6 + $0x4e8] sm:$0xff]  ;;  %v2317_v49 = vld [vmem:[#allocation6 + $0x560] sm:$0xff] }
 0x238   :  { %4848 = vmatpush1.bf16.msra.mxu1 %v6383_v16  ;;  %4786 = vmatprep.subr.bf16.mxu0 %v6385_v59  ;;  %v6403_v16 = vpack.c.bf16 %v2285_v2, %v2277_v31  ;;  %7251 = vst [vmem:[#allocation85_spill] sm:$0xff] %v6407_v29  ;;  %v6409_v51 = vpack.c.bf16 %v2302_v9, %v2294_v60  ;;  %7253 = vst [vmem:[#allocation87_spill] sm:$0xff] %v6412_v7  ;;  %v2310_v59 = vld [vmem:[#allocation6 + $0x528] sm:$0xff]  ;;  %v2312_v31 = vld [vmem:[#allocation6 + $0x538] sm:$0xff] }
 0x239   :  { %4850 = vmatprep.subr.bf16.mxu1 %v6388_v55  ;;  %v2303_v55 = vld [vmem:[#allocation6 + $0x4f0] sm:$0xff]  ;;  %v2320_v2 = vld [vmem:[#allocation6 + $0x578] sm:$0xff] }
 0x23a   :  { %7250 = vst [vmem:[#allocation84_spill] sm:$0xff] %v6403_v16  ;;  %7252 = vst [vmem:[#allocation86_spill] sm:$0xff] %v6409_v51  ;;  %v6419_v9 = vpack.c.bf16 %v2303_v55, %v2295_v57  ;;  %v6424_v34 = vpack.c.bf16 %v2320_v2, %v2312_v31  ;;  %v2325_v55 = vld [vmem:[#allocation6 + $0x5a0] sm:$0xff]  ;;  %v2327_v31 = vld [vmem:[#allocation6 + $0x5b0] sm:$0xff] }
 0x23b   :  { %4788 = vmatpush1.bf16.msra.mxu0 %v6391_v28  ;;  %v2318_v28 = vld [vmem:[#allocation6 + $0x568] sm:$0xff]  ;;  %v2333_v57 = vld [vmem:[#allocation6 + $0x5e0] sm:$0xff] }
 0x23c   :  { %4852 = vmatpush1.bf16.msra.mxu1 %v6395_v36  ;;  %4790 = vmatprep.subr.bf16.mxu0 %v6397_v15  ;;  %v6415_v36 = vpack.c.bf16 %v2301_v37, %v2293_v35  ;;  %7255 = vst [vmem:[#allocation89_spill] sm:$0xff] %v6419_v9  ;;  %v6421_v60 = vpack.c.bf16 %v2318_v28, %v2310_v59  ;;  %7257 = vst [vmem:[#allocation91_spill] sm:$0xff] %v6424_v34  ;;  %v2326_v15 = vld [vmem:[#allocation6 + $0x5a8] sm:$0xff]  ;;  %v2328_v35 = vld [vmem:[#allocation6 + $0x5b8] sm:$0xff] }
 0x23d   :  { %4854 = vmatprep.subr.bf16.mxu1 %v6400_v18  ;;  %v2319_v18 = vld [vmem:[#allocation6 + $0x570] sm:$0xff]  ;;  %v2336_v37 = vld [vmem:[#allocation6 + $0x5f8] sm:$0xff] }
 0x23e   :  { %7254 = vst [vmem:[#allocation88_spill] sm:$0xff] %v6415_v36  ;;  %7256 = vst [vmem:[#allocation90_spill] sm:$0xff] %v6421_v60  ;;  %v6431_v28 = vpack.c.bf16 %v2319_v18, %v2311_v41  ;;  %v6436_v2 = vpack.c.bf16 %v2336_v37, %v2328_v35  ;;  %v2341_v18 = vld [vmem:[#allocation6 + $0x620] sm:$0xff]  ;;  %v2343_v35 = vld [vmem:[#allocation6 + $0x630] sm:$0xff] }
 0x23f   :  { %4792 = vmatpush1.bf16.msra.mxu0 %v6403_v16  ;;  %v2334_v16 = vld [vmem:[#allocation6 + $0x5e8] sm:$0xff]  ;;  %v2349_v41 = vld [vmem:[#allocation6 + $0x660] sm:$0xff] }
 0x240   :  { %4856 = vmatpush1.bf16.msra.mxu1 %v6407_v29  ;;  %4794 = vmatprep.subr.bf16.mxu0 %v6409_v51  ;;  %v6427_v29 = vpack.c.bf16 %v2317_v49, %v2309_v14  ;;  %7259 = vst [vmem:[#allocation93_spill] sm:$0xff] %v6431_v28  ;;  %v6433_v59 = vpack.c.bf16 %v2334_v16, %v2326_v15  ;;  %7261 = vst [vmem:[#allocation95_spill] sm:$0xff] %v6436_v2  ;;  %v2342_v51 = vld [vmem:[#allocation6 + $0x628] sm:$0xff]  ;;  %v2344_v14 = vld [vmem:[#allocation6 + $0x638] sm:$0xff] }
 0x241   :  { %4858 = vmatprep.subr.bf16.mxu1 %v6412_v7  ;;  %v2335_v7 = vld [vmem:[#allocation6 + $0x5f0] sm:$0xff]  ;;  %v2352_v49 = vld [vmem:[#allocation6 + $0x678] sm:$0xff] }
 0x242   :  { %7258 = vst [vmem:[#allocation92_spill] sm:$0xff] %v6427_v29  ;;  %7260 = vst [vmem:[#allocation94_spill] sm:$0xff] %v6433_v59  ;;  %v6443_v16 = vpack.c.bf16 %v2335_v7, %v2327_v31  ;;  %v6448_v37 = vpack.c.bf16 %v2352_v49, %v2344_v14  ;;  %v2357_v7 = vld [vmem:[#allocation6 + $0x6a0] sm:$0xff]  ;;  %v2359_v14 = vld [vmem:[#allocation6 + $0x6b0] sm:$0xff] }
 0x243   :  { %4796 = vmatpush1.bf16.msra.mxu0 %v6415_v36  ;;  %v2350_v36 = vld [vmem:[#allocation6 + $0x668] sm:$0xff]  ;;  %v2365_v31 = vld [vmem:[#allocation6 + $0x6e0] sm:$0xff] }
 0x244   :  { %4860 = vmatpush1.bf16.msra.mxu1 %v6419_v9  ;;  %4798 = vmatprep.subr.bf16.mxu0 %v6421_v60  ;;  %v6439_v9 = vpack.c.bf16 %v2333_v57, %v2325_v55  ;;  %7263 = vst [vmem:[#allocation97_spill] sm:$0xff] %v6443_v16  ;;  %v6445_v15 = vpack.c.bf16 %v2350_v36, %v2342_v51  ;;  %7265 = vst [vmem:[#allocation99_spill] sm:$0xff] %v6448_v37  ;;  %v2358_v60 = vld [vmem:[#allocation6 + $0x6a8] sm:$0xff]  ;;  %v2360_v55 = vld [vmem:[#allocation6 + $0x6b8] sm:$0xff] }
 0x245   :  { %4862 = vmatprep.subr.bf16.mxu1 %v6424_v34  ;;  %v2351_v34 = vld [vmem:[#allocation6 + $0x670] sm:$0xff]  ;;  %v2368_v57 = vld [vmem:[#allocation6 + $0x6f8] sm:$0xff] }
 0x246   :  { %7262 = vst [vmem:[#allocation96_spill] sm:$0xff] %v6439_v9  ;;  %7264 = vst [vmem:[#allocation98_spill] sm:$0xff] %v6445_v15  ;;  %v6455_v36 = vpack.c.bf16 %v2351_v34, %v2343_v35  ;;  %v6460_v49 = vpack.c.bf16 %v2368_v57, %v2360_v55  ;;  %v2373_v34 = vld [vmem:[#allocation6 + $0x720] sm:$0xff]  ;;  %v2375_v55 = vld [vmem:[#allocation6 + $0x730] sm:$0xff] }
 0x247   :  { %4800 = vmatpush1.bf16.msra.mxu0 %v6427_v29  ;;  %v2366_v29 = vld [vmem:[#allocation6 + $0x6e8] sm:$0xff]  ;;  %v2381_v35 = vld [vmem:[#allocation6 + $0x760] sm:$0xff] }
 0x248   :  { %4864 = vmatpush1.bf16.msra.mxu1 %v6431_v28  ;;  %4802 = vmatprep.subr.bf16.mxu0 %v6433_v59  ;;  %v6451_v28 = vpack.c.bf16 %v2349_v41, %v2341_v18  ;;  %7267 = vst [vmem:[#allocation101_spill] sm:$0xff] %v6455_v36  ;;  %v6457_v51 = vpack.c.bf16 %v2366_v29, %v2358_v60  ;;  %7268 = vst [vmem:[#allocation102_spill] sm:$0xff] %v6460_v49  ;;  %v2374_v59 = vld [vmem:[#allocation6 + $0x728] sm:$0xff]  ;;  %v2376_v18 = vld [vmem:[#allocation6 + $0x738] sm:$0xff] }
 0x249   :  { %4866 = vmatprep.subr.bf16.mxu1 %v6436_v2  ;;  %v2367_v2 = vld [vmem:[#allocation6 + $0x6f0] sm:$0xff]  ;;  %v2384_v41 = vld [vmem:[#allocation6 + $0x778] sm:$0xff] }
 0x24a   :  { %7266 = vst [vmem:[#allocation100_spill] sm:$0xff] %v6451_v28  ;;  %v6467_v29 = vpack.c.bf16 %v2367_v2, %v2359_v14  ;;  %v6472_v57 = vpack.c.bf16 %v2384_v41, %v2376_v18  ;;  %v2389_v2 = vld [vmem:[#allocation6 + $0x7a0] sm:$0xff]  ;;  %v2391_v41 = vld [vmem:[#allocation6 + $0x7b0] sm:$0xff] }
 0x24b   :  { %4804 = vmatpush1.bf16.msra.mxu0 %v6439_v9  ;;  %v2382_v9 = vld [vmem:[#allocation6 + $0x768] sm:$0xff]  ;;  %v2397_v14 = vld [vmem:[#allocation6 + $0x7e0] sm:$0xff] }
 0x24c   :  { %4868 = vmatpush1.bf16.msra.mxu1 %v6443_v16  ;;  %4806 = vmatprep.subr.bf16.mxu0 %v6445_v15  ;;  %v6463_v16 = vpack.c.bf16 %v2365_v31, %v2357_v7  ;;  %v6469_v60 = vpack.c.bf16 %v2382_v9, %v2374_v59  ;;  %v2390_v15 = vld [vmem:[#allocation6 + $0x7a8] sm:$0xff]  ;;  %v2392_v7 = vld [vmem:[#allocation6 + $0x7b8] sm:$0xff] }
 0x24d   :  { %4870 = vmatprep.subr.bf16.mxu1 %v6448_v37  ;;  %v2383_v37 = vld [vmem:[#allocation6 + $0x770] sm:$0xff]  ;;  %v2400_v31 = vld [vmem:[#allocation6 + $0x7f8] sm:$0xff] }
 0x24e   :  { %v6479_v9 = vpack.c.bf16 %v2383_v37, %v2375_v55  ;;  %v6484_v18 = vpack.c.bf16 %v2400_v31, %v2392_v7  ;;  %v7274_v55 = vld [vmem:[#allocation33_spill] sm:$0xff]  ;;  %v7275_v7 = vld [vmem:[#allocation34_spill] sm:$0xff]  ;;  %v7276_v31 = vld [vmem:[#allocation35_spill] sm:$0xff] }
 0x24f   :  { %4808 = vmatpush1.bf16.msra.mxu0 %v6451_v28  ;;  %v2398_v28 = vld [vmem:[#allocation6 + $0x7e8] sm:$0xff] }
 0x250   :  { %4872 = vmatpush1.bf16.msra.mxu1 %v6455_v36  ;;  %4810 = vmatprep.subr.bf16.mxu0 %v6457_v51  ;;  %v6475_v36 = vpack.c.bf16 %v2381_v35, %v2373_v34  ;;  %v6481_v59 = vpack.c.bf16 %v2398_v28, %v2390_v15  ;;  %v6487_v34 = vpack.c.bf16 %v2397_v14, %v2389_v2  ;;  %v7270_v28 = vld [vmem:[#allocation29_spill] sm:$0xff]  ;;  %v7271_v15 = vld [vmem:[#allocation30_spill] sm:$0xff]  ;;  %v7273_v35 = vld [vmem:[#allocation32_spill] sm:$0xff] }
 0x251   :  { %4874 = vmatprep.subr.bf16.mxu1 %v6460_v49  ;;  %v2399_v49 = vld [vmem:[#allocation6 + $0x7f0] sm:$0xff]  ;;  %v7277_v2 = vld [vmem:[#allocation36_spill] sm:$0xff] }
 0x252   :  { %v6491_v37 = vpack.c.bf16 %v2399_v49, %v2391_v41  ;;  %v7272_v49 = vld [vmem:[#allocation31_spill] sm:$0xff]  ;;  %v7278_v14 = vld [vmem:[#allocation37_spill] sm:$0xff]  ;;  %v7279_v41 = vld [vmem:[#allocation38_spill] sm:$0xff] }
 0x253   :  { %4812 = vmatpush1.bf16.msra.mxu0 %v6463_v16 }
 0x254   :  { %4876 = vmatpush1.bf16.msra.mxu1 %v6467_v29  ;;  %4814 = vmatprep.subr.bf16.mxu0 %v6469_v60 }
 0x255   :  { %4878 = vmatprep.subr.bf16.mxu1 %v6472_v57 }
 0x257   :  { %4816 = vmatpush1.bf16.msra.mxu0 %v6475_v36 }
 0x258   :  { %4880 = vmatpush1.bf16.msra.mxu1 %v6479_v9  ;;  %4818 = vmatprep.subr.bf16.mxu0 %v6481_v59 }
 0x259   :  { %4882 = vmatprep.subr.bf16.mxu1 %v6484_v18 }
 0x25b   :  { %4820 = vmatpush1.bf16.msra.mxu0 %v6487_v34 }
 0x25c   :  { %4884 = vmatpush1.bf16.msra.mxu1 %v6491_v37  ;;  %4886 = vmatprep.subr.bf16.mxu0 %v6102_v1 }
 0x25d   :  { %4950 = vmatprep.subr.bf16.mxu1 %v6104_v5 }
 0x25e   :  { %2620 = vmatmul.mubr.f32.vlgmr.msra.gmra.mrb[12].mxu0 %v7220_v0 }
 0x25f   :  { %2697 = vmatmul.mubr.f32.vlgmr.msra.gmra.mrb[12].mxu1 %v7220_v0  ;;  %2625 = vmatprep.mubr.f32.mxu0 %v7220_v0 }
 0x260   :  { %2702 = vmatprep.mubr.f32.mxu1 %v7220_v0  ;;  %4888 = vmatpush1.bf16.msra.mxu0 %v6106_v11 }
 0x261   :  { %4952 = vmatpush1.bf16.msra.mxu1 %v6109_v12  ;;  %4890 = vmatprep.subr.bf16.mxu0 %v6111_v13 }
 0x262   :  { %2626 = vmatmul.mubr.f32.gmra.mrb[14].mxu0 %v7220_v0  ;;  %4954 = vmatprep.subr.bf16.mxu1 %v6114_v17 }
 0x263   :  { %2703 = vmatmul.mubr.f32.gmra.mrb[14].mxu1 %v7220_v0  ;;  %v7269_v0 = vld [vmem:[#allocation28_spill] sm:$0xff] }
 0x264   :  { %4892 = vmatpush1.bf16.msra.mxu0 %v6117_v24 }
 0x265   :  { %4956 = vmatpush1.bf16.msra.mxu1 %v6121_v25  ;;  %4894 = vmatprep.subr.bf16.mxu0 %v6123_v26 }
 0x266   :  { %4958 = vmatprep.subr.bf16.mxu1 %v6126_v30 }
 0x268   :  { %4896 = vmatpush1.bf16.msra.mxu0 %v6129_v38 }
 0x269   :  { %4960 = vmatpush1.bf16.msra.mxu1 %v6133_v39  ;;  %4898 = vmatprep.subr.bf16.mxu0 %v6135_v40 }
 0x26a   :  { %4962 = vmatprep.subr.bf16.mxu1 %v6138_v44 }
 0x26c   :  { %4900 = vmatpush1.bf16.msra.mxu0 %v6141_v52 }
 0x26d   :  { %4964 = vmatpush1.bf16.msra.mxu1 %v6145_v53  ;;  %4902 = vmatprep.subr.bf16.mxu0 %v6147_v54 }
 0x26e   :  { %4966 = vmatprep.subr.bf16.mxu1 %v6150_v58 }
 0x270   :  { %4904 = vmatpush1.bf16.msra.mxu0 %v6153_v3 }
 0x271   :  { %4968 = vmatpush1.bf16.msra.mxu1 %v6157_v4  ;;  %4906 = vmatprep.subr.bf16.mxu0 %v6159_v6 }
 0x272   :  { %4970 = vmatprep.subr.bf16.mxu1 %v6162_v10 }
 0x274   :  { %4908 = vmatpush1.bf16.msra.mxu0 %v6165_v22 }
 0x275   :  { %4972 = vmatpush1.bf16.msra.mxu1 %v6169_v23  ;;  %4910 = vmatprep.subr.bf16.mxu0 %v6171_v27 }
 0x276   :  { %4974 = vmatprep.subr.bf16.mxu1 %v6174_v32 }
 0x278   :  { %4912 = vmatpush1.bf16.msra.mxu0 %v6177_v43 }
 0x279   :  { %4976 = vmatpush1.bf16.msra.mxu1 %v6181_v45  ;;  %4914 = vmatprep.subr.bf16.mxu0 %v6183_v46 }
 0x27a   :  { %4978 = vmatprep.subr.bf16.mxu1 %v6186_v50 }
 0x27c   :  { %4916 = vmatpush1.bf16.msra.mxu0 %v6191_v61 }
 0x27d   :  { %4980 = vmatpush1.bf16.msra.mxu1 %v6195_v62  ;;  %4918 = vmatprep.subr.bf16.mxu0 %v6197_v63 }
 0x27e   :  { %4982 = vmatprep.subr.bf16.mxu1 %v6200_v8 }
 0x280   :  { %4920 = vmatpush1.bf16.msra.mxu0 %v6203_v19 }
 0x281   :  { %4984 = vmatpush1.bf16.msra.mxu1 %v6207_v20  ;;  %4922 = vmatprep.subr.bf16.mxu0 %v6209_v21 }
 0x282   :  { %4986 = vmatprep.subr.bf16.mxu1 %v6212_v33 }
 0x284   :  { %4924 = vmatpush1.bf16.msra.mxu0 %v6215_v42  ;;  %v893_v42 = vlaneseq }
 0x285   :  { %4988 = vmatpush1.bf16.msra.mxu1 %v6219_v47  ;;  %4926 = vmatprep.subr.bf16.mxu0 %v6221_v48 }
 0x286   :  { %4990 = vmatprep.subr.bf16.mxu1 %v6224_v56 }
 0x288   :  { %4928 = vmatpush1.bf16.msra.mxu0 %v7269_v0  ;;  %v7280_v0 = vld [vmem:[#allocation39_spill] sm:$0xff] }
 0x289   :  { %4992 = vmatpush1.bf16.msra.mxu1 %v7270_v28  ;;  %4930 = vmatprep.subr.bf16.mxu0 %v7271_v15  ;;  %v7281_v28 = vld [vmem:[#allocation40_spill] sm:$0xff]  ;;  %v7282_v15 = vld [vmem:[#allocation41_spill] sm:$0xff] }
 0x28a   :  { %4994 = vmatprep.subr.bf16.mxu1 %v7272_v49  ;;  %v7283_v49 = vld [vmem:[#allocation42_spill] sm:$0xff] }
 0x28c   :  { %4932 = vmatpush1.bf16.msra.mxu0 %v7273_v35  ;;  %v7284_v35 = vld [vmem:[#allocation43_spill] sm:$0xff] }
 0x28d   :  { %4996 = vmatpush1.bf16.msra.mxu1 %v7274_v55  ;;  %4934 = vmatprep.subr.bf16.mxu0 %v7275_v7  ;;  %v7285_v55 = vld [vmem:[#allocation44_spill] sm:$0xff]  ;;  %v7286_v7 = vld [vmem:[#allocation45_spill] sm:$0xff] }
 0x28e   :  { %4998 = vmatprep.subr.bf16.mxu1 %v7276_v31  ;;  %v7287_v31 = vld [vmem:[#allocation46_spill] sm:$0xff] }
 0x290   :  { %4936 = vmatpush1.bf16.msra.mxu0 %v7277_v2  ;;  %v7288_v2 = vld [vmem:[#allocation47_spill] sm:$0xff] }
 0x291   :  { %5000 = vmatpush1.bf16.msra.mxu1 %v7278_v14  ;;  %4938 = vmatprep.subr.bf16.mxu0 %v7279_v41  ;;  %v7289_v14 = vld [vmem:[#allocation48_spill] sm:$0xff]  ;;  %v7290_v41 = vld [vmem:[#allocation49_spill] sm:$0xff] }
 0x292   :  { %5002 = vmatprep.subr.bf16.mxu1 %v7280_v0  ;;  %v7291_v0 = vld [vmem:[#allocation50_spill] sm:$0xff] }
 0x294   :  { %4940 = vmatpush1.bf16.msra.mxu0 %v7281_v28  ;;  %v7292_v28 = vld [vmem:[#allocation51_spill] sm:$0xff] }
 0x295   :  { %5004 = vmatpush1.bf16.msra.mxu1 %v7282_v15  ;;  %4942 = vmatprep.subr.bf16.mxu0 %v7283_v49 }
 0x296   :  { %5006 = vmatprep.subr.bf16.mxu1 %v7284_v35 }
 0x298   :  { %4944 = vmatpush1.bf16.msra.mxu0 %v7285_v55 }
 0x299   :  { %5008 = vmatpush1.bf16.msra.mxu1 %v7286_v7  ;;  %4946 = vmatprep.subr.bf16.mxu0 %v7287_v31  ;;  %v894_v31 = vshrl.u32 %v893_v42, 7 }
 0x29a   :  { %5010 = vmatprep.subr.bf16.mxu1 %v7288_v2  ;;  %v891_v2 = vld [vmem:[#allocation7] sm:$0xff] }
 0x29b   :  { %v895_v33 = vsub.s32 0, %v894_v31  ;;  %v903_v21 = vsub.s32 2, %v894_v31  ;;  %v907_v20 = vsub.s32 3, %v894_v31 }
 0x29c   :  { %4948 = vmatpush1.bf16.msra.mxu0 %v7289_v14  ;;  %v899_v14 = vsub.s32 1, %v894_v31 }
 0x29d   :  { %5012 = vmatpush1.bf16.msra.mxu1 %v7290_v41  ;;  %5014 = vmatprep.subr.bf16.mxu0 %v7291_v0  ;;  %v6568_v41 = vrot.slane %v891_v2, %v895_v33  ;;  %v6570_v0 = vrot.slane %v891_v2, %v903_v21  ;;  %v6574_v19 = vrot.slane %v891_v2, %v907_v20 }
 0x29e   :  { %5078 = vmatprep.subr.bf16.mxu1 %v7292_v28  ;;  %v6572_v28 = vrot.slane %v891_v2, %v899_v14 }
 0x29f   :  { %7294 = vst [vmem:[#allocation104_spill] sm:$0xff] %v6574_v19 }
 0x2a0   :  { %7293 = vst [vmem:[#allocation103_spill] sm:$0xff] %v6572_v28 }
 0x2f1   :  { %v2467_v15 = vpop.f32.mrb[0].mxu0 }
 0x2f2   :  { %v2544_v49 = vpop.f32.mrb[0].mxu1  ;;  %v2469_v56 = vpop.f32.mrb[1].mxu0  ;;  %v5445_v8 = vadd.f32 %v2467_v15, %v6568_v41 }
 0x2f3   :  { %v2546_v35 = vpop.f32.mrb[1].mxu1  ;;  %v5457_v63 = vadd.f32 %v2544_v49, %v6570_v0  ;;  %v5446_v62 = vadd.f32 %v2469_v56, %v6572_v28 }
 0x2f4   :  { %v5458_v42 = vadd.f32 %v2546_v35, %v6574_v19  ;;  %v3786_v61 = vmul.f32 -1.442695, %v5445_v8 }
 0x2f5   :  { %v2473_v48 = vpop.f32.mrb[2].mxu0  ;;  %v3790_v46 = vmul.f32 -1.442695, %v5457_v63  ;;  %v3787_v21 = vmul.f32 -1.442695, %v5446_v62 }
 0x2f6   :  { %v2550_v55 = vpop.f32.mrb[2].mxu1  ;;  %v2475_v47 = vpop.f32.mrb[3].mxu0  ;;  %v5447_v50 = vadd.f32 %v2473_v48, %v6568_v41  ;;  %v3791_v45 = vmul.f32 -1.442695, %v5458_v42  ;;  %5647 = vpow2.f32 %v3786_v61 }
 0x2f7   :  { %v2552_v7 = vpop.f32.mrb[3].mxu1  ;;  %v5459_v33 = vadd.f32 %v2550_v55, %v6570_v0  ;;  %v5448_v14 = vadd.f32 %v2475_v47, %v6572_v28  ;;  %5649 = vpow2.f32 %v3790_v46 }
 0x2f8   :  { %v3788_v20 = vmul.f32 -1.442695, %v5447_v50  ;;  %v5460_v49 = vadd.f32 %v2552_v7, %v6574_v19  ;;  %5651 = vpow2.f32 %v3787_v21  ;;  %v911_v50 = vsub.s32 4, %v894_v31 }
 0x2f9   :  { %v3792_v15 = vmul.f32 -1.442695, %v5459_v33  ;;  %v3789_v56 = vmul.f32 -1.442695, %v5448_v14  ;;  %5653 = vpow2.f32 %v3791_v45  ;;  %v919_v33 = vsub.s32 6, %v894_v31 }
 0x2fa   :  { %5655 = vpow2.f32 %v3788_v20  ;;  %v3793_v8 = vmul.f32 -1.442695, %v5460_v49  ;;  %v915_v7 = vsub.s32 5, %v894_v31  ;;  %v923_v45 = vsub.s32 7, %v894_v31 }
 0x2fb   :  { %5657 = vpow2.f32 %v3792_v15  ;;  %v6584_v49 = vrot.slane %v891_v2, %v911_v50 }
 0x2fc   :  { %5659 = vpow2.f32 %v3789_v56 }
 0x2fd   :  { %5661 = vpow2.f32 %v3793_v8  ;;  %7295 = vst [vmem:[#allocation105_spill] sm:$0xff] %v6584_v49 }
 0x300   :  { %v5648_v63 = vpop.eup %5647 }
 0x301   :  { %v5650_v48 = vpop.eup %5649  ;;  %v2737_v47 = vadd.f32 1.0, %v5648_v63  ;;  %v6586_v63 = vrot.slane %v891_v2, %v919_v33 }
 0x302   :  { %v5652_v62 = vpop.eup %5651  ;;  %v2761_v61 = vadd.f32 1.0, %v5650_v48  ;;  %v6588_v48 = vrot.slane %v891_v2, %v915_v7 }
 0x303   :  { %v5654_v35 = vpop.eup %5653  ;;  %v2738_v42 = vadd.f32 1.0, %v5652_v62  ;;  %5663 = vrcp.f32 %v2737_v47  ;;  %7296 = vst [vmem:[#allocation106_spill] sm:$0xff] %v6586_v63  ;;  %v6590_v62 = vrot.slane %v891_v2, %v923_v45 }
 0x304   :  { %v5656_v55 = vpop.eup %5655  ;;  %v2762_v14 = vadd.f32 1.0, %v5654_v35  ;;  %5665 = vrcp.f32 %v2761_v61  ;;  %7297 = vst [vmem:[#allocation107_spill] sm:$0xff] %v6588_v48 }
 0x305   :  { %v5658_v46 = vpop.eup %5657  ;;  %v2739_v20 = vadd.f32 1.0, %v5656_v55  ;;  %5667 = vrcp.f32 %v2738_v42  ;;  %7298 = vst [vmem:[#allocation108_spill] sm:$0xff] %v6590_v62 }
 0x306   :  { %v5660_v21 = vpop.eup %5659  ;;  %v2763_v15 = vadd.f32 1.0, %v5658_v46  ;;  %5669 = vrcp.f32 %v2762_v14 }
 0x307   :  { %v5662_v56 = vpop.eup %5661  ;;  %v2740_v8 = vadd.f32 1.0, %v5660_v21  ;;  %5671 = vrcp.f32 %v2739_v20 }
 0x308   :  { %5673 = vrcp.f32 %v2763_v15  ;;  %v2764_v31 = vadd.f32 1.0, %v5662_v56 }
 0x309   :  { %5675 = vrcp.f32 %v2740_v8 }
 0x30d   :  { %v5664_v45 = vpop.eup %5663 }
 0x30e   :  { %v5666_v8 = vpop.eup %5665 }
 0x331   :  { %v2621_v19 = vpop.f32.mrb[12].mxu0 }
 0x332   :  { %v5469_v35 = vadd.f32 %v2621_v19, %v6584_v49  ;;  %v2698_v47 = vpop.f32.mrb[12].mxu1  ;;  %v2623_v55 = vpop.f32.mrb[13].mxu0 }
 0x333   :  { %v5481_v61 = vadd.f32 %v2698_v47, %v6586_v63  ;;  %v5470_v50 = vadd.f32 %v2623_v55, %v6588_v48  ;;  %v2700_v46 = vpop.f32.mrb[13].mxu1  ;;  %v5668_v47 = vpop.eup %5667 }
 0x334   :  { %5677 = vtanh.f32 %v5469_v35  ;;  %v5482_v42 = vadd.f32 %v2700_v46, %v6590_v62 }
 0x335   :  { %v3794_v33 = vmul.f32 -1.442695, %v5481_v61  ;;  %5679 = vtanh.f32 %v5470_v50  ;;  %v2627_v2 = vpop.f32.mrb[14].mxu0 }
 0x336   :  { %5681 = vrcp.f32 %v2764_v31  ;;  %v3795_v7 = vmul.f32 -1.442695, %v5482_v42  ;;  %v5471_v21 = vadd.f32 %v2627_v2, %v6584_v49  ;;  %v2704_v14 = vpop.f32.mrb[14].mxu1  ;;  %v2629_v19 = vpop.f32.mrb[15].mxu0 }
 0x337   :  { %5683 = vpow2.f32 %v3794_v33  ;;  %v5483_v20 = vadd.f32 %v2704_v14, %v6586_v63  ;;  %v5472_v15 = vadd.f32 %v2629_v19, %v6588_v48  ;;  %v2706_v56 = vpop.f32.mrb[15].mxu1  ;;  %v5670_v31 = vpop.eup %5669  ;;  %v2801_v14 = vmul.f32 0.0, %v5666_v8 }
 0x338   :  { %5685 = vpow2.f32 %v3795_v7  ;;  %v5484_v35 = vadd.f32 %v2706_v56, %v6590_v62  ;;  %v5672_v50 = vpop.eup %5671  ;;  %v2802_v63 = vmul.f32 0.0, %v5670_v31 }
 0x339   :  { %5687 = vtanh.f32 %v5471_v21  ;;  %v3796_v55 = vmul.f32 -1.442695, %v5483_v20  ;;  %v5674_v46 = vpop.eup %5673 }
 0x33a   :  { %5689 = vtanh.f32 %v5472_v15  ;;  %v3797_v61 = vmul.f32 -1.442695, %v5484_v35  ;;  %v5676_v42 = vpop.eup %5675 }
 0x33b   :  { %5691 = vpow2.f32 %v3796_v55 }
 0x33c   :  { %5693 = vpow2.f32 %v3797_v61  ;;  %v2803_v61 = vmul.f32 0.0, %v5674_v46 }
 0x33e   :  { %v5678_v33 = vpop.eup %5677 }
 0x33f   :  { %v5680_v2 = vpop.eup %5679  ;;  %v2805_v19 = vmul.f32 %v5678_v33, %v5664_v45 }
 0x340   :  { %v5682_v48 = vpop.eup %5681  ;;  %v2806_v7 = vmul.f32 %v5680_v2, %v5668_v47 }
 0x341   :  { %v5684_v49 = vpop.eup %5683  ;;  %v6600_v56 = vadd.f32 %v2805_v19, %v2801_v14  ;;  %v2804_v45 = vmul.f32 0.0, %v5682_v48 }
 0x342   :  { %v5686_v21 = vpop.eup %5685  ;;  %v2789_v20 = vadd.f32 1.0, %v5684_v49  ;;  %v6602_v62 = vadd.f32 %v2806_v7, %v2802_v63 }
 0x343   :  { %v5688_v15 = vpop.eup %5687  ;;  %5695 = vtanh.f32 %v6600_v56  ;;  %v2790_v35 = vadd.f32 1.0, %v5686_v21 }
 0x344   :  { %v5690_v55 = vpop.eup %5689  ;;  %5697 = vrcp.f32 %v2789_v20  ;;  %v2807_v28 = vmul.f32 %v5688_v15, %v5672_v50  ;;  %v7299_v15 = vld [vmem:[#allocation52_spill] sm:$0xff] }
 0x345   :  { %v5692_v8 = vpop.eup %5691  ;;  %5699 = vtanh.f32 %v6602_v62  ;;  %v2808_v47 = vmul.f32 %v5690_v55, %v5676_v42 }
 0x346   :  { %v5694_v31 = vpop.eup %5693  ;;  %5701 = vrcp.f32 %v2790_v35  ;;  %v6606_v33 = vadd.f32 %v2807_v28, %v2803_v61  ;;  %v2791_v49 = vadd.f32 1.0, %v5692_v8  ;;  %v7300_v35 = vld [vmem:[#allocation53_spill] sm:$0xff]  ;;  %v7301_v61 = vld [vmem:[#allocation54_spill] sm:$0xff]  ;;  %v7302_v8 = vld [vmem:[#allocation55_spill] sm:$0xff] }
 0x347   :  { %v6608_v63 = vadd.f32 %v2808_v47, %v2804_v45  ;;  %v2792_v2 = vadd.f32 1.0, %v5694_v31  ;;  %v7303_v47 = vld [vmem:[#allocation56_spill] sm:$0xff]  ;;  %v7304_v31 = vld [vmem:[#allocation57_spill] sm:$0xff] }
 0x348   :  { %5703 = vtanh.f32 %v6606_v33 }
 0x349   :  { %5705 = vrcp.f32 %v2791_v49  ;;  %v7305_v49 = vld [vmem:[#allocation58_spill] sm:$0xff] }
 0x34a   :  { %5707 = vtanh.f32 %v6608_v63 }
 0x34b   :  { %5709 = vrcp.f32 %v2792_v2  ;;  %v7306_v2 = vld [vmem:[#allocation59_spill] sm:$0xff] }
 0x34d   :  { %v5696_v50 = vpop.eup %5695 }
 0x34e   :  { %v5698_v46 = vpop.eup %5697 }
 0x34f   :  { %v5700_v48 = vpop.eup %5699  ;;  %v6612_v7 = vmul.f32 %v5698_v46, %v5696_v50  ;;  %v7307_v50 = vld [vmem:[#allocation60_spill] sm:$0xff]  ;;  %v7308_v46 = vld [vmem:[#allocation61_spill] sm:$0xff] }
 0x350   :  { %v5702_v14 = vpop.eup %5701 }
 0x351   :  { %v2818_v19 = vmul.f32 %v5702_v14, %v5700_v48  ;;  %v7309_v48 = vld [vmem:[#allocation62_spill] sm:$0xff]  ;;  %v7310_v14 = vld [vmem:[#allocation63_spill] sm:$0xff] }
 0x352   :  { %v5704_v42 = vpop.eup %5703 }
 0x353   :  { %v5706_v28 = vpop.eup %5705  ;;  %2885 = vmatprep.mubr.f32.mxu0 %v2818_v19  ;;  %2962 = vmatprep.mubr.f32.mxu1 %v2818_v19 }
 0x354   :  { %v5708_v21 = vpop.eup %5707  ;;  %2886 = vmatmul.mubr.f32.vlgmr.msra.gmra.mrb[4].mxu0 %v6612_v7  ;;  %2963 = vmatmul.mubr.f32.vlgmr.msra.gmra.mrb[4].mxu1 %v6612_v7  ;;  %v6622_v45 = vmul.f32 %v5706_v28, %v5704_v42  ;;  %v7311_v42 = vld [vmem:[#allocation64_spill] sm:$0xff]  ;;  %v7312_v28 = vld [vmem:[#allocation65_spill] sm:$0xff] }
 0x355   :  { %v5710_v20 = vpop.eup %5709  ;;  %5016 = vmatpush1.bf16.msra.mxu0 %v7299_v15  ;;  %5080 = vmatpush1.bf16.msra.mxu1 %v7300_v35 }
 0x356   :  { %v6618_v55 = vmul.f32 %v5710_v20, %v5708_v21  ;;  %5018 = vmatprep.subr.bf16.mxu0 %v7301_v61  ;;  %5082 = vmatprep.subr.bf16.mxu1 %v7302_v8  ;;  %v7313_v21 = vld [vmem:[#allocation66_spill] sm:$0xff]  ;;  %v7314_v20 = vld [vmem:[#allocation67_spill] sm:$0xff] }
 0x358   :  { %2891 = vmatprep.mubr.f32.mxu0 %v6618_v55  ;;  %2968 = vmatprep.mubr.f32.mxu1 %v6618_v55 }
 0x359   :  { %2892 = vmatmul.mubr.f32.gmra.mrb[6].mxu0 %v6622_v45  ;;  %2969 = vmatmul.mubr.f32.gmra.mrb[6].mxu1 %v6622_v45 }
 0x35a   :  { %5020 = vmatpush1.bf16.msra.mxu0 %v7303_v47  ;;  %5084 = vmatpush1.bf16.msra.mxu1 %v7304_v31 }
 0x35b   :  { %3039 = vmatprep.mubr.f32.mxu0 %v2818_v19  ;;  %3116 = vmatprep.mubr.f32.mxu1 %v2818_v19  ;;  %v7315_v19 = vld [vmem:[#allocation68_spill] sm:$0xff] }
 0x35c   :  { %5022 = vmatprep.subr.bf16.mxu0 %v7305_v49  ;;  %5086 = vmatprep.subr.bf16.mxu1 %v7306_v2  ;;  %v7316_v49 = vld [vmem:[#allocation69_spill] sm:$0xff]  ;;  %v7317_v2 = vld [vmem:[#allocation70_spill] sm:$0xff] }
 0x35e   :  { %5024 = vmatpush1.bf16.msra.mxu0 %v7307_v50  ;;  %5088 = vmatpush1.bf16.msra.mxu1 %v7308_v46  ;;  %v7318_v50 = vld [vmem:[#allocation71_spill] sm:$0xff]  ;;  %v7319_v46 = vld [vmem:[#allocation72_spill] sm:$0xff] }
 0x35f   :  { %5026 = vmatprep.subr.bf16.mxu0 %v7309_v48  ;;  %5090 = vmatprep.subr.bf16.mxu1 %v7310_v14  ;;  %v7320_v48 = vld [vmem:[#allocation73_spill] sm:$0xff]  ;;  %v7321_v14 = vld [vmem:[#allocation74_spill] sm:$0xff] }
 0x362   :  { %5028 = vmatpush1.bf16.msra.mxu0 %v7311_v42  ;;  %5092 = vmatpush1.bf16.msra.mxu1 %v7312_v28  ;;  %v7322_v42 = vld [vmem:[#allocation75_spill] sm:$0xff]  ;;  %v7323_v28 = vld [vmem:[#allocation76_spill] sm:$0xff] }
 0x363   :  { %5030 = vmatprep.subr.bf16.mxu0 %v7313_v21  ;;  %5094 = vmatprep.subr.bf16.mxu1 %v7314_v20  ;;  %v7324_v21 = vld [vmem:[#allocation77_spill] sm:$0xff]  ;;  %v7325_v20 = vld [vmem:[#allocation78_spill] sm:$0xff] }
 0x366   :  { %5032 = vmatpush1.bf16.msra.mxu0 %v7315_v19  ;;  %5096 = vmatpush1.bf16.msra.mxu1 %v7316_v49  ;;  %v7326_v19 = vld [vmem:[#allocation79_spill] sm:$0xff]  ;;  %v7327_v49 = vld [vmem:[#allocation80_spill] sm:$0xff] }
 0x367   :  { %5034 = vmatprep.subr.bf16.mxu0 %v7317_v2  ;;  %5098 = vmatprep.subr.bf16.mxu1 %v7318_v50  ;;  %v7328_v2 = vld [vmem:[#allocation81_spill] sm:$0xff]  ;;  %v7329_v50 = vld [vmem:[#allocation82_spill] sm:$0xff] }
 0x36a   :  { %5036 = vmatpush1.bf16.msra.mxu0 %v7319_v46  ;;  %5100 = vmatpush1.bf16.msra.mxu1 %v7320_v48  ;;  %v7330_v46 = vld [vmem:[#allocation83_spill] sm:$0xff]  ;;  %v7331_v48 = vld [vmem:[#allocation84_spill] sm:$0xff] }
 0x36b   :  { %5038 = vmatprep.subr.bf16.mxu0 %v7321_v14  ;;  %5102 = vmatprep.subr.bf16.mxu1 %v7322_v42  ;;  %v7332_v14 = vld [vmem:[#allocation85_spill] sm:$0xff]  ;;  %v7333_v42 = vld [vmem:[#allocation86_spill] sm:$0xff] }
 0x36e   :  { %5040 = vmatpush1.bf16.msra.mxu0 %v7323_v28  ;;  %5104 = vmatpush1.bf16.msra.mxu1 %v7324_v21  ;;  %v7334_v28 = vld [vmem:[#allocation87_spill] sm:$0xff]  ;;  %v7335_v21 = vld [vmem:[#allocation88_spill] sm:$0xff] }
 0x36f   :  { %5042 = vmatprep.subr.bf16.mxu0 %v7325_v20  ;;  %5106 = vmatprep.subr.bf16.mxu1 %v7326_v19  ;;  %v7336_v20 = vld [vmem:[#allocation89_spill] sm:$0xff]  ;;  %v7337_v19 = vld [vmem:[#allocation90_spill] sm:$0xff] }
 0x372   :  { %5044 = vmatpush1.bf16.msra.mxu0 %v7327_v49  ;;  %5108 = vmatpush1.bf16.msra.mxu1 %v7328_v2  ;;  %v7338_v49 = vld [vmem:[#allocation91_spill] sm:$0xff]  ;;  %v7339_v2 = vld [vmem:[#allocation92_spill] sm:$0xff] }
 0x373   :  { %5046 = vmatprep.subr.bf16.mxu0 %v7329_v50  ;;  %5110 = vmatprep.subr.bf16.mxu1 %v7330_v46  ;;  %v7340_v50 = vld [vmem:[#allocation93_spill] sm:$0xff]  ;;  %v7341_v46 = vld [vmem:[#allocation94_spill] sm:$0xff] }
 0x376   :  { %5048 = vmatpush1.bf16.msra.mxu0 %v7331_v48  ;;  %5112 = vmatpush1.bf16.msra.mxu1 %v7332_v14  ;;  %v7342_v48 = vld [vmem:[#allocation95_spill] sm:$0xff]  ;;  %v7343_v14 = vld [vmem:[#allocation96_spill] sm:$0xff] }
 0x377   :  { %5050 = vmatprep.subr.bf16.mxu0 %v7333_v42  ;;  %5114 = vmatprep.subr.bf16.mxu1 %v7334_v28  ;;  %v7344_v42 = vld [vmem:[#allocation97_spill] sm:$0xff]  ;;  %v7345_v28 = vld [vmem:[#allocation98_spill] sm:$0xff] }
 0x37a   :  { %5052 = vmatpush1.bf16.msra.mxu0 %v7335_v21  ;;  %5116 = vmatpush1.bf16.msra.mxu1 %v7336_v20  ;;  %v7346_v21 = vld [vmem:[#allocation99_spill] sm:$0xff]  ;;  %v7347_v20 = vld [vmem:[#allocation100_spill] sm:$0xff] }
 0x37b   :  { %5054 = vmatprep.subr.bf16.mxu0 %v7337_v19  ;;  %5118 = vmatprep.subr.bf16.mxu1 %v7338_v49  ;;  %v7348_v19 = vld [vmem:[#allocation101_spill] sm:$0xff] }
 0x37e   :  { %5056 = vmatpush1.bf16.msra.mxu0 %v7339_v2  ;;  %5120 = vmatpush1.bf16.msra.mxu1 %v7340_v50  ;;  %v7349_v2 = vld [vmem:[#allocation102_spill] sm:$0xff] }
 0x37f   :  { %5058 = vmatprep.subr.bf16.mxu0 %v7341_v46  ;;  %5122 = vmatprep.subr.bf16.mxu1 %v7342_v48 }
 0x382   :  { %5060 = vmatpush1.bf16.msra.mxu0 %v7343_v14  ;;  %5124 = vmatpush1.bf16.msra.mxu1 %v7344_v42 }
 0x383   :  { %5062 = vmatprep.subr.bf16.mxu0 %v7345_v28  ;;  %5126 = vmatprep.subr.bf16.mxu1 %v7346_v21 }
 0x386   :  { %5064 = vmatpush1.bf16.msra.mxu0 %v7347_v20  ;;  %5128 = vmatpush1.bf16.msra.mxu1 %v7348_v19 }
 0x387   :  { %5066 = vmatprep.subr.bf16.mxu0 %v6457_v51  ;;  %5130 = vmatprep.subr.bf16.mxu1 %v7349_v2 }
 0x38a   :  { %5068 = vmatpush1.bf16.msra.mxu0 %v6463_v16  ;;  %5132 = vmatpush1.bf16.msra.mxu1 %v6467_v29 }
 0x38b   :  { %5070 = vmatprep.subr.bf16.mxu0 %v6469_v60  ;;  %5134 = vmatprep.subr.bf16.mxu1 %v6472_v57 }
 0x38e   :  { %5072 = vmatpush1.bf16.msra.mxu0 %v6475_v36  ;;  %5136 = vmatpush1.bf16.msra.mxu1 %v6479_v9 }
 0x38f   :  { %5074 = vmatprep.subr.bf16.mxu0 %v6481_v59  ;;  %5138 = vmatprep.subr.bf16.mxu1 %v6484_v18 }
 0x392   :  { %5076 = vmatpush1.bf16.msra.mxu0 %v6487_v34  ;;  %5140 = vmatpush1.bf16.msra.mxu1 %v6491_v37 }
 0x393   :  { %5142 = vmatprep.subr.bf16.mxu0 %v6102_v1  ;;  %5206 = vmatprep.subr.bf16.mxu1 %v6104_v5  ;;  %v7350_v1 = vld [vmem:[#allocation13_spill] sm:$0xff]  ;;  %v7351_v5 = vld [vmem:[#allocation14_spill] sm:$0xff] }
 0x395   :  { %3040 = vmatmul.mubr.f32.vlgmr.msra.gmra.mrb[16].mxu0 %v6612_v7  ;;  %3117 = vmatmul.mubr.f32.vlgmr.msra.gmra.mrb[16].mxu1 %v6612_v7  ;;  %v7377_v7 = vld [vmem:[#allocation40_spill] sm:$0xff] }
 0x396   :  { %3045 = vmatprep.mubr.f32.mxu0 %v6618_v55  ;;  %3122 = vmatprep.mubr.f32.mxu1 %v6618_v55  ;;  %v7378_v55 = vld [vmem:[#allocation41_spill] sm:$0xff] }
 0x397   :  { %5144 = vmatpush1.bf16.msra.mxu0 %v6106_v11  ;;  %5208 = vmatpush1.bf16.msra.mxu1 %v6109_v12  ;;  %v7352_v11 = vld [vmem:[#allocation15_spill] sm:$0xff]  ;;  %v7353_v12 = vld [vmem:[#allocation16_spill] sm:$0xff] }
 0x398   :  { %5146 = vmatprep.subr.bf16.mxu0 %v6111_v13  ;;  %5210 = vmatprep.subr.bf16.mxu1 %v6114_v17  ;;  %v7354_v13 = vld [vmem:[#allocation17_spill] sm:$0xff]  ;;  %v7355_v17 = vld [vmem:[#allocation18_spill] sm:$0xff] }
 0x399   :  { %3046 = vmatmul.mubr.f32.gmra.mrb[18].mxu0 %v6622_v45  ;;  %3123 = vmatmul.mubr.f32.gmra.mrb[18].mxu1 %v6622_v45  ;;  %v7379_v45 = vld [vmem:[#allocation42_spill] sm:$0xff] }
 0x39b   :  { %5148 = vmatpush1.bf16.msra.mxu0 %v6117_v24  ;;  %5212 = vmatpush1.bf16.msra.mxu1 %v6121_v25  ;;  %v7356_v24 = vld [vmem:[#allocation19_spill] sm:$0xff]  ;;  %v7357_v25 = vld [vmem:[#allocation20_spill] sm:$0xff] }
 0x39c   :  { %5150 = vmatprep.subr.bf16.mxu0 %v6123_v26  ;;  %5214 = vmatprep.subr.bf16.mxu1 %v6126_v30  ;;  %v7358_v26 = vld [vmem:[#allocation21_spill] sm:$0xff]  ;;  %v7359_v30 = vld [vmem:[#allocation22_spill] sm:$0xff] }
 0x39f   :  { %5152 = vmatpush1.bf16.msra.mxu0 %v6129_v38  ;;  %5216 = vmatpush1.bf16.msra.mxu1 %v6133_v39  ;;  %v7360_v38 = vld [vmem:[#allocation23_spill] sm:$0xff]  ;;  %v7361_v39 = vld [vmem:[#allocation24_spill] sm:$0xff] }
 0x3a0   :  { %5154 = vmatprep.subr.bf16.mxu0 %v6135_v40  ;;  %5218 = vmatprep.subr.bf16.mxu1 %v6138_v44  ;;  %v7362_v40 = vld [vmem:[#allocation25_spill] sm:$0xff]  ;;  %v7363_v44 = vld [vmem:[#allocation26_spill] sm:$0xff] }
 0x3a3   :  { %5156 = vmatpush1.bf16.msra.mxu0 %v6141_v52  ;;  %5220 = vmatpush1.bf16.msra.mxu1 %v6145_v53  ;;  %v7364_v52 = vld [vmem:[#allocation27_spill] sm:$0xff]  ;;  %v7365_v53 = vld [vmem:[#allocation28_spill] sm:$0xff] }
 0x3a4   :  { %5158 = vmatprep.subr.bf16.mxu0 %v6147_v54  ;;  %5222 = vmatprep.subr.bf16.mxu1 %v6150_v58  ;;  %v7366_v54 = vld [vmem:[#allocation29_spill] sm:$0xff]  ;;  %v7367_v58 = vld [vmem:[#allocation30_spill] sm:$0xff] }
 0x3a7   :  { %5160 = vmatpush1.bf16.msra.mxu0 %v6153_v3  ;;  %5224 = vmatpush1.bf16.msra.mxu1 %v6157_v4  ;;  %v7368_v3 = vld [vmem:[#allocation31_spill] sm:$0xff]  ;;  %v7369_v4 = vld [vmem:[#allocation32_spill] sm:$0xff] }
 0x3a8   :  { %5162 = vmatprep.subr.bf16.mxu0 %v6159_v6  ;;  %5226 = vmatprep.subr.bf16.mxu1 %v6162_v10  ;;  %v7370_v6 = vld [vmem:[#allocation33_spill] sm:$0xff]  ;;  %v7371_v10 = vld [vmem:[#allocation34_spill] sm:$0xff] }
 0x3ab   :  { %5164 = vmatpush1.bf16.msra.mxu0 %v6165_v22  ;;  %5228 = vmatpush1.bf16.msra.mxu1 %v6169_v23  ;;  %v7372_v22 = vld [vmem:[#allocation35_spill] sm:$0xff]  ;;  %v7373_v23 = vld [vmem:[#allocation36_spill] sm:$0xff] }
 0x3ac   :  { %5166 = vmatprep.subr.bf16.mxu0 %v6171_v27  ;;  %5230 = vmatprep.subr.bf16.mxu1 %v6174_v32  ;;  %v7374_v27 = vld [vmem:[#allocation37_spill] sm:$0xff]  ;;  %v7375_v32 = vld [vmem:[#allocation38_spill] sm:$0xff] }
 0x3af   :  { %5168 = vmatpush1.bf16.msra.mxu0 %v6177_v43  ;;  %5232 = vmatpush1.bf16.msra.mxu1 %v7350_v1  ;;  %v7376_v43 = vld [vmem:[#allocation39_spill] sm:$0xff] }
 0x3b0   :  { %5170 = vmatprep.subr.bf16.mxu0 %v7351_v5  ;;  %5234 = vmatprep.subr.bf16.mxu1 %v7352_v11  ;;  %v7380_v1 = vld [vmem:[#allocation43_spill] sm:$0xff]  ;;  %v7381_v5 = vld [vmem:[#allocation44_spill] sm:$0xff]  ;;  %v7382_v11 = vld [vmem:[#allocation45_spill] sm:$0xff] }
 0x3b3   :  { %5172 = vmatpush1.bf16.msra.mxu0 %v7353_v12  ;;  %5236 = vmatpush1.bf16.msra.mxu1 %v7354_v13  ;;  %v7383_v12 = vld [vmem:[#allocation46_spill] sm:$0xff]  ;;  %v7384_v13 = vld [vmem:[#allocation47_spill] sm:$0xff] }
 0x3b4   :  { %5174 = vmatprep.subr.bf16.mxu0 %v7355_v17  ;;  %5238 = vmatprep.subr.bf16.mxu1 %v7356_v24  ;;  %v7385_v17 = vld [vmem:[#allocation48_spill] sm:$0xff]  ;;  %v7386_v24 = vld [vmem:[#allocation49_spill] sm:$0xff] }
 0x3b7   :  { %5176 = vmatpush1.bf16.msra.mxu0 %v7357_v25  ;;  %5240 = vmatpush1.bf16.msra.mxu1 %v7358_v26  ;;  %v7387_v25 = vld [vmem:[#allocation50_spill] sm:$0xff]  ;;  %v7388_v26 = vld [vmem:[#allocation51_spill] sm:$0xff] }
 0x3b8   :  { %5178 = vmatprep.subr.bf16.mxu0 %v7359_v30  ;;  %5242 = vmatprep.subr.bf16.mxu1 %v7360_v38 }
 0x3bb   :  { %5180 = vmatpush1.bf16.msra.mxu0 %v7361_v39  ;;  %5244 = vmatpush1.bf16.msra.mxu1 %v7362_v40 }
 0x3bc   :  { %5182 = vmatprep.subr.bf16.mxu0 %v7363_v44  ;;  %5246 = vmatprep.subr.bf16.mxu1 %v7364_v52 }
 0x3bf   :  { %5184 = vmatpush1.bf16.msra.mxu0 %v7365_v53  ;;  %5248 = vmatpush1.bf16.msra.mxu1 %v7366_v54 }
 0x3c0   :  { %5186 = vmatprep.subr.bf16.mxu0 %v7367_v58  ;;  %5250 = vmatprep.subr.bf16.mxu1 %v7368_v3 }
 0x3c3   :  { %5188 = vmatpush1.bf16.msra.mxu0 %v7369_v4  ;;  %5252 = vmatpush1.bf16.msra.mxu1 %v7370_v6  ;;  %v7389_v4 = vld [vmem:[#allocation103_spill] sm:$0xff] }
 0x3c4   :  { %5190 = vmatprep.subr.bf16.mxu0 %v7371_v10  ;;  %5254 = vmatprep.subr.bf16.mxu1 %v7372_v22  ;;  %v7390_v10 = vld [vmem:[#allocation104_spill] sm:$0xff] }
 0x3c7   :  { %5192 = vmatpush1.bf16.msra.mxu0 %v7373_v23  ;;  %5256 = vmatpush1.bf16.msra.mxu1 %v7374_v27 }
 0x3c8   :  { %5194 = vmatprep.subr.bf16.mxu0 %v7375_v32  ;;  %5258 = vmatprep.subr.bf16.mxu1 %v7376_v43 }
 0x3cb   :  { %5196 = vmatpush1.bf16.msra.mxu0 %v7377_v7  ;;  %5260 = vmatpush1.bf16.msra.mxu1 %v7378_v55 }
 0x3cc   :  { %5198 = vmatprep.subr.bf16.mxu0 %v7379_v45  ;;  %5262 = vmatprep.subr.bf16.mxu1 %v7380_v1 }
 0x3cf   :  { %5200 = vmatpush1.bf16.msra.mxu0 %v7381_v5  ;;  %5264 = vmatpush1.bf16.msra.mxu1 %v7382_v11 }
 0x3d0   :  { %5202 = vmatprep.subr.bf16.mxu0 %v7383_v12  ;;  %5266 = vmatprep.subr.bf16.mxu1 %v7384_v13 }
 0x3d3   :  { %5204 = vmatpush1.bf16.msra.mxu0 %v7385_v17  ;;  %5268 = vmatpush1.bf16.msra.mxu1 %v7386_v24 }
 0x3d4   :  { %5270 = vmatprep.subr.bf16.mxu0 %v7387_v25  ;;  %5334 = vmatprep.subr.bf16.mxu1 %v7388_v26 }
 0x427   :  { %v2887_v30 = vpop.f32.mrb[4].mxu0  ;;  %v2964_v38 = vpop.f32.mrb[4].mxu1 }
 0x428   :  { %v2889_v39 = vpop.f32.mrb[5].mxu0  ;;  %v2966_v40 = vpop.f32.mrb[5].mxu1  ;;  %v5449_v58 = vadd.f32 %v2887_v30, %v6568_v41  ;;  %v5461_v3 = vadd.f32 %v2964_v38, %v6570_v0 }
 0x429   :  { %v5450_v6 = vadd.f32 %v2889_v39, %v7389_v4  ;;  %v5462_v22 = vadd.f32 %v2966_v40, %v7390_v10 }
 0x42a   :  { %v3798_v23 = vmul.f32 -1.442695, %v5449_v58  ;;  %v3802_v32 = vmul.f32 -1.442695, %v5461_v3 }
 0x42b   :  { %v3799_v7 = vmul.f32 -1.442695, %v5450_v6  ;;  %v3803_v45 = vmul.f32 -1.442695, %v5462_v22 }
 0x42c   :  { %v2893_v44 = vpop.f32.mrb[6].mxu0  ;;  %v2970_v52 = vpop.f32.mrb[6].mxu1  ;;  %5711 = vpow2.f32 %v3798_v23 }
 0x42d   :  { %v2895_v53 = vpop.f32.mrb[7].mxu0  ;;  %v2972_v54 = vpop.f32.mrb[7].mxu1  ;;  %v5451_v27 = vadd.f32 %v2893_v44, %v6568_v41  ;;  %v5463_v43 = vadd.f32 %v2970_v52, %v6570_v0  ;;  %5713 = vpow2.f32 %v3802_v32  ;;  %v7391_v32 = vld [vmem:[#allocation105_spill] sm:$0xff] }
 0x42e   :  { %v5452_v55 = vadd.f32 %v2895_v53, %v7389_v4  ;;  %v5464_v1 = vadd.f32 %v2972_v54, %v7390_v10  ;;  %5715 = vpow2.f32 %v3799_v7  ;;  %v7392_v7 = vld [vmem:[#allocation106_spill] sm:$0xff] }
 0x42f   :  { %v3800_v5 = vmul.f32 -1.442695, %v5451_v27  ;;  %v3804_v11 = vmul.f32 -1.442695, %v5463_v43  ;;  %5717 = vpow2.f32 %v3803_v45 }
 0x430   :  { %v3801_v12 = vmul.f32 -1.442695, %v5452_v55  ;;  %v3805_v13 = vmul.f32 -1.442695, %v5464_v1 }
 0x431   :  { %5719 = vpow2.f32 %v3800_v5  ;;  %v7393_v5 = vld [vmem:[#allocation107_spill] sm:$0xff] }
 0x432   :  { %5721 = vpow2.f32 %v3804_v11 }
 0x433   :  { %5723 = vpow2.f32 %v3801_v12  ;;  %v7394_v12 = vld [vmem:[#allocation108_spill] sm:$0xff] }
 0x434   :  { %5725 = vpow2.f32 %v3805_v13 }
 0x436   :  { %v5712_v17 = vpop.eup %5711 }
 0x437   :  { %v5714_v24 = vpop.eup %5713  ;;  %v3157_v30 = vadd.f32 1.0, %v5712_v17 }
 0x438   :  { %v5716_v25 = vpop.eup %5715  ;;  %v3181_v39 = vadd.f32 1.0, %v5714_v24 }
 0x439   :  { %v5718_v26 = vpop.eup %5717  ;;  %v3158_v44 = vadd.f32 1.0, %v5716_v25  ;;  %5727 = vrcp.f32 %v3157_v30 }
 0x43a   :  { %v3182_v53 = vadd.f32 1.0, %v5718_v26  ;;  %5729 = vrcp.f32 %v3181_v39 }
 0x43b   :  { %v5720_v38 = vpop.eup %5719  ;;  %5731 = vrcp.f32 %v3158_v44 }
 0x43c   :  { %v5722_v40 = vpop.eup %5721  ;;  %v3159_v58 = vadd.f32 1.0, %v5720_v38  ;;  %5733 = vrcp.f32 %v3182_v53 }
 0x43d   :  { %v5724_v52 = vpop.eup %5723  ;;  %v3183_v3 = vadd.f32 1.0, %v5722_v40 }
 0x43e   :  { %v5726_v54 = vpop.eup %5725  ;;  %v3160_v6 = vadd.f32 1.0, %v5724_v52  ;;  %5735 = vrcp.f32 %v3159_v58 }
 0x43f   :  { %v3184_v22 = vadd.f32 1.0, %v5726_v54  ;;  %5737 = vrcp.f32 %v3183_v3 }
 0x440   :  { %5739 = vrcp.f32 %v3160_v6 }
 0x441   :  { %5741 = vrcp.f32 %v3184_v22 }
 0x443   :  { %v5728_v30 = vpop.eup %5727 }
 0x444   :  { %v5730_v52 = vpop.eup %5729 }
 0x445   :  { %v5732_v58 = vpop.eup %5731 }
 0x446   :  { %v5734_v6 = vpop.eup %5733 }
 0x468   :  { %v3041_v23 = vpop.f32.mrb[16].mxu0  ;;  %v3118_v27 = vpop.f32.mrb[16].mxu1 }
 0x469   :  { %v5473_v43 = vadd.f32 %v3041_v23, %v7391_v32  ;;  %v5485_v55 = vadd.f32 %v3118_v27, %v7392_v7  ;;  %v3043_v45 = vpop.f32.mrb[17].mxu0  ;;  %v3120_v1 = vpop.f32.mrb[17].mxu1 }
 0x46a   :  { %v5474_v11 = vadd.f32 %v3043_v45, %v7393_v5  ;;  %v5486_v13 = vadd.f32 %v3120_v1, %v7394_v12  ;;  %v5736_v23 = vpop.eup %5735 }
 0x46b   :  { %5743 = vtanh.f32 %v5473_v43  ;;  %v3806_v17 = vmul.f32 -1.442695, %v5485_v55  ;;  %v5738_v27 = vpop.eup %5737 }
 0x46c   :  { %5745 = vtanh.f32 %v5474_v11  ;;  %v3807_v24 = vmul.f32 -1.442695, %v5486_v13  ;;  %v3047_v25 = vpop.f32.mrb[18].mxu0  ;;  %v3124_v26 = vpop.f32.mrb[18].mxu1  ;;  %v3221_v11 = vmul.f32 %v5730_v52, %v6600_v56 }
 0x46d   :  { %5747 = vpow2.f32 %v3806_v17  ;;  %v5475_v38 = vadd.f32 %v3047_v25, %v7391_v32  ;;  %v5487_v39 = vadd.f32 %v3124_v26, %v7392_v7  ;;  %v3049_v40 = vpop.f32.mrb[19].mxu0  ;;  %v3126_v44 = vpop.f32.mrb[19].mxu1 }
 0x46e   :  { %5749 = vpow2.f32 %v3807_v24  ;;  %v5476_v53 = vadd.f32 %v3049_v40, %v7393_v5  ;;  %v5488_v54 = vadd.f32 %v3126_v44, %v7394_v12  ;;  %v5740_v43 = vpop.eup %5739  ;;  %v3222_v24 = vmul.f32 %v5734_v6, %v6602_v62 }
 0x46f   :  { %5751 = vtanh.f32 %v5475_v38  ;;  %v3808_v3 = vmul.f32 -1.442695, %v5487_v39  ;;  %v5742_v55 = vpop.eup %5741 }
 0x470   :  { %5753 = vtanh.f32 %v5476_v53  ;;  %v3809_v22 = vmul.f32 -1.442695, %v5488_v54 }
 0x471   :  { %5755 = vpow2.f32 %v3808_v3  ;;  %v3223_v3 = vmul.f32 %v5738_v27, %v6606_v33 }
 0x472   :  { %5757 = vpow2.f32 %v3809_v22 }
 0x475   :  { %v5744_v45 = vpop.eup %5743 }
 0x476   :  { %v5746_v1 = vpop.eup %5745  ;;  %v3225_v13 = vmul.f32 %v5744_v45, %v5728_v30  ;;  %v3224_v30 = vmul.f32 %v5742_v55, %v6608_v63 }
 0x477   :  { %v5748_v17 = vpop.eup %5747  ;;  %v3226_v25 = vmul.f32 %v5746_v1, %v5732_v58 }
 0x478   :  { %v5750_v26 = vpop.eup %5749  ;;  %v6776_v38 = vadd.f32 %v3225_v13, %v3221_v11  ;;  %v3209_v39 = vadd.f32 1.0, %v5748_v17 }
 0x479   :  { %v5752_v40 = vpop.eup %5751  ;;  %v6778_v44 = vadd.f32 %v3226_v25, %v3222_v24  ;;  %v3210_v53 = vadd.f32 1.0, %v5750_v26 }
 0x47a   :  { %v5754_v54 = vpop.eup %5753  ;;  %5759 = vtanh.f32 %v6776_v38  ;;  %v3227_v22 = vmul.f32 %v5752_v40, %v5736_v23  ;;  %v7400_v40 = vld [vmem:[#allocation63_spill] sm:$0xff] }
 0x47b   :  { %v5756_v56 = vpop.eup %5755  ;;  %5761 = vrcp.f32 %v3209_v39  ;;  %v3228_v62 = vmul.f32 %v5754_v54, %v5740_v43  ;;  %v7399_v39 = vld [vmem:[#allocation62_spill] sm:$0xff]  ;;  %v7402_v54 = vld [vmem:[#allocation65_spill] sm:$0xff] }
 0x47c   :  { %v5758_v52 = vpop.eup %5757  ;;  %5763 = vtanh.f32 %v6778_v44  ;;  %v6784_v58 = vadd.f32 %v3227_v22, %v3223_v3  ;;  %v3211_v6 = vadd.f32 1.0, %v5756_v56  ;;  %v7405_v3 = vld [vmem:[#allocation68_spill] sm:$0xff]  ;;  %v7406_v22 = vld [vmem:[#allocation69_spill] sm:$0xff]  ;;  %v7407_v56 = vld [vmem:[#allocation70_spill] sm:$0xff] }
 0x47d   :  { %5765 = vrcp.f32 %v3210_v53  ;;  %v6786_v45 = vadd.f32 %v3228_v62, %v3224_v30  ;;  %v3212_v1 = vadd.f32 1.0, %v5758_v52  ;;  %v7401_v53 = vld [vmem:[#allocation64_spill] sm:$0xff]  ;;  %v7408_v30 = vld [vmem:[#allocation71_spill] sm:$0xff]  ;;  %v7410_v52 = vld [vmem:[#allocation73_spill] sm:$0xff] }
 0x47e   :  { %5767 = vtanh.f32 %v6784_v58  ;;  %v7409_v62 = vld [vmem:[#allocation72_spill] sm:$0xff] }
 0x47f   :  { %5769 = vrcp.f32 %v3211_v6  ;;  %v7411_v6 = vld [vmem:[#allocation74_spill] sm:$0xff] }
 0x480   :  { %5771 = vtanh.f32 %v6786_v45 }
 0x481   :  { %5773 = vrcp.f32 %v3212_v1  ;;  %v7412_v1 = vld [vmem:[#allocation75_spill] sm:$0xff] }
 0x484   :  { %v5760_v33 = vpop.eup %5759 }
 0x485   :  { %v5762_v63 = vpop.eup %5761 }
 0x486   :  { %v5764_v23 = vpop.eup %5763  ;;  %v6790_v13 = vmul.f32 %v5762_v63, %v5760_v33  ;;  %v7413_v33 = vld [vmem:[#allocation76_spill] sm:$0xff]  ;;  %v7414_v63 = vld [vmem:[#allocation77_spill] sm:$0xff] }
 0x487   :  { %v5766_v27 = vpop.eup %5765 }
 0x488   :  { %v5768_v43 = vpop.eup %5767  ;;  %v3238_v55 = vmul.f32 %v5766_v27, %v5764_v23  ;;  %v7415_v23 = vld [vmem:[#allocation78_spill] sm:$0xff]  ;;  %v7416_v27 = vld [vmem:[#allocation79_spill] sm:$0xff] }
 0x489   :  { %v5770_v11 = vpop.eup %5769 }
 0x48a   :  { %v5772_v17 = vpop.eup %5771  ;;  %3305 = vmatprep.mubr.f32.mxu0 %v3238_v55  ;;  %3382 = vmatprep.mubr.f32.mxu1 %v3238_v55  ;;  %v6800_v26 = vmul.f32 %v5770_v11, %v5768_v43  ;;  %v7417_v43 = vld [vmem:[#allocation80_spill] sm:$0xff]  ;;  %v7419_v11 = vld [vmem:[#allocation82_spill] sm:$0xff] }
 0x48b   :  { %v5774_v24 = vpop.eup %5773  ;;  %3306 = vmatmul.mubr.f32.vlgmr.msra.gmra.mrb[8].mxu0 %v6790_v13  ;;  %3383 = vmatmul.mubr.f32.vlgmr.msra.gmra.mrb[8].mxu1 %v6790_v13 }
 0x48c   :  { %5272 = vmatpush1.bf16.msra.mxu0 %v7299_v15  ;;  %5336 = vmatpush1.bf16.msra.mxu1 %v7300_v35  ;;  %v6796_v25 = vmul.f32 %v5774_v24, %v5772_v17  ;;  %v7395_v15 = vld [vmem:[#allocation58_spill] sm:$0xff]  ;;  %v7396_v35 = vld [vmem:[#allocation59_spill] sm:$0xff]  ;;  %v7421_v24 = vld [vmem:[#allocation84_spill] sm:$0xff] }
 0x48d   :  { %5274 = vmatprep.subr.bf16.mxu0 %v7301_v61  ;;  %5338 = vmatprep.subr.bf16.mxu1 %v7302_v8  ;;  %v7397_v61 = vld [vmem:[#allocation60_spill] sm:$0xff]  ;;  %v7398_v8 = vld [vmem:[#allocation61_spill] sm:$0xff]  ;;  %v7420_v17 = vld [vmem:[#allocation83_spill] sm:$0xff] }
 0x48e   :  { %3311 = vmatprep.mubr.f32.mxu0 %v6796_v25  ;;  %3388 = vmatprep.mubr.f32.mxu1 %v6796_v25 }
 0x48f   :  { %3312 = vmatmul.mubr.f32.gmra.mrb[10].mxu0 %v6800_v26  ;;  %3389 = vmatmul.mubr.f32.gmra.mrb[10].mxu1 %v6800_v26 }
 0x490   :  { %5276 = vmatpush1.bf16.msra.mxu0 %v7303_v47  ;;  %5340 = vmatpush1.bf16.msra.mxu1 %v7304_v31  ;;  %v7403_v47 = vld [vmem:[#allocation66_spill] sm:$0xff]  ;;  %v7404_v31 = vld [vmem:[#allocation67_spill] sm:$0xff] }
 0x491   :  { %3459 = vmatprep.mubr.f32.mxu0 %v3238_v55  ;;  %3536 = vmatprep.mubr.f32.mxu1 %v3238_v55  ;;  %v7418_v55 = vld [vmem:[#allocation81_spill] sm:$0xff] }
 0x492   :  { %5278 = vmatprep.subr.bf16.mxu0 %v7395_v15  ;;  %5342 = vmatprep.subr.bf16.mxu1 %v7396_v35  ;;  %v7422_v15 = vld [vmem:[#allocation85_spill] sm:$0xff]  ;;  %v7423_v35 = vld [vmem:[#allocation86_spill] sm:$0xff] }
 0x494   :  { %5280 = vmatpush1.bf16.msra.mxu0 %v7397_v61  ;;  %5344 = vmatpush1.bf16.msra.mxu1 %v7398_v8  ;;  %v7424_v61 = vld [vmem:[#allocation87_spill] sm:$0xff]  ;;  %v7425_v8 = vld [vmem:[#allocation88_spill] sm:$0xff] }
 0x495   :  { %5282 = vmatprep.subr.bf16.mxu0 %v7399_v39  ;;  %5346 = vmatprep.subr.bf16.mxu1 %v7400_v40  ;;  %v7426_v39 = vld [vmem:[#allocation89_spill] sm:$0xff]  ;;  %v7427_v40 = vld [vmem:[#allocation90_spill] sm:$0xff] }
 0x498   :  { %5284 = vmatpush1.bf16.msra.mxu0 %v7401_v53  ;;  %5348 = vmatpush1.bf16.msra.mxu1 %v7402_v54  ;;  %v7428_v53 = vld [vmem:[#allocation92_spill] sm:$0xff] }
 0x499   :  { %5286 = vmatprep.subr.bf16.mxu0 %v7403_v47  ;;  %5350 = vmatprep.subr.bf16.mxu1 %v7404_v31  ;;  %v3686_v54 = vld [vmem:[%s6996_s4 + $0xc8] sm:$0xff]  ;;  %v3669_v31 = vld [vmem:[%s6996_s4 + $0x40] sm:$0xff] }
 0x49c   :  { %5288 = vmatpush1.bf16.msra.mxu0 %v7405_v3  ;;  %5352 = vmatpush1.bf16.msra.mxu1 %v7406_v22  ;;  %v3670_v3 = vld [vmem:[%s6996_s4 + $0x48] sm:$0xff] }
 0x49d   :  { %5290 = vmatprep.subr.bf16.mxu0 %v7407_v56  ;;  %5354 = vmatprep.subr.bf16.mxu1 %v7408_v30  ;;  %v5415_v22 = vpack.c.bf16 %v3670_v3, %v3669_v31  ;;  %v3687_v56 = vld [vmem:[%s6996_s4 + $0xd0] sm:$0xff]  ;;  %v3688_v30 = vld [vmem:[%s6996_s4 + $0xd8] sm:$0xff] }
 0x4a0   :  { %5292 = vmatpush1.bf16.msra.mxu0 %v7409_v62  ;;  %5356 = vmatpush1.bf16.msra.mxu1 %v7410_v52  ;;  %v5417_v62 = vpack.c.bf16 %v3688_v30, %v3687_v56  ;;  %v3671_v52 = vld [vmem:[%s6996_s4 + $0x50] sm:$0xff] }
 0x4a1   :  { %5294 = vmatprep.subr.bf16.mxu0 %v7411_v6  ;;  %5358 = vmatprep.subr.bf16.mxu1 %v7412_v1  ;;  %v3672_v6 = vld [vmem:[%s6996_s4 + $0x58] sm:$0xff] }
 0x4a2   :  { %v5419_v1 = vpack.c.bf16 %v3672_v6, %v3671_v52 }
 0x4a4   :  { %5296 = vmatpush1.bf16.msra.mxu0 %v7413_v33  ;;  %5360 = vmatpush1.bf16.msra.mxu1 %v7414_v63  ;;  %v3689_v33 = vld [vmem:[%s6996_s4 + $0xe0] sm:$0xff]  ;;  %v3690_v63 = vld [vmem:[%s6996_s4 + $0xe8] sm:$0xff] }
 0x4a5   :  { %5298 = vmatprep.subr.bf16.mxu0 %v7415_v23  ;;  %5362 = vmatprep.subr.bf16.mxu1 %v7416_v27  ;;  %v5421_v23 = vpack.c.bf16 %v3690_v63, %v3689_v33  ;;  %v3673_v27 = vld [vmem:[%s6996_s4 + $0x60] sm:$0xff] }
 0x4a8   :  { %5300 = vmatpush1.bf16.msra.mxu0 %v7417_v43  ;;  %5364 = vmatpush1.bf16.msra.mxu1 %v7418_v55  ;;  %v3674_v43 = vld [vmem:[%s6996_s4 + $0x68] sm:$0xff]  ;;  %v3691_v55 = vld [vmem:[%s6996_s4 + $0xf0] sm:$0xff] }
 0x4a9   :  { %5302 = vmatprep.subr.bf16.mxu0 %v7419_v11  ;;  %5366 = vmatprep.subr.bf16.mxu1 %v7420_v17  ;;  %v5423_v11 = vpack.c.bf16 %v3674_v43, %v3673_v27  ;;  %v3692_v17 = vld [vmem:[%s6996_s4 + $0xf8] sm:$0xff] }
 0x4ac   :  { %5304 = vmatpush1.bf16.msra.mxu0 %v7421_v24  ;;  %5368 = vmatpush1.bf16.msra.mxu1 %v7422_v15  ;;  %v3675_v24 = vld [vmem:[%s6996_s4 + $0x70] sm:$0xff]  ;;  %v3676_v15 = vld [vmem:[%s6996_s4 + $0x78] sm:$0xff] }
 0x4ad   :  { %5306 = vmatprep.subr.bf16.mxu0 %v7423_v35  ;;  %5370 = vmatprep.subr.bf16.mxu1 %v7424_v61  ;;  %v5425_v35 = vpack.c.bf16 %v3692_v17, %v3691_v55  ;;  %v5427_v61 = vpack.c.bf16 %v3676_v15, %v3675_v24 }
 0x4b0   :  { %5308 = vmatpush1.bf16.msra.mxu0 %v7425_v8  ;;  %5372 = vmatpush1.bf16.msra.mxu1 %v7426_v39 }
 0x4b1   :  { %5310 = vmatprep.subr.bf16.mxu0 %v7427_v40  ;;  %5374 = vmatprep.subr.bf16.mxu1 %v7338_v49 }
 0x4b4   :  { %5312 = vmatpush1.bf16.msra.mxu0 %v7428_v53  ;;  %5376 = vmatpush1.bf16.msra.mxu1 %v7340_v50  ;;  %v3682_v50 = vld [vmem:[%s6996_s4 + $0xa8] sm:$0xff] }
 0x4b5   :  { %5314 = vmatprep.subr.bf16.mxu0 %v7341_v46  ;;  %5378 = vmatprep.subr.bf16.mxu1 %v7342_v48  ;;  %v3665_v48 = vld [vmem:[%s6996_s4 + $0x20] sm:$0xff] }
 0x4b8   :  { %5316 = vmatpush1.bf16.msra.mxu0 %v7343_v14  ;;  %5380 = vmatpush1.bf16.msra.mxu1 %v7344_v42  ;;  %v3666_v14 = vld [vmem:[%s6996_s4 + $0x28] sm:$0xff] }
 0x4b9   :  { %5318 = vmatprep.subr.bf16.mxu0 %v7345_v28  ;;  %5382 = vmatprep.subr.bf16.mxu1 %v7346_v21  ;;  %v5407_v42 = vpack.c.bf16 %v3666_v14, %v3665_v48  ;;  %v3683_v28 = vld [vmem:[%s6996_s4 + $0xb0] sm:$0xff]  ;;  %v3684_v21 = vld [vmem:[%s6996_s4 + $0xb8] sm:$0xff] }
 0x4bc   :  { %5320 = vmatpush1.bf16.msra.mxu0 %v7347_v20  ;;  %5384 = vmatpush1.bf16.msra.mxu1 %v7348_v19  ;;  %v5409_v20 = vpack.c.bf16 %v3684_v21, %v3683_v28  ;;  %v3667_v19 = vld [vmem:[%s6996_s4 + $0x30] sm:$0xff] }
 0x4bd   :  { %5322 = vmatprep.subr.bf16.mxu0 %v6457_v51  ;;  %5386 = vmatprep.subr.bf16.mxu1 %v7349_v2  ;;  %v3681_v2 = vld [vmem:[%s6996_s4 + $0xa0] sm:$0xff] }
 0x4be   :  { %v5405_v46 = vpack.c.bf16 %v3682_v50, %v3681_v2 }
 0x4c0   :  { %5324 = vmatpush1.bf16.msra.mxu0 %v6463_v16  ;;  %5388 = vmatpush1.bf16.msra.mxu1 %v6467_v29  ;;  %v3677_v16 = vld [vmem:[%s6996_s4 + $0x80] sm:$0xff] }
 0x4c1   :  { %5326 = vmatprep.subr.bf16.mxu0 %v6469_v60  ;;  %5390 = vmatprep.subr.bf16.mxu1 %v6472_v57  ;;  %v3661_v29 = vld [vmem:[%s6996_s4] sm:$0xff]  ;;  %v3662_v60 = vld [vmem:[%s6996_s4 + $0x8] sm:$0xff] }
 0x4c2   :  { %v5399_v57 = vpack.c.bf16 %v3662_v60, %v3661_v29 }
 0x4c4   :  { %5328 = vmatpush1.bf16.msra.mxu0 %v6475_v36  ;;  %5392 = vmatpush1.bf16.msra.mxu1 %v6479_v9  ;;  %v3678_v36 = vld [vmem:[%s6996_s4 + $0x88] sm:$0xff]  ;;  %v3679_v9 = vld [vmem:[%s6996_s4 + $0x90] sm:$0xff] }
 0x4c5   :  { %5330 = vmatprep.subr.bf16.mxu0 %v6481_v59  ;;  %5394 = vmatprep.subr.bf16.mxu1 %v6484_v18  ;;  %v5397_v51 = vpack.c.bf16 %v3678_v36, %v3677_v16  ;;  %v3680_v59 = vld [vmem:[%s6996_s4 + $0x98] sm:$0xff] }
 0x4c6   :  { %v5401_v18 = vpack.c.bf16 %v3680_v59, %v3679_v9 }
 0x4c8   :  { %5332 = vmatpush1.bf16.msra.mxu0 %v6487_v34  ;;  %5396 = vmatpush1.bf16.msra.mxu1 %v6491_v37  ;;  %v3663_v34 = vld [vmem:[%s6996_s4 + $0x10] sm:$0xff]  ;;  %v3664_v37 = vld [vmem:[%s6996_s4 + $0x18] sm:$0xff] }
 0x4c9   :  { %5398 = vmatprep.subr.bf16.mxu0 %v5397_v51  ;;  %5429 = vmatprep.subr.bf16.mxu1 %v5397_v51  ;;  %v5403_v49 = vpack.c.bf16 %v3664_v37, %v3663_v34 }
 0x4cb   :  { %3460 = vmatmul.mubr.f32.vlgmr.msra.gmra.mrb[20].mxu0 %v6790_v13  ;;  %3537 = vmatmul.mubr.f32.vlgmr.msra.gmra.mrb[20].mxu1 %v6790_v13  ;;  %v3668_v13 = vld [vmem:[%s6996_s4 + $0x38] sm:$0xff] }
 0x4cc   :  { %3465 = vmatprep.mubr.f32.mxu0 %v6796_v25  ;;  %3542 = vmatprep.mubr.f32.mxu1 %v6796_v25  ;;  %v5411_v25 = vpack.c.bf16 %v3668_v13, %v3667_v19 }
 0x4cd   :  { %5400 = vmatpush3.bf16.msra.mxu0 %v5399_v57  ;;  %5437 = vmatpush3.bf16.msra.mxu1 %v5399_v57 }
 0x4ce   :  { %5402 = vmatprep.subr.bf16.mxu0 %v5401_v18  ;;  %5430 = vmatprep.subr.bf16.mxu1 %v5401_v18 }
 0x4cf   :  { %3466 = vmatmul.mubr.f32.gmra.mrb[22].mxu0 %v6800_v26  ;;  %3543 = vmatmul.mubr.f32.gmra.mrb[22].mxu1 %v6800_v26  ;;  %v3685_v26 = vld [vmem:[%s6996_s4 + $0xc0] sm:$0xff] }
 0x4d0   :  { %v5413_v47 = vpack.c.bf16 %v3686_v54, %v3685_v26 }
 0x4d1   :  { %5404 = vmatpush3.bf16.msra.mxu0 %v5403_v49  ;;  %5438 = vmatpush3.bf16.msra.mxu1 %v5403_v49 }
 0x4d2   :  { %5406 = vmatprep.subr.bf16.mxu0 %v5405_v46  ;;  %5431 = vmatprep.subr.bf16.mxu1 %v5405_v46 }
 0x4d5   :  { %5408 = vmatpush3.bf16.msra.mxu0 %v5407_v42  ;;  %5439 = vmatpush3.bf16.msra.mxu1 %v5407_v42 }
 0x4d6   :  { %5410 = vmatprep.subr.bf16.mxu0 %v5409_v20  ;;  %5432 = vmatprep.subr.bf16.mxu1 %v5409_v20 }
 0x4d9   :  { %5412 = vmatpush3.bf16.msra.mxu0 %v5411_v25  ;;  %5440 = vmatpush3.bf16.msra.mxu1 %v5411_v25 }
 0x4da   :  { %5414 = vmatprep.subr.bf16.mxu0 %v5413_v47  ;;  %5433 = vmatprep.subr.bf16.mxu1 %v5413_v47 }
 0x4dd   :  { %5416 = vmatpush3.bf16.msra.mxu0 %v5415_v22  ;;  %5441 = vmatpush3.bf16.msra.mxu1 %v5415_v22 }
 0x4de   :  { %5418 = vmatprep.subr.bf16.mxu0 %v5417_v62  ;;  %5434 = vmatprep.subr.bf16.mxu1 %v5417_v62 }
 0x4e1   :  { %5420 = vmatpush3.bf16.msra.mxu0 %v5419_v1  ;;  %5442 = vmatpush3.bf16.msra.mxu1 %v5419_v1 }
 0x4e2   :  { %5422 = vmatprep.subr.bf16.mxu0 %v5421_v23  ;;  %5435 = vmatprep.subr.bf16.mxu1 %v5421_v23 }
 0x4e5   :  { %5424 = vmatpush3.bf16.msra.mxu0 %v5423_v11  ;;  %5443 = vmatpush3.bf16.msra.mxu1 %v5423_v11 }
 0x4e6   :  { %5426 = vmatprep.subr.bf16.mxu0 %v5425_v35  ;;  %5436 = vmatprep.subr.bf16.mxu1 %v5425_v35 }
 0x4e9   :  { %5428 = vmatpush3.bf16.msra.mxu0 %v5427_v61  ;;  %5444 = vmatpush3.bf16.msra.mxu1 %v5427_v61 }
 0x55e   :  { %v3307_v8 = vpop.f32.mrb[8].mxu0  ;;  %v3384_v39 = vpop.f32.mrb[8].mxu1 }
 0x55f   :  { %v3309_v40 = vpop.f32.mrb[9].mxu0  ;;  %v3386_v53 = vpop.f32.mrb[9].mxu1  ;;  %v5453_v60 = vadd.f32 %v3307_v8, %v6568_v41  ;;  %v5465_v57 = vadd.f32 %v3384_v39, %v6570_v0 }
 0x560   :  { %v5454_v9 = vadd.f32 %v3309_v40, %v7389_v4  ;;  %v5466_v59 = vadd.f32 %v3386_v53, %v7390_v10 }
 0x561   :  { %v3810_v18 = vmul.f32 -1.442695, %v5453_v60  ;;  %v3814_v37 = vmul.f32 -1.442695, %v5465_v57 }
 0x562   :  { %v3313_v16 = vpop.f32.mrb[10].mxu0  ;;  %v3390_v36 = vpop.f32.mrb[10].mxu1  ;;  %v3811_v2 = vmul.f32 -1.442695, %v5454_v9  ;;  %v3815_v46 = vmul.f32 -1.442695, %v5466_v59 }
 0x563   :  { %v3315_v51 = vpop.f32.mrb[11].mxu0  ;;  %v3392_v29 = vpop.f32.mrb[11].mxu1  ;;  %v5455_v34 = vadd.f32 %v3313_v16, %v6568_v41  ;;  %v5467_v49 = vadd.f32 %v3390_v36, %v6570_v0  ;;  %5775 = vpow2.f32 %v3810_v18 }
 0x564   :  { %v5456_v50 = vadd.f32 %v3315_v51, %v7389_v4  ;;  %v5468_v48 = vadd.f32 %v3392_v29, %v7390_v10  ;;  %5777 = vpow2.f32 %v3814_v37 }
 0x565   :  { %v3812_v14 = vmul.f32 -1.442695, %v5455_v34  ;;  %v3816_v42 = vmul.f32 -1.442695, %v5467_v49  ;;  %5779 = vpow2.f32 %v3811_v2 }
 0x566   :  { %v3813_v28 = vmul.f32 -1.442695, %v5456_v50  ;;  %5781 = vpow2.f32 %v3815_v46  ;;  %v3817_v21 = vmul.f32 -1.442695, %v5468_v48 }
 0x567   :  { %5783 = vpow2.f32 %v3812_v14 }
 0x568   :  { %5785 = vpow2.f32 %v3816_v42 }
 0x569   :  { %5787 = vpow2.f32 %v3813_v28 }
 0x56a   :  { %5789 = vpow2.f32 %v3817_v21 }
 0x56d   :  { %v5776_v41 = vpop.eup %5775 }
 0x56e   :  { %v5778_v0 = vpop.eup %5777  ;;  %v3577_v4 = vadd.f32 1.0, %v5776_v41 }
 0x56f   :  { %v5780_v20 = vpop.eup %5779  ;;  %v3601_v25 = vadd.f32 1.0, %v5778_v0 }
 0x570   :  { %v5782_v19 = vpop.eup %5781  ;;  %v3578_v26 = vadd.f32 1.0, %v5780_v20  ;;  %5791 = vrcp.f32 %v3577_v4 }
 0x571   :  { %v5784_v13 = vpop.eup %5783  ;;  %v3602_v47 = vadd.f32 1.0, %v5782_v19  ;;  %5793 = vrcp.f32 %v3601_v25 }
 0x572   :  { %v5786_v10 = vpop.eup %5785  ;;  %v3579_v3 = vadd.f32 1.0, %v5784_v13  ;;  %5795 = vrcp.f32 %v3578_v26 }
 0x573   :  { %v5788_v54 = vpop.eup %5787  ;;  %v3603_v22 = vadd.f32 1.0, %v5786_v10  ;;  %5797 = vrcp.f32 %v3602_v47 }
 0x574   :  { %v5790_v31 = vpop.eup %5789  ;;  %v3580_v56 = vadd.f32 1.0, %v5788_v54  ;;  %5799 = vrcp.f32 %v3579_v3 }
 0x575   :  { %v3604_v30 = vadd.f32 1.0, %v5790_v31  ;;  %5801 = vrcp.f32 %v3603_v22 }
 0x576   :  { %5803 = vrcp.f32 %v3580_v56 }
 0x577   :  { %5805 = vrcp.f32 %v3604_v30 }
 0x57a   :  { %v5792_v24 = vpop.eup %5791 }
 0x57b   :  { %v5794_v39 = vpop.eup %5793 }
 0x57c   :  { %v5796_v16 = vpop.eup %5795  ;;  %v3641_v18 = vmul.f32 %v5794_v39, %v6776_v38 }
 0x57d   :  { %v5798_v51 = vpop.eup %5797 }
 0x57e   :  { %v5800_v60 = vpop.eup %5799 }
 0x57f   :  { %v5802_v57 = vpop.eup %5801 }
 0x580   :  { %v3643_v28 = vmul.f32 %v5802_v57, %v6784_v58 }
 0x59e   :  { %v3461_v62 = vpop.f32.mrb[20].mxu0  ;;  %v3538_v52 = vpop.f32.mrb[20].mxu1 }
 0x59f   :  { %v5477_v6 = vadd.f32 %v3461_v62, %v7391_v32  ;;  %v5489_v1 = vadd.f32 %v3538_v52, %v7392_v7  ;;  %v3463_v33 = vpop.f32.mrb[21].mxu0  ;;  %v3540_v63 = vpop.f32.mrb[21].mxu1  ;;  %v3822_v52 = vld [vmem:[#allocation9] ss:$0 sm:$0xff] }
 0x5a0   :  { %v5478_v23 = vadd.f32 %v3463_v33, %v7393_v5  ;;  %v5490_v27 = vadd.f32 %v3540_v63, %v7394_v12 }
 0x5a1   :  { %5807 = vtanh.f32 %v5477_v6  ;;  %v3818_v43 = vmul.f32 -1.442695, %v5489_v1 }
 0x5a2   :  { %5809 = vtanh.f32 %v5478_v23  ;;  %v3819_v55 = vmul.f32 -1.442695, %v5490_v27  ;;  %v3467_v11 = vpop.f32.mrb[22].mxu0  ;;  %v3544_v17 = vpop.f32.mrb[22].mxu1 }
 0x5a3   :  { %5811 = vpow2.f32 %v3818_v43  ;;  %v5479_v15 = vadd.f32 %v3467_v11, %v7391_v32  ;;  %v5491_v35 = vadd.f32 %v3544_v17, %v7392_v7  ;;  %v3469_v61 = vpop.f32.mrb[23].mxu0  ;;  %v3546_v8 = vpop.f32.mrb[23].mxu1 }
 0x5a4   :  { %5813 = vpow2.f32 %v3819_v55  ;;  %v5480_v40 = vadd.f32 %v3469_v61, %v7393_v5  ;;  %v5492_v53 = vadd.f32 %v3546_v8, %v7394_v12  ;;  %v5804_v32 = vpop.eup %5803  ;;  %v3642_v12 = vmul.f32 %v5798_v51, %v6778_v44 }
 0x5a5   :  { %5815 = vtanh.f32 %v5479_v15  ;;  %v3820_v36 = vmul.f32 -1.442695, %v5491_v35  ;;  %v5806_v7 = vpop.eup %5805 }
 0x5a6   :  { %5817 = vtanh.f32 %v5480_v40  ;;  %v3821_v29 = vmul.f32 -1.442695, %v5492_v53  ;;  %v3644_v0 = vmul.f32 %v5806_v7, %v6786_v45 }
 0x5a7   :  { %5819 = vpow2.f32 %v3820_v36 }
 0x5a8   :  { %5821 = vpow2.f32 %v3821_v29 }
 0x5ab   :  { %v5808_v9 = vpop.eup %5807 }
 0x5ac   :  { %v5810_v59 = vpop.eup %5809  ;;  %v3645_v34 = vmul.f32 %v5808_v9, %v5792_v24 }
 0x5ad   :  { %v5812_v5 = vpop.eup %5811  ;;  %v3646_v37 = vmul.f32 %v5810_v59, %v5796_v16 }
 0x5ae   :  { %v5814_v49 = vpop.eup %5813  ;;  %v3649_v2 = vadd.f32 %v3645_v34, %v3641_v18  ;;  %v3629_v50 = vadd.f32 1.0, %v5812_v5 }
 0x5af   :  { %v5816_v46 = vpop.eup %5815  ;;  %v3650_v48 = vadd.f32 %v3646_v37, %v3642_v12  ;;  %v3630_v14 = vadd.f32 1.0, %v5814_v49 }
 0x5b0   :  { %v5818_v42 = vpop.eup %5817  ;;  %5823 = vtanh.f32 %v3649_v2  ;;  %v3647_v21 = vmul.f32 %v5816_v46, %v5800_v60 }
 0x5b1   :  { %v5820_v41 = vpop.eup %5819  ;;  %5825 = vrcp.f32 %v3629_v50  ;;  %v3648_v38 = vmul.f32 %v5818_v42, %v5804_v32 }
 0x5b2   :  { %v5822_v20 = vpop.eup %5821  ;;  %5827 = vtanh.f32 %v3650_v48  ;;  %v3651_v44 = vadd.f32 %v3647_v21, %v3643_v28  ;;  %v3631_v19 = vadd.f32 1.0, %v5820_v41 }
 0x5b3   :  { %5829 = vrcp.f32 %v3630_v14  ;;  %v3652_v4 = vadd.f32 %v3648_v38, %v3644_v0  ;;  %v3632_v13 = vadd.f32 1.0, %v5822_v20 }
 0x5b4   :  { %5831 = vtanh.f32 %v3651_v44 }
 0x5b5   :  { %5833 = vrcp.f32 %v3631_v19 }
 0x5b6   :  { %5835 = vtanh.f32 %v3652_v4 }
 0x5b7   :  { %5837 = vrcp.f32 %v3632_v13 }
 0x5ba   :  { %v5824_v25 = vpop.eup %5823 }
 0x5bb   :  { %v5826_v58 = vpop.eup %5825 }
 0x5bc   :  { %v5828_v10 = vpop.eup %5827  ;;  %v3657_v26 = vmul.f32 %v5826_v58, %v5824_v25 }
 0x5bd   :  { %v5830_v54 = vpop.eup %5829 }
 0x5be   :  { %v5832_v47 = vpop.eup %5831  ;;  %v3658_v45 = vmul.f32 %v5830_v54, %v5828_v10 }
 0x5bf   :  { %v5834_v31 = vpop.eup %5833 }
 0x5c0   :  { %v5836_v3 = vpop.eup %5835  ;;  %3764 = vmatprep.mubr.f32.mxu0 %v3658_v45  ;;  %v3659_v22 = vmul.f32 %v5834_v31, %v5832_v47 }
 0x5c1   :  { %v5838_v56 = vpop.eup %5837  ;;  %3765 = vmatmul.mubr.f32.vlgmr.msra.gmra.mrb[24].mxu0 %v3657_v26 }
 0x5c2   :  { %v3660_v30 = vmul.f32 %v5838_v56, %v5836_v3 }
 0x5c4   :  { %3769 = vmatprep.mubr.f32.mxu1 %v3660_v30 }
 0x5c5   :  { %3770 = vmatmul.mubr.f32.vlgmr.msra.gmra.mrb[24].mxu1 %v3659_v22 }
 0x694   :  { %v3855_v62 = vpop.f32.mrb[24].mxu0 }
 0x695   :  { %v3856_v6 = vpop.f32.mrb[25].mxu0 }
 0x696   :  { %v3857_v1 = vadd.f32 %v3856_v6, %v3855_v62 }
 0x698   :  { %v3767_v33 = vadd.f32 %v3857_v1, %v3822_v52  ;;  %v3858_v63 = vpop.f32.mrb[24].mxu1 }
 0x699   :  { %v3859_v23 = vpop.f32.mrb[25].mxu1 }
 0x69a   :  { %3776 = vst.msk [vmem:[%s6998_s6] sm:$0xff] %vm3775_vm0, %v3767_v33  ;;  %v3860_v27 = vadd.f32 %v3859_v23, %v3858_v63 }
 0x69c   :  { %v3772_v43 = vadd.f32 %v3860_v27, %v3822_v52 }
 0x69e   :  { %3778 = vst.msk [vmem:[%s6998_s6 + $0x8] sm:$0x3] %vm3777_vm1, %v3772_v43 }
 0x69f   :  { %3783 = vsyncpa [#allocation3], 1 }
 0x6a0   :  { %3784 = vsyncpa [#allocation5], 1 }
 0x6a1   :  { %3785 = vsyncpa [#allocation8], 1 }

</bundles_post_ra>
